<compile_context>
chip_gen: v5e
topology: v5e:2x2
jax: 0.10.0
libtpu: 0.0.40
codegen_flags: <defaults>
</compile_context>

<pallas_src>
import jax
import jax.numpy as jnp
from jax import lax
from jax.experimental import pallas as pl
from jax.experimental.pallas import tpu as pltpu

_EPS = 1e-5       # PyTorch InstanceNorm2d default eps
_OFF = 8          # sublane-aligned flat-row offset of the padded image in scratch


def _round_up(x, m):
    return ((x + m - 1) // m) * m


def _make_kernel(H, W, C, Mp, OFF, Wp, R, compute_dtype):
    HW = H * W
    HWp = H * Wp
    use_mask = (Wp == W)          # no spacer columns; mask the wrap-around taps

    def kernel(x_ref, w1_ref, g1_ref, b1_ref, w2_ref, g2_ref, b2_ref,
               w3_ref, g3_ref, b3_ref, sw1_ref, sb1_ref, sw2_ref, sb2_ref,
               out_ref, pad_ref):

        def inorm(y, g_ref, b_ref):
            # Single-pass InstanceNorm (f32 stats) folded into one affine:
            #   y_hat = y*s + t,  s = gamma*rsqrt(var+eps),  t = beta - mu*s
            mu = jnp.mean(y, axis=0, keepdims=True)
            ex2 = jnp.mean(y * y, axis=0, keepdims=True)
            var = jnp.maximum(ex2 - mu * mu, 0.0)
            s = g_ref[...] * lax.rsqrt(var + _EPS)
            t = b_ref[...] - mu * s
            return y * s + t

        # ---- conv1: 1x1 (no bias) + InstanceNorm + ReLU ---------------------
        y = jnp.dot(x_ref[...].reshape(HW, C).astype(compute_dtype),
                    w1_ref[...], preferred_element_type=jnp.float32)
        y = jnp.maximum(inorm(y, g1_ref, b1_ref), 0.0)

        # ---- conv2: 3x3, padding=1 (no bias) --------------------------------
        # Zero only the halo (prefix + top pad row, bottom pad row + slack);
        # the interior is fully overwritten below.  Re-zeroed every step since
        # the scratch is per-core and the "parallel" batch axis may be sharded
        # across TensorCores (per-core first-step detection is not portable).
        pad_ref[0:OFF + Wp, :] = jnp.zeros((OFF + Wp, Mp), compute_dtype)
        bot = OFF + (H + 1) * Wp
        pad_ref[bot:R, :] = jnp.zeros((R - bot, Mp), compute_dtype)

        # Single contiguous slab store of the image interior.
        if use_mask:
            pad_ref[OFF + Wp:OFF + Wp + HW, :] = y.astype(compute_dtype)
        else:
            y_img = y.astype(compute_dtype).reshape(H, W, Mp)
            y_img = jnp.concatenate(
                [y_img, jnp.zeros((H, Wp - W, Mp), compute_dtype)], axis=1)
            pad_ref[OFF + Wp:OFF + (H + 1) * Wp, :] = y_img.reshape(HWp, Mp)

        if use_mask:
            # Wp == W: kill the row-wrap-around reads (dx=-1 tap at output
            # col 0 reads the previous row's last col; dx=+1 tap at col W-1
            # reads the next row's first col) with 0/1 masks on the operand.
            col = lax.broadcasted_iota(jnp.int32, (HWp, 1), 0) % W
            mask_l = (col != 0).astype(compute_dtype)
            mask_r = (col != W - 1).astype(compute_dtype)

        # 9 accumulating MXU dots of K=Mp reading flat spans of pad_ref
        # directly; the sum is a plain value chain (no f32 scratch RMW).
        acc = None
        for dy in range(3):
            base = OFF - 1 + dy * Wp
            for dx in range(3):
                opnd = pad_ref[base + dx:base + dx + HWp, :]
                if use_mask and dx == 0:
                    opnd = opnd * mask_l
                elif use_mask and dx == 2:
                    opnd = opnd * mask_r
                contrib = jnp.dot(opnd, w2_ref[dy * 3 + dx],
                                  preferred_element_type=jnp.float32)
                acc = contrib if acc is None else acc + contrib

        if use_mask:
            y2 = acc
        else:
            # drop the junk spacer-column outputs
            y2 = acc.reshape(H, Wp, Mp)[:, :W, :].reshape(HW, Mp)
        y2 = jnp.maximum(inorm(y2, g2_ref, b2_ref), 0.0)

        # ---- conv3: 1x1 (no bias) + InstanceNorm ----------------------------
        z = jnp.dot(y2.astype(compute_dtype), w3_ref[...],
                    preferred_element_type=jnp.float32)
        z = inorm(z, g3_ref, b3_ref)

        # ---- SqueezeExcitation ----------------------------------------------
        # Global average pool of the affine instance-normalised z is exactly
        # beta3: mean(z*s + t) = mu*s + (beta - mu*s) = beta.  Tied to inorm().
        pooled = b3_ref[...]                                        # (1, C)
        se = jnp.dot(pooled, sw1_ref[...],
                     preferred_element_type=jnp.float32) + sb1_ref[...]
        se = jnp.maximum(se, 0.0)
        se = jnp.dot(se, sw2_ref[...],
                     preferred_element_type=jnp.float32) + sb2_ref[...]
        gate = jax.nn.sigmoid(se)                                   # (1, C)

        # ---- residual add + final ReLU (re-read x; don't keep it live) -----
        res = x_ref[...].reshape(HW, C).astype(jnp.float32)
        out = jnp.maximum(z * gate + res, 0.0)
        out_ref[...] = out.reshape(H, W, C).astype(out_ref.dtype)

    return kernel


def _prepare_params(p, compute_dtype):
    """Zero-pad mid/in-out channels to multiples of 128 lanes; cast matmul
    weights to the compute dtype (norm/SE params stay f32)."""
    C, M = p["w1"].shape
    S = p["se_w1"].shape[1]
    Mp = _round_up(M, 128)
    Cp = _round_up(C, 128)
    dm, dc = Mp - M, Cp - C
    cd = compute_dtype
    prm = dict(
        w1=jnp.pad(p["w1"], ((0, dc), (0, dm))).astype(cd),
        g1=jnp.pad(p["g1"], ((0, 0), (0, dm))),
        b1=jnp.pad(p["b1"], ((0, 0), (0, dm))),
        w2=jnp.pad(p["w2"], ((0, 0), (0, dm), (0, dm))).astype(cd),  # (9,Mp,Mp)
        g2=jnp.pad(p["g2"], ((0, 0), (0, dm))),
        b2=jnp.pad(p["b2"], ((0, 0), (0, dm))),
        w3=jnp.pad(p["w3"], ((0, dm), (0, dc))).astype(cd),
        g3=jnp.pad(p["g3"], ((0, 0), (0, dc))),
        b3=jnp.pad(p["b3"], ((0, 0), (0, dc))),
        se_w1=jnp.pad(p["se_w1"], ((0, dc), (0, 0))),
        se_b1=p["se_b1"],
        se_w2=jnp.pad(p["se_w2"], ((0, 0), (0, dc))),
        se_b2=jnp.pad(p["se_b2"], ((0, 0), (0, dc))),
    )
    return prm, Mp, Cp, S


def _derive_vmem_limit(H, W, Wp, R, C, Mp, S, bytes_act):
    """Shape-derived scoped-VMEM request, clamped to ~90% of physical VMEM."""
    f32 = 4
    x_blk = H * W * C * bytes_act                          # one activation block
    weights = (C * Mp + 9 * Mp * Mp + Mp * C) * bytes_act \
        + (6 * Mp + 6 * C + 2 * S + 2 * C * S) * f32
    pad_buf = R * Mp * bytes_act
    live = (2 * H * Wp * Mp + 3 * H * W * Mp + 2 * H * W * C) * f32
    est = 4 * x_blk + 2 * weights + pad_buf + live         # x/out double-buffered
    est = int(est * 1.5) + (8 << 20)
    try:
        phys = pltpu.get_tpu_info().vmem_capacity_bytes
    except Exception:
        phys = 64 << 20                                    # conservative (v7x)
    return max(32 << 20, min(est, int(phys * 0.9)))


def bottleneck_forward_nhwc(x, p, *, use_bf16=True):
    """x: (N, H, W, C) NHWC.  Returns (N, H, W, C) in bf16 (use_bf16) / f32."""
    N, H, W, C_in = x.shape
    assert C_in == p["w1"].shape[0], "channel mismatch between x and params"
    act_dtype = jnp.bfloat16 if use_bf16 else jnp.float32
    prm, Mp, Cp, S = _prepare_params(p, act_dtype)

    if Cp != C_in:      # keep the output BlockSpec lane-dense for odd C
        x = jnp.pad(x, ((0, 0), (0, 0), (0, 0), (0, Cp - C_in)))
    x = x.astype(act_dtype)

    Wp = W if W % 8 == 0 else _round_up(W + 1, 8)   # padded flat-row width
    R = _round_up(_OFF + (H + 2) * Wp + 1, 8)       # flat scratch rows

    kernel = _make_kernel(H, W, Cp, Mp, _OFF, Wp, R, act_dtype)

    full2 = lambda b: (0, 0)
    full3 = lambda b: (0, 0, 0)
    bytes_act = 2 if use_bf16 else 4
    vmem_limit = _derive_vmem_limit(H, W, Wp, R, Cp, Mp, S, bytes_act)

    out = pl.pallas_call(
        kernel,
        out_shape=jax.ShapeDtypeStruct((N, H, W, Cp), act_dtype),
        grid=(N,),
        in_specs=[
            pl.BlockSpec((None, H, W, Cp), lambda b: (b, 0, 0, 0)),  # x
            pl.BlockSpec((Cp, Mp), full2),          # w1
            pl.BlockSpec((1, Mp), full2),           # gamma1
            pl.BlockSpec((1, Mp), full2),           # beta1
            pl.BlockSpec((9, Mp, Mp), full3),       # w2 (per-tap matrices)
            pl.BlockSpec((1, Mp), full2),           # gamma2
            pl.BlockSpec((1, Mp), full2),           # beta2
            pl.BlockSpec((Mp, Cp), full2),          # w3
            pl.BlockSpec((1, Cp), full2),           # gamma3
            pl.BlockSpec((1, Cp), full2),           # beta3
            pl.BlockSpec((Cp, S), full2),           # SE layer_1 weight
            pl.BlockSpec((1, S), full2),            # SE layer_1 bias
            pl.BlockSpec((S, Cp), full2),           # SE layer_2 weight
            pl.BlockSpec((1, Cp), full2),           # SE layer_2 bias
        ],
        out_specs=pl.BlockSpec((None, H, W, Cp), lambda b: (b, 0, 0, 0)),
        scratch_shapes=[
            pltpu.VMEM((R, Mp), act_dtype),         # flat zero-haloed conv2 input
        ],
        compiler_params=pltpu.CompilerParams(
            dimension_semantics=("parallel",),
            vmem_limit_bytes=vmem_limit,
        ),
    )(x, prm["w1"], prm["g1"], prm["b1"], prm["w2"], prm["g2"], prm["b2"],
      prm["w3"], prm["g3"], prm["b3"], prm["se_w1"], prm["se_b1"],
      prm["se_w2"], prm["se_b2"])

    if Cp != C_in:
        out = out[..., :C_in]
    return out


def bottleneck_forward(x_nchw, p, *, use_bf16=True):
    """PyTorch-layout adapter: (N, C, H, W) in/out.  Prefer the NHWC entry
    point to avoid the two extra full-tensor HBM transposes."""
    x = jnp.transpose(x_nchw, (0, 2, 3, 1))
    out = bottleneck_forward_nhwc(x, p, use_bf16=use_bf16)
    return jnp.transpose(out, (0, 3, 1, 2))


def _ref_forward_nhwc(x, p, compute_dtype=jnp.float32, precision=None):
    """Pure-JAX reference of the PyTorch Bottleneck forward (stride=1,
    groups=1), NHWC, matmul operands in `compute_dtype`, f32 accumulation."""
    cd = compute_dtype
    f32 = jnp.float32
    M = p["w1"].shape[1]

    def inorm(y, g, b):
        mu = jnp.mean(y, axis=(1, 2), keepdims=True)
        var = jnp.mean(jnp.square(y - mu), axis=(1, 2), keepdims=True)
        return (y - mu) / jnp.sqrt(var + _EPS) * g.reshape(1, 1, 1, -1) \
            + b.reshape(1, 1, 1, -1)

    y = jnp.einsum("nhwc,cm->nhwm", x.astype(cd), p["w1"].astype(cd),
                   preferred_element_type=f32, precision=precision)
    y = jax.nn.relu(inorm(y, p["g1"], p["b1"]))
    y = lax.conv_general_dilated(y.astype(cd),
                                 p["w2"].reshape(3, 3, M, M).astype(cd),
                                 (1, 1), "SAME",
                                 dimension_numbers=("NHWC", "HWIO", "NHWC"),
                                 preferred_element_type=f32,
                                 precision=precision)
    y = jax.nn.relu(inorm(y, p["g2"], p["b2"]))
    z = jnp.einsum("nhwm,mc->nhwc", y.astype(cd), p["w3"].astype(cd),
                   preferred_element_type=f32, precision=precision)
    z = inorm(z, p["g3"], p["b3"])
    pooled = jnp.mean(z, axis=(1, 2))
    s = jax.nn.relu(pooled @ p["se_w1"] + p["se_b1"])
    s = s @ p["se_w2"] + p["se_b2"]
    gate = jax.nn.sigmoid(s)[:, None, None, :]
    return jax.nn.relu(z * gate + x.astype(f32))


def init_params(key, channels, mid_channels, ratio=1.0 / 16):
    C, M = channels, mid_channels
    S = max(1, int(C * ratio))
    ks = jax.random.split(key, 13)

    def nrm(k, shape, scale=0.3):
        return (scale * jax.random.normal(k, shape)).astype(jnp.float32)

    return {
        "w1": nrm(ks[0], (C, M)),
        "g1": (1.0 + 0.1 * jax.random.normal(ks[1], (1, M))).astype(jnp.float32),
        "b1": nrm(ks[2], (1, M), 0.1),
        "w2": nrm(ks[3], (9, M, M)),
        "g2": (1.0 + 0.1 * jax.random.normal(ks[4], (1, M))).astype(jnp.float32),
        "b2": nrm(ks[5], (1, M), 0.1),
        "w3": nrm(ks[6], (M, C)),
        "g3": (1.0 + 0.1 * jax.random.normal(ks[7], (1, C))).astype(jnp.float32),
        "b3": nrm(ks[8], (1, C), 0.1),
        "se_w1": nrm(ks[9], (C, S)),
        "se_b1": nrm(ks[10], (1, S), 0.1),
        "se_w2": nrm(ks[11], (S, C)),
        "se_b2": nrm(ks[12], (1, C), 0.1),
    }


if __name__ == "__main__":
    # lane-friendly but small shapes (M=64 exercises the mid-channel padding,
    # W=16 exercises the spacer-free masked conv2 path)
    N, H, W = 2, 16, 16
    C, M = 128, 64

    key = jax.random.PRNGKey(0)
    kx, kp = jax.random.split(key)
    x_f32 = jax.random.normal(kx, (N, H, W, C), jnp.float32)   # NHWC
    params = init_params(kp, channels=C, mid_channels=M)

    # f32 MXU path vs a high-precision f32 reference
    out_f32 = bottleneck_forward_nhwc(x_f32, params, use_bf16=False)
    jax.block_until_ready(out_f32)
    ref_f32 = _ref_forward_nhwc(x_f32, params, compute_dtype=jnp.float32,
                                precision=lax.Precision.HIGHEST)
    d32 = float(jnp.max(jnp.abs(out_f32 - ref_f32)))
    assert out_f32.shape == (N, H, W, C), out_f32.shape
    assert d32 < 5e-2, f"f32 path: max abs diff vs reference = {d32}"

    # bf16 activation path (default): bf16 x in, bf16 out, f32 stats/accumulate
    x_bf16 = x_f32.astype(jnp.bfloat16)
    out_bf16 = bottleneck_forward_nhwc(x_bf16, params, use_bf16=True)
    jax.block_until_ready(out_bf16)
    assert out_bf16.dtype == jnp.bfloat16
    ref_bf16 = _ref_forward_nhwc(x_bf16, params, compute_dtype=jnp.bfloat16)
    d16 = float(jnp.max(jnp.abs(out_bf16.astype(jnp.float32) - ref_bf16)))
    assert d16 < 1.5e-1, f"bf16 path: max abs diff vs bf16 reference = {d16}"

    print("KERNEL_OK")
</pallas_src>

<mosaic_0001>
module attributes {stable_mosaic.version = 11 : i64} {
  func.func @kernel(%arg0: i32, %arg1: memref<1x16x16x128xf32, #tpu.memory_space<vmem>>, %arg2: memref<128x128xf32, #tpu.memory_space<vmem>>, %arg3: memref<1x128xf32, #tpu.memory_space<vmem>>, %arg4: memref<1x128xf32, #tpu.memory_space<vmem>>, %arg5: memref<9x128x128xf32, #tpu.memory_space<vmem>>, %arg6: memref<1x128xf32, #tpu.memory_space<vmem>>, %arg7: memref<1x128xf32, #tpu.memory_space<vmem>>, %arg8: memref<128x128xf32, #tpu.memory_space<vmem>>, %arg9: memref<1x128xf32, #tpu.memory_space<vmem>>, %arg10: memref<1x128xf32, #tpu.memory_space<vmem>>, %arg11: memref<128x8xf32, #tpu.memory_space<vmem>>, %arg12: memref<1x8xf32, #tpu.memory_space<vmem>>, %arg13: memref<8x128xf32, #tpu.memory_space<vmem>>, %arg14: memref<1x128xf32, #tpu.memory_space<vmem>>, %arg15: memref<1x16x16x128xf32, #tpu.memory_space<vmem>>, %arg16: memref<304x128xf32, #tpu.memory_space<vmem>>) attributes {dimension_semantics = [#tpu.dimension_semantics<parallel>], iteration_bounds = array<i64: 2>, scalar_prefetch = 0 : i64, scratch_operands = 1 : i64, tpu.core_type = #tpu.core_type<tc>, window_params = [{transform_indices = @transform_0, window_bounds = array<i64: 1, 16, 16, 128>}, {pipeline_mode = #tpu.pipeline_mode<synchronous>, transform_indices = @transform_1, window_bounds = array<i64: 128, 128>}, {pipeline_mode = #tpu.pipeline_mode<synchronous>, transform_indices = @transform_2, window_bounds = array<i64: 1, 128>}, {pipeline_mode = #tpu.pipeline_mode<synchronous>, transform_indices = @transform_3, window_bounds = array<i64: 1, 128>}, {pipeline_mode = #tpu.pipeline_mode<synchronous>, transform_indices = @transform_4, window_bounds = array<i64: 9, 128, 128>}, {pipeline_mode = #tpu.pipeline_mode<synchronous>, transform_indices = @transform_5, window_bounds = array<i64: 1, 128>}, {pipeline_mode = #tpu.pipeline_mode<synchronous>, transform_indices = @transform_6, window_bounds = array<i64: 1, 128>}, {pipeline_mode = #tpu.pipeline_mode<synchronous>, transform_indices = @transform_7, window_bounds = array<i64: 128, 128>}, {pipeline_mode = #tpu.pipeline_mode<synchronous>, transform_indices = @transform_8, window_bounds = array<i64: 1, 128>}, {pipeline_mode = #tpu.pipeline_mode<synchronous>, transform_indices = @transform_9, window_bounds = array<i64: 1, 128>}, {pipeline_mode = #tpu.pipeline_mode<synchronous>, transform_indices = @transform_10, window_bounds = array<i64: 128, 8>}, {pipeline_mode = #tpu.pipeline_mode<synchronous>, transform_indices = @transform_11, window_bounds = array<i64: 1, 8>}, {pipeline_mode = #tpu.pipeline_mode<synchronous>, transform_indices = @transform_12, window_bounds = array<i64: 8, 128>}, {pipeline_mode = #tpu.pipeline_mode<synchronous>, transform_indices = @transform_13, window_bounds = array<i64: 1, 128>}, {transform_indices = @transform_14, window_bounds = array<i64: 1, 16, 16, 128>}]} {
    %c0 = arith.constant 0 : index
    %c0_0 = arith.constant 0 : index
    %c0_1 = arith.constant 0 : index
    %c0_2 = arith.constant 0 : index
    %0 = vector.load %arg1[%c0, %c0_0, %c0_1, %c0_2] : memref<1x16x16x128xf32, #tpu.memory_space<vmem>>, vector<1x16x16x128xf32>
    %1 = vector.shape_cast %0 : vector<1x16x16x128xf32> to vector<16x16x128xf32>
    %2 = vector.shape_cast %1 : vector<16x16x128xf32> to vector<256x128xf32>
    %c0_3 = arith.constant 0 : index
    %c0_4 = arith.constant 0 : index
    %3 = vector.load %arg2[%c0_3, %c0_4] : memref<128x128xf32, #tpu.memory_space<vmem>>, vector<128x128xf32>
    %cst = arith.constant dense<0.000000e+00> : vector<256x128xf32>
    %4 = tpu.matmul %2, %3, %cst {dimension_numbers = #tpu.dot_dimension_numbers<[1], [0], [0], [1], [0, 0, 1, 1], [], []>} : vector<256x128xf32>, vector<128x128xf32>, vector<256x128xf32> -> vector<256x128xf32>
    %cst_5 = arith.constant dense<0.000000e+00> : vector<128xf32>
    %5 = vector.multi_reduction <add>, %4, %cst_5 [0] : vector<256x128xf32> to vector<128xf32>
    %6 = vector.shape_cast %5 : vector<128xf32> to vector<1x128xf32>
    %cst_6 = arith.constant 2.560000e+02 : f32
    %7 = vector.broadcast %cst_6 : f32 to vector<1x128xf32>
    %8 = arith.divf %6, %7 : vector<1x128xf32>
    %9 = arith.mulf %4, %4 : vector<256x128xf32>
    %cst_7 = arith.constant dense<0.000000e+00> : vector<128xf32>
    %10 = vector.multi_reduction <add>, %9, %cst_7 [0] : vector<256x128xf32> to vector<128xf32>
    %11 = vector.shape_cast %10 : vector<128xf32> to vector<1x128xf32>
    %cst_8 = arith.constant 2.560000e+02 : f32
    %12 = vector.broadcast %cst_8 : f32 to vector<1x128xf32>
    %13 = arith.divf %11, %12 : vector<1x128xf32>
    %14 = arith.mulf %8, %8 : vector<1x128xf32>
    %15 = arith.subf %13, %14 : vector<1x128xf32>
    %cst_9 = arith.constant 0.000000e+00 : f32
    %16 = vector.broadcast %cst_9 : f32 to vector<1x128xf32>
    %17 = arith.maximumf %15, %16 : vector<1x128xf32>
    %c0_10 = arith.constant 0 : index
    %c0_11 = arith.constant 0 : index
    %18 = vector.load %arg3[%c0_10, %c0_11] : memref<1x128xf32, #tpu.memory_space<vmem>>, vector<1x128xf32>
    %cst_12 = arith.constant 9.99999974E-6 : f32
    %19 = vector.broadcast %cst_12 : f32 to vector<1x128xf32>
    %20 = arith.addf %17, %19 : vector<1x128xf32>
    %21 = math.rsqrt %20 : vector<1x128xf32>
    %22 = arith.mulf %18, %21 : vector<1x128xf32>
    %c0_13 = arith.constant 0 : index
    %c0_14 = arith.constant 0 : index
    %23 = vector.load %arg4[%c0_13, %c0_14] : memref<1x128xf32, #tpu.memory_space<vmem>>, vector<1x128xf32>
    %24 = arith.mulf %8, %22 : vector<1x128xf32>
    %25 = arith.subf %23, %24 : vector<1x128xf32>
    %26 = vector.broadcast %22 : vector<1x128xf32> to vector<256x128xf32>
    %27 = arith.mulf %4, %26 : vector<256x128xf32>
    %28 = vector.broadcast %25 : vector<1x128xf32> to vector<256x128xf32>
    %29 = arith.addf %27, %28 : vector<256x128xf32>
    %cst_15 = arith.constant 0.000000e+00 : f32
    %30 = vector.broadcast %cst_15 : f32 to vector<256x128xf32>
    %31 = arith.maximumf %29, %30 : vector<256x128xf32>
    %cst_16 = arith.constant 0.000000e+00 : f32
    %32 = vector.broadcast %cst_16 : f32 to vector<24x128xf32>
    %c0_17 = arith.constant 0 : index
    %c0_18 = arith.constant 0 : index
    %33 = vector.load %arg16[%c0_17, %c0_18] : memref<304x128xf32, #tpu.memory_space<vmem>>, vector<24x128xf32>
    tpu.vector_store %arg16[%c0_17, %c0_18], %32 {strides = array<i32>} : memref<304x128xf32, #tpu.memory_space<vmem>>, vector<24x128xf32>,
    %cst_19 = arith.constant 0.000000e+00 : f32
    %34 = vector.broadcast %cst_19 : f32 to vector<24x128xf32>
    %c280 = arith.constant 280 : index
    %c0_20 = arith.constant 0 : index
    %35 = vector.load %arg16[%c280, %c0_20] : memref<304x128xf32, #tpu.memory_space<vmem>>, vector<24x128xf32>
    tpu.vector_store %arg16[%c280, %c0_20], %34 {strides = array<i32>} : memref<304x128xf32, #tpu.memory_space<vmem>>, vector<24x128xf32>,
    %c24 = arith.constant 24 : index
    %c0_21 = arith.constant 0 : index
    %36 = vector.load %arg16[%c24, %c0_21] : memref<304x128xf32, #tpu.memory_space<vmem>>, vector<256x128xf32>
    tpu.vector_store %arg16[%c24, %c0_21], %31 {strides = array<i32>} : memref<304x128xf32, #tpu.memory_space<vmem>>, vector<256x128xf32>,
    %37 = tpu.iota {dimensions = array<i32: 0>} : vector<256x1xi32>
    %c16_i32 = arith.constant 16 : i32
    %c0_i32 = arith.constant 0 : i32
    %38 = arith.cmpi eq, %c16_i32, %c0_i32 : i32
    %c1_i32 = arith.constant 1 : i32
    %39 = arith.select %38, %c1_i32, %c16_i32 : i32
    %40 = vector.broadcast %39 : i32 to vector<256x1xi32>
    %41 = arith.remsi %37, %40 : vector<256x1xi32>
    %c0_i32_22 = arith.constant 0 : i32
    %42 = vector.broadcast %c0_i32_22 : i32 to vector<256x1xi32>
    %43 = arith.cmpi ne, %41, %42 : vector<256x1xi32>
    %c0_i32_23 = arith.constant 0 : i32
    %44 = vector.broadcast %c0_i32_23 : i32 to vector<256x1xi32>
    %45 = arith.cmpi slt, %41, %44 : vector<256x1xi32>
    %c0_i32_24 = arith.constant 0 : i32
    %46 = arith.cmpi slt, %39, %c0_i32_24 : i32
    %47 = vector.broadcast %46 : i1 to vector<256x1xi1>
    %48 = vector.broadcast %47 : vector<256x1xi1> to vector<256x1xi1>
    %49 = arith.xori %45, %48 : vector<256x1xi1>
    %50 = arith.andi %49, %43 : vector<256x1xi1>
    %51 = vector.broadcast %39 : i32 to vector<256x1xi32>
    %52 = arith.addi %41, %51 : vector<256x1xi32>
    %53 = arith.select %50, %52, %41 : vector<256x1xi1>, vector<256x1xi32>
    %c0_i32_25 = arith.constant 0 : i32
    %54 = vector.broadcast %c0_i32_25 : i32 to vector<256x1xi32>
    %55 = arith.cmpi ne, %53, %54 : vector<256x1xi32>
    %56 = arith.extui %55 : vector<256x1xi1> to vector<256x1xi32>
    %57 = arith.sitofp %56 : vector<256x1xi32> to vector<256x1xf32>
    %c15_i32 = arith.constant 15 : i32
    %58 = vector.broadcast %c15_i32 : i32 to vector<256x1xi32>
    %59 = arith.cmpi ne, %53, %58 : vector<256x1xi32>
    %60 = arith.extui %59 : vector<256x1xi1> to vector<256x1xi32>
    %61 = arith.sitofp %60 : vector<256x1xi32> to vector<256x1xf32>
    %c7 = arith.constant 7 : index
    %c0_26 = arith.constant 0 : index
    %62 = vector.load %arg16[%c7, %c0_26] : memref<304x128xf32, #tpu.memory_space<vmem>>, vector<256x128xf32>
    %63 = vector.broadcast %57 : vector<256x1xf32> to vector<256x128xf32>
    %64 = arith.mulf %62, %63 : vector<256x128xf32>
    %c0_27 = arith.constant 0 : index
    %c0_28 = arith.constant 0 : index
    %c0_29 = arith.constant 0 : index
    %65 = vector.load %arg5[%c0_27, %c0_28, %c0_29] : memref<9x128x128xf32, #tpu.memory_space<vmem>>, vector<1x128x128xf32>
    %66 = vector.shape_cast %65 : vector<1x128x128xf32> to vector<128x128xf32>
    %cst_30 = arith.constant dense<0.000000e+00> : vector<256x128xf32>
    %67 = tpu.matmul %64, %66, %cst_30 {dimension_numbers = #tpu.dot_dimension_numbers<[1], [0], [0], [1], [0, 0, 1, 1], [], []>} : vector<256x128xf32>, vector<128x128xf32>, vector<256x128xf32> -> vector<256x128xf32>
    %c8 = arith.constant 8 : index
    %c0_31 = arith.constant 0 : index
    %68 = vector.load %arg16[%c8, %c0_31] : memref<304x128xf32, #tpu.memory_space<vmem>>, vector<256x128xf32>
    %c1 = arith.constant 1 : index
    %c0_32 = arith.constant 0 : index
    %c0_33 = arith.constant 0 : index
    %69 = vector.load %arg5[%c1, %c0_32, %c0_33] : memref<9x128x128xf32, #tpu.memory_space<vmem>>, vector<1x128x128xf32>
    %70 = vector.shape_cast %69 : vector<1x128x128xf32> to vector<128x128xf32>
    %cst_34 = arith.constant dense<0.000000e+00> : vector<256x128xf32>
    %71 = tpu.matmul %68, %70, %cst_34 {dimension_numbers = #tpu.dot_dimension_numbers<[1], [0], [0], [1], [0, 0, 1, 1], [], []>} : vector<256x128xf32>, vector<128x128xf32>, vector<256x128xf32> -> vector<256x128xf32>
    %72 = arith.addf %67, %71 : vector<256x128xf32>
    %c9 = arith.constant 9 : index
    %c0_35 = arith.constant 0 : index
    %73 = vector.load %arg16[%c9, %c0_35] : memref<304x128xf32, #tpu.memory_space<vmem>>, vector<256x128xf32>
    %74 = vector.broadcast %61 : vector<256x1xf32> to vector<256x128xf32>
    %75 = arith.mulf %73, %74 : vector<256x128xf32>
    %c2 = arith.constant 2 : index
    %c0_36 = arith.constant 0 : index
    %c0_37 = arith.constant 0 : index
    %76 = vector.load %arg5[%c2, %c0_36, %c0_37] : memref<9x128x128xf32, #tpu.memory_space<vmem>>, vector<1x128x128xf32>
    %77 = vector.shape_cast %76 : vector<1x128x128xf32> to vector<128x128xf32>
    %cst_38 = arith.constant dense<0.000000e+00> : vector<256x128xf32>
    %78 = tpu.matmul %75, %77, %cst_38 {dimension_numbers = #tpu.dot_dimension_numbers<[1], [0], [0], [1], [0, 0, 1, 1], [], []>} : vector<256x128xf32>, vector<128x128xf32>, vector<256x128xf32> -> vector<256x128xf32>
    %79 = arith.addf %72, %78 : vector<256x128xf32>
    %c23 = arith.constant 23 : index
    %c0_39 = arith.constant 0 : index
    %80 = vector.load %arg16[%c23, %c0_39] : memref<304x128xf32, #tpu.memory_space<vmem>>, vector<256x128xf32>
    %81 = vector.broadcast %57 : vector<256x1xf32> to vector<256x128xf32>
    %82 = arith.mulf %80, %81 : vector<256x128xf32>
    %c3 = arith.constant 3 : index
    %c0_40 = arith.constant 0 : index
    %c0_41 = arith.constant 0 : index
    %83 = vector.load %arg5[%c3, %c0_40, %c0_41] : memref<9x128x128xf32, #tpu.memory_space<vmem>>, vector<1x128x128xf32>
    %84 = vector.shape_cast %83 : vector<1x128x128xf32> to vector<128x128xf32>
    %cst_42 = arith.constant dense<0.000000e+00> : vector<256x128xf32>
    %85 = tpu.matmul %82, %84, %cst_42 {dimension_numbers = #tpu.dot_dimension_numbers<[1], [0], [0], [1], [0, 0, 1, 1], [], []>} : vector<256x128xf32>, vector<128x128xf32>, vector<256x128xf32> -> vector<256x128xf32>
    %86 = arith.addf %79, %85 : vector<256x128xf32>
    %c24_43 = arith.constant 24 : index
    %c0_44 = arith.constant 0 : index
    %87 = vector.load %arg16[%c24_43, %c0_44] : memref<304x128xf32, #tpu.memory_space<vmem>>, vector<256x128xf32>
    %c4 = arith.constant 4 : index
    %c0_45 = arith.constant 0 : index
    %c0_46 = arith.constant 0 : index
    %88 = vector.load %arg5[%c4, %c0_45, %c0_46] : memref<9x128x128xf32, #tpu.memory_space<vmem>>, vector<1x128x128xf32>
    %89 = vector.shape_cast %88 : vector<1x128x128xf32> to vector<128x128xf32>
    %cst_47 = arith.constant dense<0.000000e+00> : vector<256x128xf32>
    %90 = tpu.matmul %87, %89, %cst_47 {dimension_numbers = #tpu.dot_dimension_numbers<[1], [0], [0], [1], [0, 0, 1, 1], [], []>} : vector<256x128xf32>, vector<128x128xf32>, vector<256x128xf32> -> vector<256x128xf32>
    %91 = arith.addf %86, %90 : vector<256x128xf32>
    %c25 = arith.constant 25 : index
    %c0_48 = arith.constant 0 : index
    %92 = vector.load %arg16[%c25, %c0_48] : memref<304x128xf32, #tpu.memory_space<vmem>>, vector<256x128xf32>
    %93 = vector.broadcast %61 : vector<256x1xf32> to vector<256x128xf32>
    %94 = arith.mulf %92, %93 : vector<256x128xf32>
    %c5 = arith.constant 5 : index
    %c0_49 = arith.constant 0 : index
    %c0_50 = arith.constant 0 : index
    %95 = vector.load %arg5[%c5, %c0_49, %c0_50] : memref<9x128x128xf32, #tpu.memory_space<vmem>>, vector<1x128x128xf32>
    %96 = vector.shape_cast %95 : vector<1x128x128xf32> to vector<128x128xf32>
    %cst_51 = arith.constant dense<0.000000e+00> : vector<256x128xf32>
    %97 = tpu.matmul %94, %96, %cst_51 {dimension_numbers = #tpu.dot_dimension_numbers<[1], [0], [0], [1], [0, 0, 1, 1], [], []>} : vector<256x128xf32>, vector<128x128xf32>, vector<256x128xf32> -> vector<256x128xf32>
    %98 = arith.addf %91, %97 : vector<256x128xf32>
    %c39 = arith.constant 39 : index
    %c0_52 = arith.constant 0 : index
    %99 = vector.load %arg16[%c39, %c0_52] : memref<304x128xf32, #tpu.memory_space<vmem>>, vector<256x128xf32>
    %100 = vector.broadcast %57 : vector<256x1xf32> to vector<256x128xf32>
    %101 = arith.mulf %99, %100 : vector<256x128xf32>
    %c6 = arith.constant 6 : index
    %c0_53 = arith.constant 0 : index
    %c0_54 = arith.constant 0 : index
    %102 = vector.load %arg5[%c6, %c0_53, %c0_54] : memref<9x128x128xf32, #tpu.memory_space<vmem>>, vector<1x128x128xf32>
    %103 = vector.shape_cast %102 : vector<1x128x128xf32> to vector<128x128xf32>
    %cst_55 = arith.constant dense<0.000000e+00> : vector<256x128xf32>
    %104 = tpu.matmul %101, %103, %cst_55 {dimension_numbers = #tpu.dot_dimension_numbers<[1], [0], [0], [1], [0, 0, 1, 1], [], []>} : vector<256x128xf32>, vector<128x128xf32>, vector<256x128xf32> -> vector<256x128xf32>
    %105 = arith.addf %98, %104 : vector<256x128xf32>
    %c40 = arith.constant 40 : index
    %c0_56 = arith.constant 0 : index
    %106 = vector.load %arg16[%c40, %c0_56] : memref<304x128xf32, #tpu.memory_space<vmem>>, vector<256x128xf32>
    %c7_57 = arith.constant 7 : index
    %c0_58 = arith.constant 0 : index
    %c0_59 = arith.constant 0 : index
    %107 = vector.load %arg5[%c7_57, %c0_58, %c0_59] : memref<9x128x128xf32, #tpu.memory_space<vmem>>, vector<1x128x128xf32>
    %108 = vector.shape_cast %107 : vector<1x128x128xf32> to vector<128x128xf32>
    %cst_60 = arith.constant dense<0.000000e+00> : vector<256x128xf32>
    %109 = tpu.matmul %106, %108, %cst_60 {dimension_numbers = #tpu.dot_dimension_numbers<[1], [0], [0], [1], [0, 0, 1, 1], [], []>} : vector<256x128xf32>, vector<128x128xf32>, vector<256x128xf32> -> vector<256x128xf32>
    %110 = arith.addf %105, %109 : vector<256x128xf32>
    %c41 = arith.constant 41 : index
    %c0_61 = arith.constant 0 : index
    %111 = vector.load %arg16[%c41, %c0_61] : memref<304x128xf32, #tpu.memory_space<vmem>>, vector<256x128xf32>
    %112 = vector.broadcast %61 : vector<256x1xf32> to vector<256x128xf32>
    %113 = arith.mulf %111, %112 : vector<256x128xf32>
    %c8_62 = arith.constant 8 : index
    %c0_63 = arith.constant 0 : index
    %c0_64 = arith.constant 0 : index
    %114 = vector.load %arg5[%c8_62, %c0_63, %c0_64] : memref<9x128x128xf32, #tpu.memory_space<vmem>>, vector<1x128x128xf32>
    %115 = vector.shape_cast %114 : vector<1x128x128xf32> to vector<128x128xf32>
    %cst_65 = arith.constant dense<0.000000e+00> : vector<256x128xf32>
    %116 = tpu.matmul %113, %115, %cst_65 {dimension_numbers = #tpu.dot_dimension_numbers<[1], [0], [0], [1], [0, 0, 1, 1], [], []>} : vector<256x128xf32>, vector<128x128xf32>, vector<256x128xf32> -> vector<256x128xf32>
    %117 = arith.addf %110, %116 : vector<256x128xf32>
    %cst_66 = arith.constant dense<0.000000e+00> : vector<128xf32>
    %118 = vector.multi_reduction <add>, %117, %cst_66 [0] : vector<256x128xf32> to vector<128xf32>
    %119 = vector.shape_cast %118 : vector<128xf32> to vector<1x128xf32>
    %cst_67 = arith.constant 2.560000e+02 : f32
    %120 = vector.broadcast %cst_67 : f32 to vector<1x128xf32>
    %121 = arith.divf %119, %120 : vector<1x128xf32>
    %122 = arith.mulf %117, %117 : vector<256x128xf32>
    %cst_68 = arith.constant dense<0.000000e+00> : vector<128xf32>
    %123 = vector.multi_reduction <add>, %122, %cst_68 [0] : vector<256x128xf32> to vector<128xf32>
    %124 = vector.shape_cast %123 : vector<128xf32> to vector<1x128xf32>
    %cst_69 = arith.constant 2.560000e+02 : f32
    %125 = vector.broadcast %cst_69 : f32 to vector<1x128xf32>
    %126 = arith.divf %124, %125 : vector<1x128xf32>
    %127 = arith.mulf %121, %121 : vector<1x128xf32>
    %128 = arith.subf %126, %127 : vector<1x128xf32>
    %cst_70 = arith.constant 0.000000e+00 : f32
    %129 = vector.broadcast %cst_70 : f32 to vector<1x128xf32>
    %130 = arith.maximumf %128, %129 : vector<1x128xf32>
    %c0_71 = arith.constant 0 : index
    %c0_72 = arith.constant 0 : index
    %131 = vector.load %arg6[%c0_71, %c0_72] : memref<1x128xf32, #tpu.memory_space<vmem>>, vector<1x128xf32>
    %cst_73 = arith.constant 9.99999974E-6 : f32
    %132 = vector.broadcast %cst_73 : f32 to vector<1x128xf32>
    %133 = arith.addf %130, %132 : vector<1x128xf32>
    %134 = math.rsqrt %133 : vector<1x128xf32>
    %135 = arith.mulf %131, %134 : vector<1x128xf32>
    %c0_74 = arith.constant 0 : index
    %c0_75 = arith.constant 0 : index
    %136 = vector.load %arg7[%c0_74, %c0_75] : memref<1x128xf32, #tpu.memory_space<vmem>>, vector<1x128xf32>
    %137 = arith.mulf %121, %135 : vector<1x128xf32>
    %138 = arith.subf %136, %137 : vector<1x128xf32>
    %139 = vector.broadcast %135 : vector<1x128xf32> to vector<256x128xf32>
    %140 = arith.mulf %117, %139 : vector<256x128xf32>
    %141 = vector.broadcast %138 : vector<1x128xf32> to vector<256x128xf32>
    %142 = arith.addf %140, %141 : vector<256x128xf32>
    %cst_76 = arith.constant 0.000000e+00 : f32
    %143 = vector.broadcast %cst_76 : f32 to vector<256x128xf32>
    %144 = arith.maximumf %142, %143 : vector<256x128xf32>
    %c0_77 = arith.constant 0 : index
    %c0_78 = arith.constant 0 : index
    %145 = vector.load %arg8[%c0_77, %c0_78] : memref<128x128xf32, #tpu.memory_space<vmem>>, vector<128x128xf32>
    %cst_79 = arith.constant dense<0.000000e+00> : vector<256x128xf32>
    %146 = tpu.matmul %144, %145, %cst_79 {dimension_numbers = #tpu.dot_dimension_numbers<[1], [0], [0], [1], [0, 0, 1, 1], [], []>} : vector<256x128xf32>, vector<128x128xf32>, vector<256x128xf32> -> vector<256x128xf32>
    %cst_80 = arith.constant dense<0.000000e+00> : vector<128xf32>
    %147 = vector.multi_reduction <add>, %146, %cst_80 [0] : vector<256x128xf32> to vector<128xf32>
    %148 = vector.shape_cast %147 : vector<128xf32> to vector<1x128xf32>
    %cst_81 = arith.constant 2.560000e+02 : f32
    %149 = vector.broadcast %cst_81 : f32 to vector<1x128xf32>
    %150 = arith.divf %148, %149 : vector<1x128xf32>
    %151 = arith.mulf %146, %146 : vector<256x128xf32>
    %cst_82 = arith.constant dense<0.000000e+00> : vector<128xf32>
    %152 = vector.multi_reduction <add>, %151, %cst_82 [0] : vector<256x128xf32> to vector<128xf32>
    %153 = vector.shape_cast %152 : vector<128xf32> to vector<1x128xf32>
    %cst_83 = arith.constant 2.560000e+02 : f32
    %154 = vector.broadcast %cst_83 : f32 to vector<1x128xf32>
    %155 = arith.divf %153, %154 : vector<1x128xf32>
    %156 = arith.mulf %150, %150 : vector<1x128xf32>
    %157 = arith.subf %155, %156 : vector<1x128xf32>
    %cst_84 = arith.constant 0.000000e+00 : f32
    %158 = vector.broadcast %cst_84 : f32 to vector<1x128xf32>
    %159 = arith.maximumf %157, %158 : vector<1x128xf32>
    %c0_85 = arith.constant 0 : index
    %c0_86 = arith.constant 0 : index
    %160 = vector.load %arg9[%c0_85, %c0_86] : memref<1x128xf32, #tpu.memory_space<vmem>>, vector<1x128xf32>
    %cst_87 = arith.constant 9.99999974E-6 : f32
    %161 = vector.broadcast %cst_87 : f32 to vector<1x128xf32>
    %162 = arith.addf %159, %161 : vector<1x128xf32>
    %163 = math.rsqrt %162 : vector<1x128xf32>
    %164 = arith.mulf %160, %163 : vector<1x128xf32>
    %c0_88 = arith.constant 0 : index
    %c0_89 = arith.constant 0 : index
    %165 = vector.load %arg10[%c0_88, %c0_89] : memref<1x128xf32, #tpu.memory_space<vmem>>, vector<1x128xf32>
    %166 = arith.mulf %150, %164 : vector<1x128xf32>
    %167 = arith.subf %165, %166 : vector<1x128xf32>
    %168 = vector.broadcast %164 : vector<1x128xf32> to vector<256x128xf32>
    %169 = arith.mulf %146, %168 : vector<256x128xf32>
    %170 = vector.broadcast %167 : vector<1x128xf32> to vector<256x128xf32>
    %171 = arith.addf %169, %170 : vector<256x128xf32>
    %c0_90 = arith.constant 0 : index
    %c0_91 = arith.constant 0 : index
    %172 = vector.load %arg10[%c0_90, %c0_91] : memref<1x128xf32, #tpu.memory_space<vmem>>, vector<1x128xf32>
    %c0_92 = arith.constant 0 : index
    %c0_93 = arith.constant 0 : index
    %173 = vector.load %arg11[%c0_92, %c0_93] : memref<128x8xf32, #tpu.memory_space<vmem>>, vector<128x8xf32>
    %cst_94 = arith.constant dense<0.000000e+00> : vector<1x8xf32>
    %174 = tpu.matmul %172, %173, %cst_94 {dimension_numbers = #tpu.dot_dimension_numbers<[1], [0], [0], [1], [0, 0, 1, 1], [], []>} : vector<1x128xf32>, vector<128x8xf32>, vector<1x8xf32> -> vector<1x8xf32>
    %c0_95 = arith.constant 0 : index
    %c0_96 = arith.constant 0 : index
    %175 = vector.load %arg12[%c0_95, %c0_96] : memref<1x8xf32, #tpu.memory_space<vmem>>, vector<1x8xf32>
    %176 = arith.addf %174, %175 : vector<1x8xf32>
    %cst_97 = arith.constant 0.000000e+00 : f32
    %177 = vector.broadcast %cst_97 : f32 to vector<1x8xf32>
    %178 = arith.maximumf %176, %177 : vector<1x8xf32>
    %c0_98 = arith.constant 0 : index
    %c0_99 = arith.constant 0 : index
    %179 = vector.load %arg13[%c0_98, %c0_99] : memref<8x128xf32, #tpu.memory_space<vmem>>, vector<8x128xf32>
    %cst_100 = arith.constant dense<0.000000e+00> : vector<1x128xf32>
    %180 = tpu.matmul %178, %179, %cst_100 {dimension_numbers = #tpu.dot_dimension_numbers<[1], [0], [0], [1], [0, 0, 1, 1], [], []>} : vector<1x8xf32>, vector<8x128xf32>, vector<1x128xf32> -> vector<1x128xf32>
    %c0_101 = arith.constant 0 : index
    %c0_102 = arith.constant 0 : index
    %181 = vector.load %arg14[%c0_101, %c0_102] : memref<1x128xf32, #tpu.memory_space<vmem>>, vector<1x128xf32>
    %182 = arith.addf %180, %181 : vector<1x128xf32>
    %183 = arith.negf %182 : vector<1x128xf32>
    %184 = math.exp %183 : vector<1x128xf32>
    %cst_103 = arith.constant 1.000000e+00 : f32
    %185 = vector.broadcast %cst_103 : f32 to vector<1x128xf32>
    %186 = arith.addf %185, %184 : vector<1x128xf32>
    %187 = arith.divf %185, %186 : vector<1x128xf32>
    %c0_104 = arith.constant 0 : index
    %c0_105 = arith.constant 0 : index
    %c0_106 = arith.constant 0 : index
    %c0_107 = arith.constant 0 : index
    %188 = vector.load %arg1[%c0_104, %c0_105, %c0_106, %c0_107] : memref<1x16x16x128xf32, #tpu.memory_space<vmem>>, vector<1x16x16x128xf32>
    %189 = vector.shape_cast %188 : vector<1x16x16x128xf32> to vector<16x16x128xf32>
    %190 = vector.shape_cast %189 : vector<16x16x128xf32> to vector<256x128xf32>
    %191 = vector.broadcast %187 : vector<1x128xf32> to vector<256x128xf32>
    %192 = arith.mulf %171, %191 : vector<256x128xf32>
    %193 = arith.addf %192, %190 : vector<256x128xf32>
    %cst_108 = arith.constant 0.000000e+00 : f32
    %194 = vector.broadcast %cst_108 : f32 to vector<256x128xf32>
    %195 = arith.maximumf %193, %194 : vector<256x128xf32>
    %196 = vector.shape_cast %195 : vector<256x128xf32> to vector<16x16x128xf32>
    %c0_109 = arith.constant 0 : index
    %c0_110 = arith.constant 0 : index
    %c0_111 = arith.constant 0 : index
    %c0_112 = arith.constant 0 : index
    %197 = vector.load %arg15[%c0_109, %c0_110, %c0_111, %c0_112] : memref<1x16x16x128xf32, #tpu.memory_space<vmem>>, vector<1x16x16x128xf32>
    %198 = vector.shape_cast %197 : vector<1x16x16x128xf32> to vector<16x16x128xf32>
    %199 = vector.shape_cast %196 : vector<16x16x128xf32> to vector<1x16x16x128xf32>
    tpu.vector_store %arg15[%c0_109, %c0_110, %c0_111, %c0_112], %199 {strides = array<i32>} : memref<1x16x16x128xf32, #tpu.memory_space<vmem>>, vector<1x16x16x128xf32>,
    return
  }
  func.func @transform_0(%arg0: i32) -> (i32, i32, i32, i32) {
    %c0_i32 = arith.constant 0 : i32
    %c0_i32_0 = arith.constant 0 : i32
    %c0_i32_1 = arith.constant 0 : i32
    %c0_i32_2 = arith.constant 0 : i32
    return %arg0, %c0_i32, %c0_i32_0, %c0_i32_1 : i32, i32, i32, i32
  }
  func.func @transform_1(%arg0: i32) -> (i32, i32) {
    %c0_i32 = arith.constant 0 : i32
    %c0_i32_0 = arith.constant 0 : i32
    %c0_i32_1 = arith.constant 0 : i32
    return %c0_i32, %c0_i32_0 : i32, i32
  }
  func.func @transform_2(%arg0: i32) -> (i32, i32) {
    %c0_i32 = arith.constant 0 : i32
    %c0_i32_0 = arith.constant 0 : i32
    %c0_i32_1 = arith.constant 0 : i32
    return %c0_i32, %c0_i32_0 : i32, i32
  }
  func.func @transform_3(%arg0: i32) -> (i32, i32) {
    %c0_i32 = arith.constant 0 : i32
    %c0_i32_0 = arith.constant 0 : i32
    %c0_i32_1 = arith.constant 0 : i32
    return %c0_i32, %c0_i32_0 : i32, i32
  }
  func.func @transform_4(%arg0: i32) -> (i32, i32, i32) {
    %c0_i32 = arith.constant 0 : i32
    %c0_i32_0 = arith.constant 0 : i32
    %c0_i32_1 = arith.constant 0 : i32
    %c0_i32_2 = arith.constant 0 : i32
    return %c0_i32, %c0_i32_0, %c0_i32_1 : i32, i32, i32
  }
  func.func @transform_5(%arg0: i32) -> (i32, i32) {
    %c0_i32 = arith.constant 0 : i32
    %c0_i32_0 = arith.constant 0 : i32
    %c0_i32_1 = arith.constant 0 : i32
    return %c0_i32, %c0_i32_0 : i32, i32
  }
  func.func @transform_6(%arg0: i32) -> (i32, i32) {
    %c0_i32 = arith.constant 0 : i32
    %c0_i32_0 = arith.constant 0 : i32
    %c0_i32_1 = arith.constant 0 : i32
    return %c0_i32, %c0_i32_0 : i32, i32
  }
  func.func @transform_7(%arg0: i32) -> (i32, i32) {
    %c0_i32 = arith.constant 0 : i32
    %c0_i32_0 = arith.constant 0 : i32
    %c0_i32_1 = arith.constant 0 : i32
    return %c0_i32, %c0_i32_0 : i32, i32
  }
  func.func @transform_8(%arg0: i32) -> (i32, i32) {
    %c0_i32 = arith.constant 0 : i32
    %c0_i32_0 = arith.constant 0 : i32
    %c0_i32_1 = arith.constant 0 : i32
    return %c0_i32, %c0_i32_0 : i32, i32
  }
  func.func @transform_9(%arg0: i32) -> (i32, i32) {
    %c0_i32 = arith.constant 0 : i32
    %c0_i32_0 = arith.constant 0 : i32
    %c0_i32_1 = arith.constant 0 : i32
    return %c0_i32, %c0_i32_0 : i32, i32
  }
  func.func @transform_10(%arg0: i32) -> (i32, i32) {
    %c0_i32 = arith.constant 0 : i32
    %c0_i32_0 = arith.constant 0 : i32
    %c0_i32_1 = arith.constant 0 : i32
    return %c0_i32, %c0_i32_0 : i32, i32
  }
  func.func @transform_11(%arg0: i32) -> (i32, i32) {
    %c0_i32 = arith.constant 0 : i32
    %c0_i32_0 = arith.constant 0 : i32
    %c0_i32_1 = arith.constant 0 : i32
    return %c0_i32, %c0_i32_0 : i32, i32
  }
  func.func @transform_12(%arg0: i32) -> (i32, i32) {
    %c0_i32 = arith.constant 0 : i32
    %c0_i32_0 = arith.constant 0 : i32
    %c0_i32_1 = arith.constant 0 : i32
    return %c0_i32, %c0_i32_0 : i32, i32
  }
  func.func @transform_13(%arg0: i32) -> (i32, i32) {
    %c0_i32 = arith.constant 0 : i32
    %c0_i32_0 = arith.constant 0 : i32
    %c0_i32_1 = arith.constant 0 : i32
    return %c0_i32, %c0_i32_0 : i32, i32
  }
  func.func @transform_14(%arg0: i32) -> (i32, i32, i32, i32) {
    %c0_i32 = arith.constant 0 : i32
    %c0_i32_0 = arith.constant 0 : i32
    %c0_i32_1 = arith.constant 0 : i32
    %c0_i32_2 = arith.constant 0 : i32
    return %arg0, %c0_i32, %c0_i32_0, %c0_i32_1 : i32, i32, i32, i32
  }
}

</mosaic_0001>

<bundles_post_ra>
// kernel: tpu_custom_call.1
= control target key start
LH: loop header
LB: loop body
LE: loop exit
PB: predicated region body
PF: predicated region fallthrough
CT: control target
= control target key end

     0   :  { %s7977_s0 = inlined_call_operand.hbm [shape: f32[2,16,16,128], index: 0, kind: input, shape index: {}]   ;;  %s7978_s1 = inlined_call_operand.vmem [shape: f32[128,128], index: 1, kind: input, shape index: {}]   ;;  %s7979_s2 = inlined_call_operand.vmem [shape: f32[1,128], index: 2, kind: input, shape index: {}]   ;;  %s7980_s3 = inlined_call_operand.hbm [shape: f32[1,128], index: 3, kind: input, shape index: {}]   ;;  %s7981_s4 = inlined_call_operand.hbm [shape: f32[9,128,128], index: 4, kind: input, shape index: {}]   ;;  %s7982_s5 = inlined_call_operand.hbm [shape: f32[1,128], index: 5, kind: input, shape index: {}]   ;;  %s7983_s6 = inlined_call_operand.hbm [shape: f32[1,128], index: 6, kind: input, shape index: {}]   ;;  %s7984_s7 = inlined_call_operand.hbm [shape: f32[128,128], index: 7, kind: input, shape index: {}]   ;;  %s7985_s8 = inlined_call_operand.hbm [shape: f32[1,128], index: 8, kind: input, shape index: {}]   ;;  %s7986_s9 = inlined_call_operand.hbm [shape: f32[1,128], index: 9, kind: input, shape index: {}]   ;;  %s7987_s10 = inlined_call_operand.vmem [shape: f32[128,8], index: 10, kind: input, shape index: {}]   ;;  %s7988_s11 = inlined_call_operand.hbm [shape: f32[1,8], index: 11, kind: input, shape index: {}]   ;;  %s7989_s12 = inlined_call_operand.vmem [shape: f32[8,128], index: 12, kind: input, shape index: {}]   ;;  %s7990_s13 = inlined_call_operand.vmem [shape: f32[1,128], index: 13, kind: input, shape index: {}]   ;;  %s7991_s14 = inlined_call_operand.hbm [shape: f32[2,16,16,128], index: 14, kind: output, shape index: {}]  }
   0x1   :  { %8063 = sst [smem:[#allocation90_spill]] %s7980_s3 }
   0x2   :  { %8064 = sst [smem:[#allocation91_spill]] %s7981_s4 }
   0x3   :  { %8065 = sst [smem:[#allocation92_spill]] %s7982_s5 }
   0x4   :  { %8066 = sst [smem:[#allocation93_spill]] %s7983_s6 }
   0x5   :  { %8067 = sst [smem:[#allocation94_spill]] %s7984_s7 }
   0x6   :  { %8068 = sst [smem:[#allocation95_spill]] %s7985_s8 }
   0x7   :  { %8069 = sst [smem:[#allocation96_spill]] %s7989_s12 }
   0x8   :  { %8070 = sst [smem:[#allocation97_spill]] %s7990_s13 }
   0x9   :  { %8071 = sst [smem:[#allocation98_spill]] %s7991_s14 }
   0xa   :  { %19 = vsyncpa [#allocation4], 0 }
   0xb   :  { %21 = vsyncpa [#allocation4 + $0x1], 0 }
   0xc   :  { %22 = vsyncpa [#allocation7], 0 }
   0xd   :  { %23 = vsyncpa [#allocation10], 0 }
   0xe   :  { %24 = vsyncpa [#allocation13], 0 }
   0xf   :  { %25 = vsyncpa [#allocation16], 0 }
  0x10   :  { %26 = vsyncpa [#allocation5], 0 }
  0x11   :  { %28 = vsyncpa [#allocation5 + $0x1], 0  ;;  %s5201_s29 = smov 0   ;;  %s5203_s30 = smov 0  }
  0x12   :  { %s5205_s15 = smov 0   ;;  %s5207_s16 = smov 0  }
  0x13 LB: > { %s8072_s3 = sld [smem:[#allocation90_spill]]  ;;  %s5225_s20 = sadd.s32 4294967295, %s5110_s16   ;;  %s5110_s16 = sphi %s5207_s16, %s8363_s16   ;;  %s5106_s15 = sphi %s5205_s15, %s8362_s15   ;;  %s5102_s30 = sphi %s5203_s30, %s8361_s30   ;;  %s5098_s29 = sphi %s5201_s29, %s8360_s29  }
  0x14   : > { %p4490_p0 = scmp.ge.s32.totalorder %s5110_s16, 1  ;;  %p55_p1 = scmp.eq.s32.totalorder %s5225_s20, 0 }
  0x15   : > { %p364_p2 = scmp.lt.s32.totalorder %s5110_s16, 3  ;;  %s5112_s22 = smov [#allocation6]  }
  0x16   : > { %s384_s23 = sshll.u32 %s5112_s22, 4  ;;  %s8074_s5 = sld [smem:[#allocation92_spill]]  ;;  %s385_s23 = int_to_ptr.vmem [resolvable:$true] %s384_s23 }
  0x17   : > { %p5230_p3 = pnand %p4490_p0, %p364_p2  ;;  %s5113_s28 = smov [#allocation9]  }
  0x18   : > { %s410_s17 = sshll.u32 %s5113_s28, 4  ;;  %s8076_s7 = sld [smem:[#allocation94_spill]]  ;;  %s411_s17 = int_to_ptr.vmem [resolvable:$true] %s410_s17 }
  0x19   : > { %s382_s19 = sshll.u32 %s8072_s3, 4  ;;  %p4639_p5 = pneg %p5230_p3  ;;  %s383_s19 = int_to_ptr.hbm [resolvable:$true] %s382_s19 }
  0x1a   : > { %s5114_s25 = smov [#allocation12]   ;;  %s458_s13 = sshll.u32 %s7986_s9, 4  ;;  %s459_s13 = int_to_ptr.hbm [resolvable:$true] %s458_s13 }
  0x1b   : > { %p5242_p6 = pnand %p4639_p5, %p55_p1  ;;  %s433_s3 = sshll.u32 %s5114_s25, 4  ;;  %s434_s3 = int_to_ptr.vmem [resolvable:$true] %s433_s3 }
  0x1c   : > { %s408_s26 = sshll.u32 %s8074_s5, 4  ;;  %s7993_s28 = smov 128   ;;  %s409_s26 = int_to_ptr.hbm [resolvable:$true] %s408_s26 }
  0x1d   : > { %4642 = dma.hbm_to_vmem [thread:$0]  (!%p5242_p6), %s383_s19, 16, %s385_s23, [#allocation7]  }
  0x1e   : > { %4648 = dma.hbm_to_vmem [thread:$0]  (!%p5242_p6), %s409_s26, 16, %s411_s17, [#allocation10]  }
  0x1f   : > { %s431_s24 = sshll.u32 %s8076_s7, 4  ;;  %s7994_s12 = smov 8   ;;  %s432_s24 = int_to_ptr.hbm [resolvable:$true] %s431_s24 }
  0x20   : > { %4654 = dma.hbm_to_vmem [thread:$0]  (!%p5242_p6), %s432_s24, 2048, %s434_s3, [#allocation13], %s7993_s28, %s7993_s28, %s7994_s12  }
  0x21   : > { %s5117_s19 = smov [#allocation15]   ;;  %s8077_s4 = sld [smem:[#allocation91_spill]] }
  0x22   : > { %s460_s23 = sshll.u32 %s5117_s19, 4  ;;  %s8078_s6 = sld [smem:[#allocation93_spill]]  ;;  %s461_s23 = int_to_ptr.vmem [resolvable:$true] %s460_s23 }
  0x23   : > { %4660 = dma.hbm_to_vmem [thread:$0]  (!%p5242_p6), %s459_s13, 16, %s461_s23, [#allocation16]  }
  0x24   : > { %s5118_s25 = smov [#allocation8]   ;;  %s5119_s3 = smov [#allocation11]  }
  0x25   : > { %s395_s7 = sshll.u32 %s5118_s25, 4  ;;  %s422_s24 = sshll.u32 %s5119_s3, 4  ;;  %s396_s7 = int_to_ptr.vmem [resolvable:$true] %s395_s7  ;;  %s423_s24 = int_to_ptr.vmem [resolvable:$true] %s422_s24 }
  0x26   : > { %s8079_s8 = sld [smem:[#allocation95_spill]]  ;;  %s5121_s14 = smov [#allocation17]  }
  0x27   : > { %s393_s18 = sshll.u32 %s8077_s4, 4  ;;  %s4489_s25 = sadd.s32 4294967294, %s5110_s16   ;;  %s394_s18 = int_to_ptr.hbm [resolvable:$true] %s393_s18 }
  0x28   : > { %s420_s22 = sshll.u32 %s8078_s6, 4  ;;  %s5288_s3 = sadd.s32 1, %s5110_s16   ;;  %s421_s22 = int_to_ptr.hbm [resolvable:$true] %s420_s22 }
  0x29   : > { %4645 = dma.hbm_to_vmem [thread:$0]  (!%p5242_p6), %s394_s18, 18432, %s396_s7, [#allocation7], %s7993_s28, %s7993_s28, %s7994_s12  }
  0x2a   : > { %4651 = dma.hbm_to_vmem [thread:$0]  (!%p5242_p6), %s421_s22, 16, %s423_s24, [#allocation10]  }
  0x2b   : > { %s473_s7 = sshll.u32 %s7988_s11, 4  ;;  %s5120_s18 = smov [#allocation14]   ;;  %s474_s7 = int_to_ptr.hbm [resolvable:$true] %s473_s7 }
  0x2c   : > { %s446_s23 = sshll.u32 %s8079_s8, 4  ;;  %s448_s5 = sshll.u32 %s5120_s18, 4  ;;  %s447_s23 = int_to_ptr.hbm [resolvable:$true] %s446_s23  ;;  %s449_s5 = int_to_ptr.vmem [resolvable:$true] %s448_s5 }
  0x2d   : > { %4657 = dma.hbm_to_vmem [thread:$0]  (!%p5242_p6), %s447_s23, 16, %s449_s5, [#allocation13]  }
  0x2e   : > { %s475_s22 = sshll.u32 %s5121_s14, 4  ;;  %s38_s24 = ssub.s32 %s5110_s16, %s5288_s3  ;;  %s476_s22 = int_to_ptr.vmem [resolvable:$true] %s475_s22 }
  0x2f   : > { %4663 = dma.hbm_to_vmem [thread:$0]  (!%p5242_p6), %s474_s7, 16, %s476_s22, [#allocation16]  }
  0x30   : > { %s41_s19 = sadd.s32 1, %s5106_s15  ;;  %p39_p7 = scmp.eq.s32.totalorder %s38_s24, 0 }
  0x31   : > { %p48_p8 = scmp.ne.s32.totalorder %s5106_s15, %s5102_s30  ;;  %p49_p9 = scmp.eq.s32.totalorder %s5110_s16, 0 }
  0x32   : > { %p54_p10 = scmp.ne.s32.totalorder %s5102_s30, %s5098_s29  ;;  %p351_p13 = scmp.eq.s32.totalorder %s5225_s20, 1 }
  0x33   : > { %s5299_s13 = scalar_select %p39_p7, %s5106_s15, %s41_s19  }
  0x34   : > { %p5301_p11 = por %p49_p9, %p48_p8  ;;  %p5307_p12 = por %p55_p1, %p54_p10 }
  0x35   : > { %p357_p0 = scmp.eq.s32.totalorder %s4489_s25, 1  ;;  %p4680_p2 = scmp.lt.s32.totalorder %s5110_s16, 2 }
  0x36   : > { %s492_s26 = sand.u32 1, %s5106_s15   ;;  %p5314_p5 = por %p351_p13, %p48_p8 }
  0x37   : > { %p5318_p6 = por %p357_p0, %p54_p10  ;;  %s4500_s18 = sshll.u32 %s492_s26, 8 }
  0x38   : > { %s4553_s5 = sshll.u32 %s5110_s16, 8  ;;  %s496_s19 = scalar_lea.vmem [#allocation3], %s4500_s18 }
  0x39   : > { %s501_s24 = scalar_lea.hbm %s7977_s0, %s4553_s5  ;;  %s504_s28 = sshll.u32 %s496_s19, 4  ;;  %s505_s28 = int_to_ptr.vmem [resolvable:$true] %s504_s28 }
  0x3a   : > { %s502_s12 = sshll.u32 %s501_s24, 4  ;;  %p5328_p7 = pnand %p4680_p2, %p5301_p11  ;;  %s503_s12 = int_to_ptr.hbm [resolvable:$true] %s502_s12 }
  0x3b   : > { %s493_s4 = scalar_lea.sflag [#allocation4], %s492_s26  ;;  %s4998_s6 = sshra.s32 %s503_s12, 4  ;;  %s4999_s6 = int_to_ptr.hbm [resolvable:$true] %s4998_s6 }
  0x3c   : > { %s5000_s8 = scalar_lea.hbm %s4999_s6, 256  ;;  %p5002_p9 = pneg %p5328_p7 }
  0x3d   : > { %p5001_p8 = scmp.ne.s32.totalorder %s4999_s6, %s5000_s8  ;;  %s5005_s14 = scalar_lea.hbm %s7977_s0, 512 }
  0x3e   : > { %p5006_p11 = scmp.lt.s32.totalorder %s4999_s6, %s7977_s0  ;;  %p5007_p0 = scmp.lt.s32.totalorder %s5005_s14, %s5000_s8 }
  0x3f   : > { %p5003_p10 = pnand %p5002_p9, %p5001_p8 }
  0x40   : > { %p5008_p2 = por %p5007_p0, %p5006_p11 }
  0x41   : > { %p5004_p13 = pneg %p5003_p10 }
  0x43   : > { %p5009_p4 = pnand %p5008_p2, %p5004_p13 }
  0x45   : > { %5012 = shalt.err (!%p5009_p4)
}
  0x46   : > { %s8085_s26 = smov 8   ;;  %s8086_s24 = smov 128  }
  0x47   : > { %4667 = dma.hbm_to_vmem [thread:$0]  (!%p5328_p7), %s503_s12, 4096, %s505_s28, %s493_s4, %s8086_s24, %s8086_s24, %s8085_s26  }
  0x48   : > { %516 = sbr.rel (%p5230_p3) target bundleno = 1863 (0x747), region = 76 }
  0x4d   : > { %s5348_s19 = sand.u32 1, %s5102_s30  }
  0x4e   : > { %s4504_s6 = sshll.u32 %s5348_s19, 8  ;;  %s519_s8 = scalar_lea.sflag [#allocation4], %s5348_s19 }
  0x4f   : > { %s5354_s18 = scalar_lea.vmem [#allocation3], %s4504_s6 }
  0x50   : > { %5073 = dma.done.wait (%p5307_p12), %s519_s8, 4096  }
  0x51   : > { %5075 = vsyncadd (%p5307_p12), %s519_s8, 4294963200 }
  0x52   : > { %5077 = dma.done.wait (%p55_p1), [#allocation7], 18448  }
  0x53   : > { %5079 = vsyncadd (%p55_p1), [#allocation7], 4294948848 }
  0x54   : > { %5081 = dma.done.wait (%p55_p1), [#allocation10], 32  }
  0x55   : > { %5083 = vsyncadd (%p55_p1), [#allocation10], 4294967264 }
  0x56   : > { %5085 = dma.done.wait (%p55_p1), [#allocation13], 2064  }
  0x57   : > { %5087 = vsyncadd (%p55_p1), [#allocation13], 4294965232 }
  0x58   : > { %5089 = dma.done.wait (%p55_p1), [#allocation16], 32  }
  0x59   : > { %5091 = vsyncadd (%p55_p1), [#allocation16], 4294967264  ;;  %v655_v0 = vld [vmem:[%s7978_s1 + $0x78] sm:$0xff]  ;;  %v654_v1 = vld [vmem:[%s7978_s1 + $0x70] sm:$0xff]  ;;  %s8354_s28 = sld [smem:[#allocation96_spill]]  ;;  %s7840_s14 = scalar_lea.vmem [#allocation18], %s4504_s6 }
  0x5a   : > { %656 = vmatpush.msra.mxu0 %v655_v0  ;;  %4555 = vmatpush.msra.mxu3 %v655_v0  ;;  %v653_v2 = vld [vmem:[%s7978_s1 + $0x68] sm:$0xff]  ;;  %v652_v3 = vld [vmem:[%s7978_s1 + $0x60] sm:$0xff]  ;;  %v651_v4 = vld [vmem:[%s7978_s1 + $0x58] sm:$0xff]  ;;  %s8355_s5 = sld [smem:[#allocation97_spill]]  ;;  %s4554_s6 = sshll.u32 %s5225_s20, 8 }
  0x5b   : > { %v650_v5 = vld [vmem:[%s7978_s1 + $0x50] sm:$0xff]  ;;  %v649_v6 = vld [vmem:[%s7978_s1 + $0x48] sm:$0xff]  ;;  %v648_v7 = vld [vmem:[%s7978_s1 + $0x40] sm:$0xff]  ;;  %s8358_s26 = sld [smem:[#allocation98_spill]]  ;;  %s4325_s8 = scalar_lea.sflag [#allocation5], %s5348_s19 }
  0x5c   : > { %657 = vmatpush.msra.mxu0 %v654_v1  ;;  %4556 = vmatpush.msra.mxu3 %v654_v1  ;;  %v647_v8 = vld [vmem:[%s7978_s1 + $0x38] sm:$0xff]  ;;  %v646_v9 = vld [vmem:[%s7978_s1 + $0x30] sm:$0xff]  ;;  %v645_v10 = vld [vmem:[%s7978_s1 + $0x28] sm:$0xff] }
  0x5d   : > { %v644_v11 = vld [vmem:[%s7978_s1 + $0x20] sm:$0xff]  ;;  %v643_v12 = vld [vmem:[%s7978_s1 + $0x18] sm:$0xff]  ;;  %v642_v13 = vld [vmem:[%s7978_s1 + $0x10] sm:$0xff] }
  0x5e   : > { %658 = vmatpush.msra.mxu0 %v653_v2  ;;  %4557 = vmatpush.msra.mxu3 %v653_v2  ;;  %v641_v14 = vld [vmem:[%s7978_s1 + $0x8] sm:$0xff]  ;;  %v640_v15 = vld [vmem:[%s7978_s1] sm:$0xff]  ;;  %v608_v16 = vld [vmem:[%s5354_s18] sm:$0xff] }
  0x5f   : > { %v609_v17 = vld [vmem:[%s5354_s18 + $0x8] sm:$0xff]  ;;  %v610_v18 = vld [vmem:[%s5354_s18 + $0x10] sm:$0xff]  ;;  %v611_v19 = vld [vmem:[%s5354_s18 + $0x18] sm:$0xff] }
  0x60   : > { %659 = vmatpush.msra.mxu0 %v652_v3  ;;  %4558 = vmatpush.msra.mxu3 %v652_v3  ;;  %v612_v20 = vld [vmem:[%s5354_s18 + $0x20] sm:$0xff]  ;;  %v613_v21 = vld [vmem:[%s5354_s18 + $0x28] sm:$0xff]  ;;  %v614_v22 = vld [vmem:[%s5354_s18 + $0x30] sm:$0xff] }
  0x61   : > { %v615_v23 = vld [vmem:[%s5354_s18 + $0x38] sm:$0xff]  ;;  %v616_v24 = vld [vmem:[%s5354_s18 + $0x40] sm:$0xff]  ;;  %v617_v25 = vld [vmem:[%s5354_s18 + $0x48] sm:$0xff]  ;;  %s4336_s20 = scalar_lea.hbm %s8358_s26, %s4554_s6  ;;  %s5048_s27 = scalar_lea.hbm %s8358_s26, 512 }
  0x62   : > { %660 = vmatpush.msra.mxu0 %v651_v4  ;;  %4559 = vmatpush.msra.mxu3 %v651_v4  ;;  %v618_v26 = vld [vmem:[%s5354_s18 + $0x50] sm:$0xff]  ;;  %v619_v27 = vld [vmem:[%s5354_s18 + $0x58] sm:$0xff]  ;;  %v620_v28 = vld [vmem:[%s5354_s18 + $0x60] sm:$0xff]  ;;  %s4339_s24 = sshll.u32 %s4336_s20, 4  ;;  %s4340_s24 = int_to_ptr.hbm [resolvable:$true] %s4339_s24 }
  0x63   : > { %v621_v29 = vld [vmem:[%s5354_s18 + $0x68] sm:$0xff]  ;;  %v622_v30 = vld [vmem:[%s5354_s18 + $0x70] sm:$0xff]  ;;  %v623_v31 = vld [vmem:[%s5354_s18 + $0x78] sm:$0xff]  ;;  %s5042_s4 = sshra.s32 %s4340_s24, 4  ;;  %s5043_s4 = int_to_ptr.hbm [resolvable:$true] %s5042_s4 }
  0x64   : > { %661 = vmatpush.msra.mxu0 %v650_v5  ;;  %4560 = vmatpush.msra.mxu3 %v650_v5  ;;  %v633_v32 = vld [vmem:[%s5354_s18 + $0xc8] sm:$0xff]  ;;  %v624_v34 = vld [vmem:[%s5354_s18 + $0x80] sm:$0xff]  ;;  %v634_v35 = vld [vmem:[%s5354_s18 + $0xd0] sm:$0xff]  ;;  %s5044_s12 = scalar_lea.hbm %s5043_s4, 256  ;;  %p5049_p12 = scmp.lt.s32.totalorder %s5043_s4, %s8358_s26 }
  0x65   : > { %v625_v37 = vld [vmem:[%s5354_s18 + $0x88] sm:$0xff]  ;;  %v635_v38 = vld [vmem:[%s5354_s18 + $0xd8] sm:$0xff]  ;;  %v626_v40 = vld [vmem:[%s5354_s18 + $0x90] sm:$0xff]  ;;  %p5045_p1 = scmp.ne.s32.totalorder %s5043_s4, %s5044_s12  ;;  %p5050_p7 = scmp.lt.s32.totalorder %s5048_s27, %s5044_s12 }
  0x66   : > { %662 = vmatpush.msra.mxu0 %v649_v6  ;;  %4561 = vmatpush.msra.mxu3 %v649_v6  ;;  %v636_v41 = vld [vmem:[%s5354_s18 + $0xe0] sm:$0xff]  ;;  %v627_v43 = vld [vmem:[%s5354_s18 + $0x98] sm:$0xff]  ;;  %v637_v44 = vld [vmem:[%s5354_s18 + $0xe8] sm:$0xff] }
  0x67   : > { %v628_v46 = vld [vmem:[%s5354_s18 + $0xa0] sm:$0xff]  ;;  %v638_v47 = vld [vmem:[%s5354_s18 + $0xf0] sm:$0xff]  ;;  %v629_v49 = vld [vmem:[%s5354_s18 + $0xa8] sm:$0xff]  ;;  %p5046_p3 = pnand %p5045_p1, %p5314_p5  ;;  %p5051_p8 = por %p5050_p7, %p5049_p12 }
  0x68   : > { %663 = vmatpush.msra.mxu0 %v648_v7  ;;  %4562 = vmatpush.msra.mxu3 %v648_v7  ;;  %v639_v50 = vld [vmem:[%s5354_s18 + $0xf8] sm:$0xff]  ;;  %v630_v52 = vld [vmem:[%s5354_s18 + $0xb0] sm:$0xff]  ;;  %v632_v56 = vld [vmem:[%s5354_s18 + $0xc0] sm:$0xff] }
  0x69   : > { %v631_v54 = vld [vmem:[%s5354_s18 + $0xb8] sm:$0xff]  ;;  %p5047_p4 = pneg %p5046_p3 }
  0x6a   : > { %664 = vmatpush.msra.mxu0 %v647_v8  ;;  %4563 = vmatpush.msra.mxu3 %v647_v8 }
  0x6b   : > { %p5052_p9 = pnand %p5051_p8, %p5047_p4 }
  0x6c   : > { %665 = vmatpush.msra.mxu0 %v646_v9  ;;  %4564 = vmatpush.msra.mxu3 %v646_v9 }
  0x6e   : > { %666 = vmatpush.msra.mxu0 %v645_v10  ;;  %4565 = vmatpush.msra.mxu3 %v645_v10 }
  0x70   : > { %667 = vmatpush.msra.mxu0 %v644_v11  ;;  %4566 = vmatpush.msra.mxu3 %v644_v11 }
  0x72   : > { %668 = vmatpush.msra.mxu0 %v643_v12  ;;  %4567 = vmatpush.msra.mxu3 %v643_v12 }
  0x74   : > { %669 = vmatpush.msra.mxu0 %v642_v13  ;;  %4568 = vmatpush.msra.mxu3 %v642_v13 }
  0x76   : > { %670 = vmatpush.msra.mxu0 %v641_v14  ;;  %4569 = vmatpush.msra.mxu3 %v641_v14 }
  0x78   : > { %671 = vmatpush.msra.mxu0 %v640_v15  ;;  %4570 = vmatpush.msra.mxu3 %v640_v15 }
  0x79   : > { %672 = vmatmul.f32.vlgmr.msra.gmra.mxu0 %v608_v16  ;;  %747 = vmatmul.f32.vlgmr.msra.gmra.mxu3 %v633_v32 }
  0x81   : > { %675 = vmatmul.f32.gmra.mxu0 %v609_v17  ;;  %750 = vmatmul.f32.gmra.mxu3 %v634_v35 }
  0x89   : > { %678 = vmatmul.f32.gmra.mxu0 %v610_v18  ;;  %753 = vmatmul.f32.gmra.mxu3 %v635_v38 }
  0x91   : > { %681 = vmatmul.f32.gmra.mxu0 %v611_v19  ;;  %756 = vmatmul.f32.gmra.mxu3 %v636_v41 }
  0x99   : > { %684 = vmatmul.f32.gmra.mxu0 %v612_v20  ;;  %759 = vmatmul.f32.gmra.mxu3 %v637_v44 }
  0xa1   : > { %687 = vmatmul.f32.gmra.mxu0 %v613_v21  ;;  %762 = vmatmul.f32.gmra.mxu3 %v638_v47 }
  0xa9   : > { %690 = vmatmul.f32.gmra.mxu0 %v614_v22  ;;  %765 = vmatmul.f32.gmra.mxu3 %v639_v50 }
  0xb1   : > { %693 = vmatmul.f32.gmra.mxu0 %v615_v23 }
  0xb9   : > { %696 = vmatmul.f32.gmra.mxu0 %v616_v24 }
  0xc1   : > { %699 = vmatmul.f32.gmra.mxu0 %v617_v25 }
  0xc9   : > { %702 = vmatmul.f32.gmra.mxu0 %v618_v26 }
  0xd1   : > { %705 = vmatmul.f32.gmra.mxu0 %v619_v27 }
  0xd9   : > { %708 = vmatmul.f32.gmra.mxu0 %v620_v28 }
  0xe1   : > { %711 = vmatmul.f32.gmra.mxu0 %v621_v29 }
  0xe9   : > { %714 = vmatmul.f32.gmra.mxu0 %v622_v30 }
  0xf1   : > { %717 = vmatmul.f32.gmra.mxu0 %v623_v31 }
  0xf6   : > { %v5441_v33 = vpop.f32.mrf.mxu0 }
  0xf7   : > { %v814_v5 = vmul.f32 %v5441_v33, %v5441_v33 }
  0xf9   : > { %720 = vmatmul.f32.gmra.mxu0 %v624_v34 }
  0xfc   : > { %v5492_v2 = vpop.f32.mrf.mxu3 }
  0xfe   : > { %v5445_v36 = vpop.f32.mrf.mxu0 }
  0xff   : > { %v815_v4 = vmul.f32 %v5445_v36, %v5445_v36  ;;  %v769_v6 = vadd.f32 %v5445_v36, %v5441_v33 }
 0x101   : > { %723 = vmatmul.f32.gmra.mxu0 %v625_v37  ;;  %v846_v8 = vadd.f32 %v815_v4, %v814_v5 }
 0x104   : > { %v5512_v15 = vpop.f32.mrf.mxu3 }
 0x106   : > { %v5449_v39 = vpop.f32.mrf.mxu0 }
 0x107   : > { %v816_v7 = vmul.f32 %v5449_v39, %v5449_v39  ;;  %v770_v9 = vadd.f32 %v769_v6, %v5449_v39 }
 0x109   : > { %726 = vmatmul.f32.gmra.mxu0 %v626_v40  ;;  %v847_v11 = vadd.f32 %v846_v8, %v816_v7 }
 0x10c   : > { %v5531_v32 = vpop.f32.mrf.mxu3 }
 0x10e   : > { %v5453_v42 = vpop.f32.mrf.mxu0 }
 0x10f   : > { %v817_v10 = vmul.f32 %v5453_v42, %v5453_v42  ;;  %v771_v12 = vadd.f32 %v770_v9, %v5453_v42 }
 0x111   : > { %729 = vmatmul.f32.gmra.mxu0 %v627_v43  ;;  %v848_v16 = vadd.f32 %v847_v11, %v817_v10 }
 0x114   : > { %v5550_v5 = vpop.f32.mrf.mxu3 }
 0x116   : > { %v5457_v45 = vpop.f32.mrf.mxu0 }
 0x117   : > { %v818_v13 = vmul.f32 %v5457_v45, %v5457_v45  ;;  %v772_v17 = vadd.f32 %v771_v12, %v5457_v45 }
 0x119   : > { %732 = vmatmul.f32.gmra.mxu0 %v628_v46  ;;  %v849_v19 = vadd.f32 %v848_v16, %v818_v13 }
 0x11e   : > { %v5461_v48 = vpop.f32.mrf.mxu0 }
 0x11f   : > { %v819_v18 = vmul.f32 %v5461_v48, %v5461_v48  ;;  %v773_v20 = vadd.f32 %v772_v17, %v5461_v48 }
 0x121   : > { %735 = vmatmul.f32.gmra.mxu0 %v629_v49  ;;  %v850_v22 = vadd.f32 %v849_v19, %v819_v18 }
 0x126   : > { %v5465_v51 = vpop.f32.mrf.mxu0 }
 0x127   : > { %v820_v21 = vmul.f32 %v5465_v51, %v5465_v51  ;;  %v774_v23 = vadd.f32 %v773_v20, %v5465_v51 }
 0x129   : > { %738 = vmatmul.f32.gmra.mxu0 %v630_v52  ;;  %v851_v25 = vadd.f32 %v850_v22, %v820_v21 }
 0x12e   : > { %v5468_v53 = vpop.f32.mrf.mxu0 }
 0x12f   : > { %v821_v24 = vmul.f32 %v5468_v53, %v5468_v53  ;;  %v775_v26 = vadd.f32 %v774_v23, %v5468_v53 }
 0x131   : > { %741 = vmatmul.f32.gmra.mxu0 %v631_v54  ;;  %v852_v29 = vadd.f32 %v851_v25, %v821_v24  ;;  %v5569_v24 = vpop.f32.mrf.mxu3 }
 0x136   : > { %v5471_v55 = vpop.f32.mrf.mxu0 }
 0x137   : > { %v822_v27 = vmul.f32 %v5471_v55, %v5471_v55  ;;  %v776_v30 = vadd.f32 %v775_v26, %v5471_v55 }
 0x139   : > { %744 = vmatmul.f32.gmra.mxu0 %v632_v56  ;;  %v853_v34 = vadd.f32 %v852_v29, %v822_v27  ;;  %v5574_v29 = vld [vmem:[#allocation8 + $0x78] sm:$0xff] }
 0x13a   : > { %1894 = vmatpush.msra.mxu2 %v5574_v29 }
 0x13e   : > { %v5474_v57 = vpop.f32.mrf.mxu0 }
 0x13f   : > { %v823_v31 = vmul.f32 %v5474_v57, %v5474_v57  ;;  %v777_v35 = vadd.f32 %v776_v30, %v5474_v57 }
 0x141   : > { %v854_v38 = vadd.f32 %v853_v34, %v823_v31 }
 0x146   : > { %v5476_v58 = vpop.f32.mrf.mxu0 }
 0x147   : > { %v824_v37 = vmul.f32 %v5476_v58, %v5476_v58  ;;  %v778_v40 = vadd.f32 %v777_v35, %v5476_v58 }
 0x149   : > { %v855_v43 = vadd.f32 %v854_v38, %v824_v37 }
 0x14e   : > { %v5478_v59 = vpop.f32.mrf.mxu0 }
 0x14f   : > { %v825_v41 = vmul.f32 %v5478_v59, %v5478_v59  ;;  %v779_v44 = vadd.f32 %v778_v40, %v5478_v59 }
 0x151   : > { %v856_v49 = vadd.f32 %v855_v43, %v825_v41 }
 0x156   : > { %v5480_v60 = vpop.f32.mrf.mxu0 }
 0x157   : > { %v826_v46 = vmul.f32 %v5480_v60, %v5480_v60  ;;  %v780_v50 = vadd.f32 %v779_v44, %v5480_v60 }
 0x159   : > { %v857_v54 = vadd.f32 %v856_v49, %v826_v46  ;;  %v5588_v46 = vld [vmem:[#allocation8 + $0x70] sm:$0xff] }
 0x15a   : > { %1895 = vmatpush.msra.mxu2 %v5588_v46 }
 0x15e   : > { %v5482_v61 = vpop.f32.mrf.mxu0 }
 0x15f   : > { %v827_v52 = vmul.f32 %v5482_v61, %v5482_v61  ;;  %v781_v56 = vadd.f32 %v780_v50, %v5482_v61 }
 0x161   : > { %v858_v6 = vadd.f32 %v857_v54, %v827_v52  ;;  %v5594_v54 = vpop.f32.mrf.mxu3 }
 0x162   : > { %8087 = vst [vmem:[#allocation25_spill] sm:$0xff] %v5594_v54 }
 0x166   : > { %v5484_v62 = vpop.f32.mrf.mxu0 }
 0x167   : > { %v828_v4 = vmul.f32 %v5484_v62, %v5484_v62  ;;  %v782_v7 = vadd.f32 %v781_v56, %v5484_v62 }
 0x169   : > { %v859_v9 = vadd.f32 %v858_v6, %v828_v4 }
 0x16e   : > { %v5486_v63 = vpop.f32.mrf.mxu0 }
 0x16f   : > { %v829_v8 = vmul.f32 %v5486_v63, %v5486_v63  ;;  %v783_v10 = vadd.f32 %v782_v7, %v5486_v63  ;;  %v5122_v7 = vmov 256.0  }
 0x170   : > { %4736 = vrcp.f32 %v5122_v7 }
 0x171   : > { %v860_v13 = vadd.f32 %v859_v9, %v829_v8  ;;  %v839_v8 = vmul.f32 %v5492_v2, %v5492_v2 }
 0x176   : > { %v5488_v0 = vpop.f32.mrf.mxu0 }
 0x177   : > { %v830_v11 = vmul.f32 %v5488_v0, %v5488_v0  ;;  %v784_v16 = vadd.f32 %v783_v10, %v5488_v0 }
 0x179   : > { %v861_v18 = vadd.f32 %v860_v13, %v830_v11  ;;  %v840_v11 = vmul.f32 %v5512_v15, %v5512_v15 }
 0x17e   : > { %v5490_v1 = vpop.f32.mrf.mxu0 }
 0x17f   : > { %v831_v17 = vmul.f32 %v5490_v1, %v5490_v1  ;;  %v785_v19 = vadd.f32 %v784_v16, %v5490_v1 }
 0x181   : > { %v862_v21 = vadd.f32 %v861_v18, %v831_v17  ;;  %v5605_v17 = vld [vmem:[#allocation8 + $0x68] sm:$0xff]  ;;  %v4737_v18 = vpop.eup %4736 }
 0x182   : > { %1896 = vmatpush.msra.mxu2 %v5605_v17  ;;  %vm811_vm0 = vweird.f32 %v4737_v18 }
 0x186   : > { %v5494_v3 = vpop.f32.mrf.mxu0 }
 0x187   : > { %v832_v20 = vmul.f32 %v5494_v3, %v5494_v3  ;;  %v786_v22 = vadd.f32 %v785_v19, %v5494_v3  ;;  %v841_v19 = vmul.f32 %v5531_v32, %v5531_v32 }
 0x189   : > { %v863_v25 = vadd.f32 %v862_v21, %v832_v20 }
 0x18e   : > { %v5510_v14 = vpop.f32.mrf.mxu0 }
 0x18f   : > { %v833_v23 = vmul.f32 %v5510_v14, %v5510_v14  ;;  %v787_v26 = vadd.f32 %v786_v22, %v5510_v14  ;;  %v842_v22 = vmul.f32 %v5550_v5, %v5550_v5 }
 0x191   : > { %v864_v31 = vadd.f32 %v863_v25, %v833_v23 }
 0x196   : > { %v5526_v28 = vpop.f32.mrf.mxu0 }
 0x197   : > { %v834_v27 = vmul.f32 %v5526_v28, %v5526_v28  ;;  %v788_v34 = vadd.f32 %v787_v26, %v5526_v28  ;;  %v5614_v26 = vpop.f32.mrf.mxu3 }
 0x199   : > { %v865_v37 = vadd.f32 %v864_v31, %v834_v27  ;;  %v807_v27 = vmul.f32 256.0, %v4737_v18  ;;  %v843_v31 = vmul.f32 %v5569_v24, %v5569_v24 }
 0x19e   : > { %v5542_v47 = vpop.f32.mrf.mxu0 }
 0x19f   : > { %v835_v35 = vmul.f32 %v5542_v47, %v5542_v47  ;;  %v789_v38 = vadd.f32 %v788_v34, %v5542_v47 }
 0x1a1   : > { %v866_v41 = vadd.f32 %v865_v37, %v835_v35 }
 0x1a6   : > { %v5558_v12 = vpop.f32.mrf.mxu0 }
 0x1a7   : > { %v836_v40 = vmul.f32 %v5558_v12, %v5558_v12  ;;  %v790_v43 = vadd.f32 %v789_v38, %v5558_v12  ;;  %v844_v38 = vmul.f32 %v5594_v54, %v5594_v54 }
 0x1a9   : > { %v867_v49 = vadd.f32 %v866_v41, %v836_v40  ;;  %v845_v41 = vmul.f32 %v5614_v26, %v5614_v26 }
 0x1ae   : > { %v5576_v30 = vpop.f32.mrf.mxu0 }
 0x1af   : > { %v837_v44 = vmul.f32 %v5576_v30, %v5576_v30  ;;  %v791_v50 = vadd.f32 %v790_v43, %v5576_v30  ;;  %v808_v43 = vsub.f32 1.0, %v807_v27  ;;  %v1780_v27 = vld [vmem:[#allocation8 + $0xf8] sm:$0xff] }
 0x1b0   : > { %1781 = vmatpush.msra.mxu1 %v1780_v27  ;;  %4571 = vmatpush.msrb.mxu3 %v1780_v27  ;;  %v1771_v27 = vld [vmem:[#allocation8 + $0xb0] sm:$0xff] }
 0x1b1   : > { %v868_v56 = vadd.f32 %v867_v49, %v837_v44 }
 0x1b6   : > { %v5592_v52 = vpop.f32.mrf.mxu0 }
 0x1b7   : > { %v792_v4 = vadd.f32 %v791_v50, %v5592_v52  ;;  %v838_v6 = vmul.f32 %v5592_v52, %v5592_v52 }
 0x1b9   : > { %v793_v9 = vadd.f32 %v792_v4, %v5492_v2  ;;  %v869_v10 = vadd.f32 %v868_v56, %v838_v6  ;;  %v809_v4 = vmul.f32 %v4737_v18, %v808_v43 }
 0x1bb   : > { %v794_v13 = vadd.f32 %v793_v9, %v5512_v15  ;;  %v870_v16 = vadd.f32 %v869_v10, %v839_v8  ;;  %v810_v10 = vadd.f32 %v4737_v18, %v809_v4  ;;  %v5647_v4 = vld [vmem:[#allocation8 + $0x40] sm:$0xff] }
 0x1bd   : > { %v871_v20 = vadd.f32 %v870_v16, %v840_v11  ;;  %v795_v21 = vadd.f32 %v794_v13, %v5531_v32 }
 0x1bf   : > { %v796_v23 = vadd.f32 %v795_v21, %v5550_v5  ;;  %v872_v25 = vadd.f32 %v871_v20, %v841_v19  ;;  %v5625_v20 = vsel %vm811_vm0, %v4737_v18, %v810_v10  ;;  %v5636_v18 = vld [vmem:[#allocation8 + $0x58] sm:$0xff]  ;;  %v1773_v10 = vld [vmem:[#allocation8 + $0xc0] sm:$0xff] }
 0x1c0   : > { %8088 = vst [vmem:[#allocation26_spill] sm:$0xff] %v5625_v20 }
 0x1c1   : > { %v797_v34 = vadd.f32 %v796_v23, %v5569_v24  ;;  %v873_v35 = vadd.f32 %v872_v25, %v842_v22 }
 0x1c3   : > { %v798_v37 = vadd.f32 %v797_v34, %v5594_v54  ;;  %v874_v40 = vadd.f32 %v873_v35, %v843_v31  ;;  %v5630_v31 = vld [vmem:[#allocation8 + $0x60] sm:$0xff] }
 0x1c4   : > { %1897 = vmatpush.msra.mxu2 %v5630_v31 }
 0x1c5   : > { %v875_v44 = vadd.f32 %v874_v40, %v844_v38  ;;  %v799_v49 = vadd.f32 %v798_v37, %v5614_v26  ;;  %v1779_v37 = vld [vmem:[#allocation8 + $0xf0] sm:$0xff]  ;;  %v1778_v40 = vld [vmem:[#allocation8 + $0xe8] sm:$0xff] }
 0x1c6   : > { %1782 = vmatpush.msra.mxu1 %v1779_v37  ;;  %1898 = vmatpush.msra.mxu2 %v5636_v18 }
 0x1c7   : > { %v800_v50 = vrot.slane %v799_v49, 4  ;;  %v876_v56 = vadd.f32 %v875_v44, %v845_v41  ;;  %v5639_v41 = vld [vmem:[#allocation8 + $0x50] sm:$0xff]  ;;  %4572 = vmatpush.msrb.mxu3 %v1779_v37  ;;  %v1777_v44 = vld [vmem:[#allocation8 + $0xe0] sm:$0xff] }
 0x1c8   : > { %1783 = vmatpush.msra.mxu1 %v1778_v40  ;;  %1899 = vmatpush.msra.mxu2 %v5639_v41 }
 0x1c9   : > { %v801_v6 = vadd.f32 %v800_v50, %v799_v49  ;;  %v877_v7 = vrot.slane %v876_v56, 4  ;;  %v5642_v49 = vld [vmem:[#allocation8 + $0x48] sm:$0xff]  ;;  %4573 = vmatpush.msrb.mxu3 %v1778_v40  ;;  %v5673_v40 = vld [vmem:[#allocation8 + $0x10] sm:$0xff] }
 0x1ca   : > { %1784 = vmatpush.msra.mxu1 %v1777_v44  ;;  %1900 = vmatpush.msra.mxu2 %v5642_v49 }
 0x1cb   : > { %v802_v8 = vrot.slane %v801_v6, 2  ;;  %v878_v9 = vadd.f32 %v877_v7, %v876_v56  ;;  %v1776_v56 = vld [vmem:[#allocation8 + $0xd8] sm:$0xff]  ;;  %4574 = vmatpush.msrb.mxu3 %v1777_v44 }
 0x1cc   : > { %1785 = vmatpush.msra.mxu1 %v1776_v56  ;;  %1901 = vmatpush.msra.mxu2 %v5647_v4  ;;  %v5651_v7 = vld [vmem:[#allocation8 + $0x38] sm:$0xff] }
 0x1cd   : > { %v803_v11 = vadd.f32 %v802_v8, %v801_v6  ;;  %v879_v13 = vrot.slane %v878_v9, 2  ;;  %v1775_v6 = vld [vmem:[#allocation8 + $0xd0] sm:$0xff]  ;;  %4575 = vmatpush.msrb.mxu3 %v1776_v56  ;;  %v1774_v8 = vld [vmem:[#allocation8 + $0xc8] sm:$0xff]  ;;  %v1769_v56 = vld [vmem:[#allocation8 + $0xa0] sm:$0xff] }
 0x1ce   : > { %1786 = vmatpush.msra.mxu1 %v1775_v6  ;;  %1902 = vmatpush.msra.mxu2 %v5651_v7 }
 0x1cf   : > { %v804_v16 = vrot.slane %v803_v11, 1  ;;  %v880_v19 = vadd.f32 %v879_v13, %v878_v9  ;;  %v5654_v9 = vld [vmem:[#allocation8 + $0x30] sm:$0xff]  ;;  %4576 = vmatpush.msrb.mxu3 %v1775_v6  ;;  %v5679_v6 = vld [vmem:[#allocation8 + $0x8] sm:$0xff] }
 0x1d0   : > { %1787 = vmatpush.msra.mxu1 %v1774_v8  ;;  %1903 = vmatpush.msra.mxu2 %v5654_v9  ;;  %8090 = vst [vmem:[#allocation28_spill] sm:$0xff] %v5679_v6 }
 0x1d1   : > { %v805_v21 = vadd.f32 %v804_v16, %v803_v11  ;;  %v881_v22 = vrot.slane %v880_v19, 1  ;;  %v5657_v11 = vld [vmem:[#allocation8 + $0x28] sm:$0xff]  ;;  %4577 = vmatpush.msrb.mxu3 %v1774_v8  ;;  %v1772_v16 = vld [vmem:[#allocation8 + $0xb8] sm:$0xff] }
 0x1d2   : > { %1788 = vmatpush.msra.mxu1 %v1773_v10  ;;  %1904 = vmatpush.msra.mxu2 %v5657_v11 }
 0x1d3   : > { %v5628_v23 = vmul.f32 %v5625_v20, %v805_v21  ;;  %v882_v25 = vadd.f32 %v881_v22, %v880_v19  ;;  %v5660_v19 = vld [vmem:[#allocation8 + $0x20] sm:$0xff]  ;;  %v7995_v21 = vmov 0.0   ;;  %v1043_v22 = vlaneseq  ;;  %4578 = vmatpush.msrb.mxu3 %v1773_v10 }
 0x1d4   : > { %1005 = vst [vmem:[#allocation2] sm:$0xff] %v7995_v21  ;;  %1789 = vmatpush.msra.mxu1 %v1772_v16  ;;  %1905 = vmatpush.msra.mxu2 %v5660_v19 }
 0x1d5   : > { %v883_v34 = vmul.f32 %v882_v25, %v5625_v20  ;;  %v884_v35 = vmul.f32 %v5628_v23, %v5628_v23  ;;  %1006 = vst [vmem:[#allocation2 + $0x8] sm:$0xff] %v7995_v21  ;;  %4579 = vmatpush.msrb.mxu3 %v1772_v16  ;;  %v1768_v16 = vld [vmem:[#allocation8 + $0x98] sm:$0xff]  ;;  %v2312_v20 = vld [vmem:[#allocation8 + $0x1f0] sm:$0xff] }
 0x1d6   : > { %1007 = vst [vmem:[#allocation2 + $0x10] sm:$0xff] %v7995_v21  ;;  %1790 = vmatpush.msra.mxu1 %v1771_v27 }
 0x1d7   : > { %v885_v38 = vsub.f32 %v883_v34, %v884_v35  ;;  %v5666_v34 = vld [vmem:[#allocation8 + $0x18] sm:$0xff]  ;;  %v5669_v35 = vshrl.u32 %v1043_v22, 7  ;;  %1008 = vst [vmem:[#allocation2 + $0x118] sm:$0xff] %v7995_v21  ;;  %4580 = vmatpush.msrb.mxu3 %v1771_v27  ;;  %v5685_v22 = vld [vmem:[#allocation8] sm:$0xff]  ;;  %v887_v27 = vld [vmem:[%s7979_s2] sm:$0x1] }
 0x1d8   : > { %1906 = vmatpush.msra.mxu2 %v5666_v34  ;;  %1009 = vst [vmem:[#allocation2 + $0x120] sm:$0xff] %v7995_v21 }
 0x1d9   : > { %v886_v43 = vmax.f32 %v885_v38, 0.0  ;;  %8089 = vst [vmem:[#allocation27_spill] sm:$0xff] %v5669_v35  ;;  %v1770_v38 = vld [vmem:[#allocation8 + $0xa8] sm:$0xff] }
 0x1da   : > { %1791 = vmatpush.msra.mxu1 %v1770_v38  ;;  %1907 = vmatpush.msra.mxu2 %v5673_v40  ;;  %1010 = vst [vmem:[#allocation2 + $0x128] sm:$0xff] %v7995_v21 }
 0x1db   : > { %v5645_v50 = vadd.f32 1e-05, %v886_v43  ;;  %v1080_v43 = vand.u32 15, %v5669_v35  ;;  %4581 = vmatpush.msrb.mxu3 %v1770_v38  ;;  %8091 = vst [vmem:[#allocation29_spill] sm:$0xff] %v5685_v22 }
 0x1dc   : > { %1792 = vmatpush.msra.mxu1 %v1769_v56  ;;  %1908 = vmatpush.msra.mxu2 %v5679_v6  ;;  %v1766_v6 = vld [vmem:[#allocation8 + $0x88] sm:$0xff] }
 0x1dd   : > { %4738 = vrsqrt.f32 %v5645_v50  ;;  %vm1460_vm1 = vcmp.ne.s32.totalorder %v1080_v43, 0  ;;  %4582 = vmatpush.msrb.mxu3 %v1769_v56  ;;  %vm895_vm3 = vweird.f32 %v5645_v50  ;;  %v2313_v43 = vld [vmem:[#allocation8 + $0x1f8] sm:$0xff] }
 0x1de   : > { %v5683_v10 = vsel %vm1460_vm1, 1.0, %v7995_v21  ;;  %1793 = vmatpush.msra.mxu1 %v1768_v16  ;;  %1909 = vmatpush.msra.mxu2 %v5685_v22  ;;  %v2311_v22 = vld [vmem:[#allocation8 + $0x1e8] sm:$0xff] }
 0x1df   : > { %4583 = vmatpush.msrb.mxu3 %v1768_v16  ;;  %2314 = vmatpush.msrb.mxu0 %v2313_v43  ;;  %v2308_v43 = vld [vmem:[#allocation8 + $0x1d0] sm:$0xff] }
 0x1e1   : > { %2315 = vmatpush.msrb.mxu0 %v2312_v20  ;;  %v2309_v20 = vld [vmem:[#allocation8 + $0x1d8] sm:$0xff] }
 0x1e3   : > { %v4739_v13 = vpop.eup %4738  ;;  %2316 = vmatpush.msrb.mxu0 %v2311_v22  ;;  %v2307_v22 = vld [vmem:[#allocation8 + $0x1c8] sm:$0xff] }
 0x1e4   : > { %v890_v25 = vmul.f32 %v4739_v13, %v5645_v50  ;;  %vm896_vm2 = vweird.f32 %v4739_v13 }
 0x1e5   : > { %vm897_vm4 = vmor %vm895_vm3, %vm896_vm2 }
 0x1e6   : > { %v891_v37 = vmul.f32 %v4739_v13, %v890_v25  ;;  %v1652_v25 = vld [vmem:[#allocation2 + $0x7] sm:$0xff] }
 0x1e7   : > { %v1684_v38 = vmul.f32 %v5683_v10, %v1652_v25  ;;  %v1765_v25 = vld [vmem:[#allocation8 + $0x80] sm:$0xff] }
 0x1e8   : > { %v892_v44 = vmul.f32 0.5, %v891_v37 }
 0x1e9   : > { %1910 = vmatmul.f32.vlgmr.msra.gmra.mxu2 %v1684_v38  ;;  %v8092_v38 = vmov 0.0  }
 0x1ea   : > { %v893_v8 = vsub.f32 1.5, %v892_v44  ;;  %v1767_v44 = vld [vmem:[#allocation8 + $0x90] sm:$0xff] }
 0x1eb   : > { %1794 = vmatpush.msra.mxu1 %v1767_v44  ;;  %4584 = vmatpush.msrb.mxu3 %v1767_v44  ;;  %v2306_v44 = vld [vmem:[#allocation8 + $0x1c0] sm:$0xff] }
 0x1ec   : > { %v894_v37 = vmul.f32 %v4739_v13, %v893_v8  ;;  %v900_v8 = vld [vmem:[#allocation6] sm:$0x1] }
 0x1ed   : > { %1795 = vmatpush.msra.mxu1 %v1766_v6  ;;  %4585 = vmatpush.msrb.mxu3 %v1766_v6 }
 0x1ee   : > { %v898_v21 = vsel %vm897_vm4, %v4739_v13, %v894_v37  ;;  %v2310_v13 = vld [vmem:[#allocation8 + $0x1e0] sm:$0xff] }
 0x1ef   : > { %v899_v56 = vmul.f32 %v898_v21, %v887_v27  ;;  %1796 = vmatpush.msra.mxu1 %v1765_v25  ;;  %2317 = vmatpush.msrb.mxu0 %v2310_v13  ;;  %v1653_v21 = vld [vmem:[#allocation2 + $0xf] sm:$0xff]  ;;  %v2304_v13 = vld [vmem:[#allocation8 + $0x1b0] sm:$0xff] }
 0x1f0   : > { %1797 = vmatmul.f32.vlgmr.msra.gmra.mxu1 %v8092_v38  ;;  %4586 = vmatpush.msrb.mxu3 %v1765_v25 }
 0x1f1   : > { %v901_v50 = vmul.f32 %v899_v56, %v5628_v23  ;;  %v5694_v54 = vperm.slane %v899_v56, 0  ;;  %2318 = vmatpush.msrb.mxu0 %v2309_v20  ;;  %1913 = vmatmul.f32.gmra.mxu2 %v1653_v21  ;;  %v2305_v56 = vld [vmem:[#allocation8 + $0x1b8] sm:$0xff] }
 0x1f2   : > { %4587 = vmatpush.msra.mxu3 %v5574_v29 }
 0x1f3   : > { %v902_v16 = vsub.f32 %v900_v8, %v901_v50  ;;  %v937_v27 = vmul.f32 %v5694_v54, %v5614_v26  ;;  %2319 = vmatpush.msrb.mxu0 %v2308_v43  ;;  %v906_v26 = vmul.f32 %v5694_v54, %v5441_v33  ;;  %v907_v8 = vmul.f32 %v5694_v54, %v5445_v36 }
 0x1f4   : > { %v908_v50 = vmul.f32 %v5694_v54, %v5449_v39  ;;  %v909_v25 = vmul.f32 %v5694_v54, %v5453_v42  ;;  %v910_v29 = vmul.f32 %v5694_v54, %v5457_v45  ;;  %4588 = vmatpush.msra.mxu3 %v5588_v46  ;;  %v912_v36 = vmul.f32 %v5694_v54, %v5465_v51 }
 0x1f5   : > { %v5698_v37 = vperm.slane %v902_v16, 0  ;;  %2320 = vmatpush.msrb.mxu0 %v2307_v22  ;;  %v911_v16 = vmul.f32 %v5694_v54, %v5461_v48  ;;  %v913_v45 = vmul.f32 %v5694_v54, %v5468_v53  ;;  %v914_v48 = vmul.f32 %v5694_v54, %v5471_v55  ;;  %v2302_v22 = vld [vmem:[#allocation8 + $0x1a0] sm:$0xff] }
 0x1f6   : > { %v915_v46 = vmul.f32 %v5694_v54, %v5474_v57  ;;  %4589 = vmatpush.msra.mxu3 %v5605_v17  ;;  %v916_v20 = vmul.f32 %v5694_v54, %v5476_v58  ;;  %v918_v53 = vmul.f32 %v5694_v54, %v5480_v60  ;;  %v919_v57 = vmul.f32 %v5694_v54, %v5482_v61 }
 0x1f7   : > { %v972_v23 = vadd.f32 %v5698_v37, %v937_v27  ;;  %2321 = vmatpush.msrb.mxu0 %v2306_v44  ;;  %v941_v33 = vadd.f32 %v5698_v37, %v906_v26  ;;  %v5721_v39 = vadd.f32 %v5698_v37, %v907_v8  ;;  %v5724_v42 = vadd.f32 %v5698_v37, %v908_v50  ;;  %v2303_v27 = vld [vmem:[#allocation8 + $0x1a8] sm:$0xff]  ;;  %v2300_v50 = vld [vmem:[#allocation8 + $0x190] sm:$0xff] }
 0x1f8   : > { %1800 = vmatmul.f32.gmra.mxu1 %v8092_v38  ;;  %v5727_v21 = vadd.f32 %v5698_v37, %v909_v25  ;;  %v5736_v51 = vadd.f32 %v5698_v37, %v910_v29  ;;  %v5746_v55 = vadd.f32 %v5698_v37, %v911_v16  ;;  %v929_v43 = vmul.f32 %v5694_v54, %v5576_v30  ;;  %v2506_v30 = vld [vmem:[#allocation8 + $0x270] sm:$0xff] }
 0x1f9   : > { %v1004_v6 = vmax.f32 %v972_v23, 0.0  ;;  %2322 = vmatpush.msrb.mxu0 %v2305_v56  ;;  %v917_v23 = vmul.f32 %v5694_v54, %v5478_v59  ;;  %v5753_v17 = vadd.f32 %v5698_v37, %v912_v36  ;;  %v973_v58 = vmax.f32 %v941_v33, 0.0  ;;  %v2301_v59 = vld [vmem:[#allocation8 + $0x198] sm:$0xff]  ;;  %4590 = vmatpush.msra.mxu3 %v5630_v31  ;;  %v2299_v36 = vld [vmem:[#allocation8 + $0x188] sm:$0xff] }
 0x1fa   : > { %v5757_v60 = vadd.f32 %v5698_v37, %v913_v45  ;;  %v974_v44 = vmax.f32 %v5721_v39, 0.0  ;;  %v975_v26 = vmax.f32 %v5724_v42, 0.0  ;;  %v976_v61 = vmax.f32 %v5727_v21, 0.0  ;;  %v2505_v45 = vld [vmem:[#allocation8 + $0x268] sm:$0xff] }
 0x1fb   : > { %1042 = vst [vmem:[#allocation2 + $0x110] sm:$0xff] %v1004_v6  ;;  %2323 = vmatpush.msrb.mxu0 %v2304_v13  ;;  %v2507_v6 = vld [vmem:[#allocation8 + $0x278] sm:$0xff]  ;;  %v5763_v56 = vadd.f32 %v5698_v37, %v914_v48  ;;  %v5766_v8 = vadd.f32 %v5698_v37, %v929_v43  ;;  %v977_v31 = vmax.f32 %v5736_v51, 0.0  ;;  %4591 = vmatpush.msra.mxu3 %v5636_v18  ;;  %v978_v16 = vmax.f32 %v5746_v55, 0.0 }
 0x1fc   : > { %2508 = vmatpush.msrb.mxu1 %v2507_v6  ;;  %1011 = vst [vmem:[#allocation2 + $0x18] sm:$0xff] %v973_v58  ;;  %v920_v25 = vmul.f32 %v5694_v54, %v5484_v62  ;;  %v5773_v29 = vadd.f32 %v5698_v37, %v915_v46  ;;  %v921_v33 = vmul.f32 %v5694_v54, %v5486_v63  ;;  %v8017_v62 = vmax.f32 %v5753_v17, 0.0  ;;  %v2504_v46 = vld [vmem:[#allocation8 + $0x260] sm:$0xff] }
 0x1fd   : > { %2324 = vmatpush.msrb.mxu0 %v2303_v27  ;;  %1012 = vst [vmem:[#allocation2 + $0x20] sm:$0xff] %v974_v44  ;;  %v922_v13 = vmul.f32 %v5694_v54, %v5488_v0  ;;  %v5783_v18 = vadd.f32 %v5698_v37, %v916_v20  ;;  %4592 = vmatpush.msra.mxu3 %v5639_v41  ;;  %v8015_v0 = vmax.f32 %v5757_v60, 0.0  ;;  %v8014_v41 = vmax.f32 %v5763_v56, 0.0 }
 0x1fe   : > { %2509 = vmatpush.msrb.mxu1 %v2506_v30  ;;  %1013 = vst [vmem:[#allocation2 + $0x28] sm:$0xff] %v975_v26  ;;  %v923_v48 = vmul.f32 %v5694_v54, %v5490_v1  ;;  %v5792_v63 = vadd.f32 %v5698_v37, %v917_v23  ;;  %v924_v27 = vmul.f32 %v5694_v54, %v5494_v3  ;;  %v996_v1 = vmax.f32 %v5766_v8, 0.0  ;;  %v2298_v23 = vld [vmem:[#allocation8 + $0x180] sm:$0xff] }
 0x1ff   : > { %2325 = vmatpush.msrb.mxu0 %v2302_v22  ;;  %1014 = vst [vmem:[#allocation2 + $0x30] sm:$0xff] %v976_v61  ;;  %v5800_v20 = vadd.f32 %v5698_v37, %v918_v53  ;;  %4593 = vmatpush.msra.mxu3 %v5642_v49  ;;  %v925_v43 = vmul.f32 %v5694_v54, %v5510_v14  ;;  %v8013_v3 = vmax.f32 %v5773_v29, 0.0  ;;  %v8012_v49 = vmax.f32 %v5783_v18, 0.0 }
 0x200   : > { %1803 = vmatmul.f32.gmra.mxu1 %v973_v58  ;;  %1015 = vst [vmem:[#allocation2 + $0x38] sm:$0xff] %v977_v31  ;;  %v5810_v58 = vadd.f32 %v5698_v37, %v919_v57  ;;  %v930_v53 = vmul.f32 %v5694_v54, %v5592_v52  ;;  %v5818_v6 = vadd.f32 %v5698_v37, %v920_v25  ;;  %v1046_v14 = vadd.s32 16, %v5669_v35 }
 0x201   : > { %2326 = vmatpush.msrb.mxu0 %v2301_v59  ;;  %2510 = vmatpush.msrb.mxu1 %v2505_v45  ;;  %1016 = vst [vmem:[#allocation2 + $0x40] sm:$0xff] %v978_v16  ;;  %v5827_v57 = vadd.f32 %v5698_v37, %v921_v33  ;;  %v5830_v22 = vadd.f32 %v5698_v37, %v922_v13  ;;  %v8011_v52 = vmax.f32 %v5792_v63, 0.0  ;;  %v1055_v51 = vadd.s32 88, %v5669_v35 }
 0x202   : > { %1017 = vst [vmem:[#allocation2 + $0x48] sm:$0xff] %v8017_v62  ;;  %1872 = vmatmul.f32.vlgmr.msrb.gmra.mxu3 %v996_v1  ;;  %v5837_v30 = vadd.f32 %v5698_v37, %v930_v53  ;;  %v1094_v33 = vand.u32 15, %v1046_v14  ;;  %v926_v13 = vmul.f32 %v5694_v54, %v5526_v28  ;;  %v8009_v45 = vmax.f32 %v5810_v58, 0.0 }
 0x203   : > { %2327 = vmatpush.msrb.mxu0 %v2300_v50  ;;  %2511 = vmatpush.msrb.mxu1 %v2504_v46  ;;  %1018 = vst [vmem:[#allocation2 + $0x50] sm:$0xff] %v8015_v0  ;;  %v2233_v59 = vld [vmem:[#allocation2 + $0x17] sm:$0xff]  ;;  %v8010_v50 = vmax.f32 %v5800_v20, 0.0  ;;  %v5859_v39 = vadd.f32 %v5698_v37, %v924_v27  ;;  %v8003_v28 = vmax.f32 %v5818_v6, 0.0  ;;  %v1067_v0 = vadd.s32 184, %v5669_v35 }
 0x204   : > { %4594 = vmatpush.msra.mxu3 %v5647_v4  ;;  %1019 = vst [vmem:[#allocation2 + $0x58] sm:$0xff] %v8014_v41  ;;  %v2265_v25 = vmul.f32 %v5683_v10, %v2233_v59  ;;  %v927_v4 = vmul.f32 %v5694_v54, %v5542_v47  ;;  %vm1462_vm5 = vcmp.ne.s32.totalorder %v1094_v33, 0 }
 0x205   : > { %2328 = vmatpush.msrb.mxu0 %v2299_v36  ;;  %v5850_v36 = vadd.f32 %v5698_v37, %v923_v48  ;;  %1020 = vst [vmem:[#allocation2 + $0x60] sm:$0xff] %v8013_v3  ;;  %v5855_v46 = vld [vmem:[#allocation2 + $0x27] sm:$0xff]  ;;  %v5871_v48 = vadd.f32 %v5698_v37, %v925_v43  ;;  %v5877_v27 = vsel %vm1462_vm5, 1.0, %v8092_v38 }
 0x206   : > { %4595 = vmatpush.msra.mxu3 %v5651_v7  ;;  %1021 = vst [vmem:[#allocation2 + $0x68] sm:$0xff] %v8012_v49  ;;  %v5866_v47 = vmul.f32 %v5683_v10, %v5855_v46  ;;  %v8002_v7 = vmax.f32 %v5827_v57, 0.0  ;;  %v5881_v10 = vadd.f32 %v5698_v37, %v926_v13  ;;  %v1686_v43 = vmul.f32 %v5877_v27, %v2233_v59  ;;  %v2503_v59 = vld [vmem:[#allocation8 + $0x258] sm:$0xff] }
 0x207   : > { %2329 = vmatpush.msrb.mxu0 %v2298_v23  ;;  %1022 = vst [vmem:[#allocation2 + $0x70] sm:$0xff] %v8011_v52  ;;  %v8008_v23 = vmax.f32 %v5830_v22, 0.0  ;;  %v962_v53 = vadd.f32 %v5698_v37, %v927_v4  ;;  %v8007_v14 = vmax.f32 %v5850_v36, 0.0  ;;  %v8006_v13 = vmax.f32 %v5859_v39, 0.0  ;;  %2512 = vmatpush.msrb.mxu1 %v2503_v59 }
 0x208   : > { %1806 = vmatmul.f32.gmra.mxu1 %v974_v44  ;;  %8093 = vst [vmem:[#allocation30_spill] sm:$0xff] %v5866_v47  ;;  %2330 = vmatmul.f32.vlgmr.msrb.gmra.mxu0 %v2265_v25  ;;  %v928_v44 = vmul.f32 %v5694_v54, %v5558_v12  ;;  %v997_v12 = vmax.f32 %v5837_v30, 0.0  ;;  %v931_v25 = vmul.f32 %v5694_v54, %v5492_v2  ;;  %v8005_v4 = vmax.f32 %v5871_v48, 0.0  ;;  %v5972_v30 = vld [vmem:[#allocation2 + $0x21] sm:$0xff] }
 0x209   : > { %8094 = vst [vmem:[#allocation31_spill] sm:$0xff] %v5877_v27  ;;  %4596 = vmatpush.msra.mxu3 %v5654_v9  ;;  %v1048_v9 = vadd.s32 32, %v5669_v35  ;;  %1916 = vmatmul.f32.gmra.mxu2 %v1686_v43  ;;  %v932_v2 = vmul.f32 %v5694_v54, %v5512_v15  ;;  %v8004_v43 = vmax.f32 %v5881_v10, 0.0  ;;  %v934_v59 = vmul.f32 %v5694_v54, %v5550_v5  ;;  %v1655_v15 = vld [vmem:[#allocation2 + $0x1f] sm:$0xff] }
 0x20a   : > { %1023 = vst [vmem:[#allocation2 + $0x78] sm:$0xff] %v8010_v50  ;;  %v963_v33 = vadd.f32 %v5698_v37, %v928_v44  ;;  %1875 = vmatmul.f32.gmra.mxu3 %v997_v12  ;;  %v966_v44 = vadd.f32 %v5698_v37, %v931_v25  ;;  %v935_v5 = vmul.f32 %v5694_v54, %v5569_v24  ;;  %v1070_v24 = vadd.s32 208, %v5669_v35 }
 0x20b   : > { %1024 = vst [vmem:[#allocation2 + $0x80] sm:$0xff] %v8009_v45  ;;  %4597 = vmatpush.msra.mxu3 %v5657_v11  ;;  %v933_v11 = vmul.f32 %v5694_v54, %v5531_v32  ;;  %v1045_v32 = vadd.s32 8, %v5669_v35  ;;  %v967_v25 = vadd.f32 %v5698_v37, %v932_v2  ;;  %v1047_v2 = vadd.s32 24, %v5669_v35 }
 0x20c   : > { %1025 = vst [vmem:[#allocation2 + $0x88] sm:$0xff] %v8003_v28  ;;  %v995_v28 = vmax.f32 %v963_v33, 0.0  ;;  %v998_v33 = vmax.f32 %v966_v44, 0.0  ;;  %v1061_v49 = vadd.s32 136, %v5669_v35 }
 0x20d   : > { %1026 = vst [vmem:[#allocation2 + $0x90] sm:$0xff] %v8002_v7  ;;  %4598 = vmatpush.msra.mxu3 %v5660_v19  ;;  %v994_v19 = vmax.f32 %v962_v53, 0.0  ;;  %v1108_v7 = vand.u32 15, %v1048_v9  ;;  %v5928_v42 = vadd.f32 %v5698_v37, %v933_v11  ;;  %v8095_v53 = vld [vmem:[#allocation25_spill] sm:$0xff]  ;;  %v5943_v11 = vadd.f32 %v5698_v37, %v935_v5 }
 0x20e   : > { %1027 = vst [vmem:[#allocation2 + $0x98] sm:$0xff] %v8008_v23  ;;  %v936_v9 = vmul.f32 %v5694_v54, %v8095_v53  ;;  %v999_v44 = vmax.f32 %v967_v25, 0.0  ;;  %v1072_v53 = vadd.s32 224, %v5669_v35  ;;  %v1101_v8 = vand.u32 15, %v1047_v2 }
 0x20f   : > { %1028 = vst [vmem:[#allocation2 + $0xa0] sm:$0xff] %v8007_v14  ;;  %4599 = vmatpush.msra.mxu3 %v5666_v34  ;;  %v1087_v34 = vand.u32 15, %v1045_v32  ;;  %vm5945_vm6 = vcmp.ne.s32.totalorder %v1108_v7, 0  ;;  %v2502_v32 = vld [vmem:[#allocation8 + $0x250] sm:$0xff]  ;;  %v1000_v5 = vmax.f32 %v5928_v42, 0.0  ;;  %v1050_v2 = vadd.s32 48, %v5669_v35 }
 0x210   : > { %1809 = vmatmul.f32.gmra.mxu1 %v975_v26  ;;  %1029 = vst [vmem:[#allocation2 + $0xa8] sm:$0xff] %v8006_v13  ;;  %2333 = vmatmul.f32.gmra.mxu0 %v1655_v15  ;;  %v5931_v26 = vadd.f32 %v5698_v37, %v934_v59  ;;  %v971_v54 = vadd.f32 %v5698_v37, %v936_v9  ;;  %v8099_v7 = vld [vmem:[#allocation29_spill] sm:$0xff]  ;;  %v5962_v37 = vsel %vm5945_vm6, 1.0, %v8092_v38  ;;  %v1276_v9 = vand.u32 15, %v1072_v53 }
 0x211   : > { %1030 = vst [vmem:[#allocation2 + $0xb0] sm:$0xff] %v8005_v4  ;;  %4600 = vmatpush.msra.mxu3 %v5673_v40  ;;  %v8098_v40 = vld [vmem:[#allocation28_spill] sm:$0xff]  ;;  %1919 = vmatmul.f32.gmra.mxu2 %v1655_v15  ;;  %vm1557_vm7 = vcmp.ne.s32.totalorder %v1087_v34, 15  ;;  %v1262_v15 = vand.u32 15, %v1070_v24  ;;  %v1051_v59 = vadd.s32 56, %v5669_v35  ;;  %v1688_v21 = vmul.f32 %v5962_v37, %v5855_v46 }
 0x212   : > { %1031 = vst [vmem:[#allocation2 + $0xb8] sm:$0xff] %v8004_v43  ;;  %1878 = vmatmul.f32.gmra.mxu3 %v998_v33  ;;  %2513 = vmatpush.msrb.mxu1 %v2502_v32  ;;  %v5970_v25 = vsel %vm1557_vm7, 1.0, %v8092_v38  ;;  %v1003_v34 = vmax.f32 %v971_v54, 0.0  ;;  %vm1559_vm9 = vcmp.ne.s32.totalorder %v1101_v8, 15  ;;  %vm1488_vm11 = vcmp.ne.s32.totalorder %v1276_v9, 0  ;;  %v5996_v32 = vld [vmem:[#allocation2 + $0x31] sm:$0xff] }
 0x213   : > { %1032 = vst [vmem:[#allocation2 + $0xc0] sm:$0xff] %v994_v19  ;;  %4601 = vmatpush.msra.mxu3 %v8098_v40  ;;  %v8018_v19 = vmax.f32 %v5931_v26, 0.0  ;;  %vm1486_vm8 = vcmp.ne.s32.totalorder %v1262_v15, 0  ;;  %v5984_v24 = vmul.f32 %v5970_v25, %v5972_v30  ;;  %v1053_v40 = vadd.s32 72, %v5669_v35  ;;  %v6013_v9 = vld [vmem:[#allocation2 + $0x51] sm:$0xff]  ;;  %v6061_v42 = vld [vmem:[#allocation2 + $0x81] sm:$0xff] }
 0x214   : > { %1033 = vst [vmem:[#allocation2 + $0xc8] sm:$0xff] %v995_v28  ;;  %v2267_v28 = vmul.f32 %v5877_v27, %v5855_v46  ;;  %v5991_v46 = vsel %vm1486_vm8, 1.0, %v8092_v38  ;;  %v5994_v54 = vsel %vm1559_vm9, 1.0, %v8092_v38  ;;  %v6006_v15 = vsel %vm1488_vm11, 1.0, %v8092_v38  ;;  %v1658_v14 = vld [vmem:[#allocation2 + $0x37] sm:$0xff] }
 0x215   : > { %1034 = vst [vmem:[#allocation2 + $0xd0] sm:$0xff] %v996_v1  ;;  %4602 = vmatpush.msra.mxu3 %v8099_v7  ;;  %v8016_v1 = vmax.f32 %v5943_v11, 0.0  ;;  %v6003_v7 = vld [vmem:[#allocation2 + $0x41] sm:$0xff]  ;;  %v1157_v4 = vand.u32 15, %v1055_v51  ;;  %v6051_v52 = vld [vmem:[#allocation2 + $0x71] sm:$0xff]  ;;  %v1052_v27 = vadd.s32 64, %v5669_v35 }
 0x216   : > { %1035 = vst [vmem:[#allocation2 + $0xd8] sm:$0xff] %v997_v12  ;;  %v1049_v12 = vadd.s32 40, %v5669_v35  ;;  %v2501_v51 = vld [vmem:[#allocation8 + $0x248] sm:$0xff]  ;;  %v6073_v3 = vld [vmem:[#allocation2 + $0x91] sm:$0xff] }
 0x217   : > { %8100 = vst [vmem:[#allocation25_spill] sm:$0xff] %v5962_v37  ;;  %vm1567_vm15 = vcmp.ne.s32.totalorder %v1157_v4, 15  ;;  %2514 = vmatpush.msrb.mxu1 %v2501_v51  ;;  %v2269_v4 = vmul.f32 %v5962_v37, %v1658_v14  ;;  %v1199_v51 = vand.u32 15, %v1061_v49  ;;  %v2026_v55 = vld [vmem:[#allocation2 + $0xa1] sm:$0xff]  ;;  %v1241_v37 = vand.u32 15, %v1067_v0 }
 0x218   : > { %1812 = vmatmul.f32.gmra.mxu1 %v976_v61  ;;  %1036 = vst [vmem:[#allocation2 + $0xe0] sm:$0xff] %v998_v33  ;;  %2336 = vmatmul.f32.gmra.mxu0 %v2267_v28  ;;  %v1115_v61 = vand.u32 15, %v1049_v12  ;;  %v1129_v33 = vand.u32 15, %v1051_v59  ;;  %v1657_v28 = vld [vmem:[#allocation2 + $0x2f] sm:$0xff]  ;;  %v1143_v12 = vand.u32 15, %v1053_v40  ;;  %v6022_v59 = vmul.f32 %v5994_v54, %v5996_v32 }
 0x219   : > { %8101 = vst [vmem:[#allocation28_spill] sm:$0xff] %v5970_v25  ;;  %1922 = vmatmul.f32.gmra.mxu2 %v1688_v21  ;;  %v1059_v40 = vadd.s32 120, %v5669_v35  ;;  %vm1573_vm2 = vcmp.ne.s32.totalorder %v1199_v51, 15  ;;  %vm1579_vm5 = vcmp.ne.s32.totalorder %v1241_v37, 15  ;;  %v1073_v0 = vadd.s32 232, %v5669_v35 }
 0x21a   : > { %1037 = vst [vmem:[#allocation2 + $0xe8] sm:$0xff] %v999_v44  ;;  %vm1561_vm10 = vcmp.ne.s32.totalorder %v1115_v61, 15  ;;  %1881 = vmatmul.f32.gmra.mxu3 %v999_v44  ;;  %vm1563_vm12 = vcmp.ne.s32.totalorder %v1129_v33, 15  ;;  %v1122_v44 = vand.u32 15, %v1050_v2  ;;  %vm1565_vm13 = vcmp.ne.s32.totalorder %v1143_v12, 15  ;;  %v6026_v61 = vld [vmem:[#allocation2 + $0x61] sm:$0xff] }
 0x21b   : > { %1038 = vst [vmem:[#allocation2 + $0xf0] sm:$0xff] %v1000_v5  ;;  %v6001_v53 = vsel %vm1561_vm10, 1.0, %v8092_v38  ;;  %v1057_v33 = vadd.s32 104, %v5669_v35  ;;  %v6035_v43 = vsel %vm1565_vm13, 1.0, %v8092_v38  ;;  %v1185_v23 = vand.u32 15, %v1059_v40 }
 0x21c   : > { %1039 = vst [vmem:[#allocation2 + $0xf8] sm:$0xff] %v8018_v19  ;;  %v6031_v2 = vmul.f32 %v6001_v53, %v6003_v7  ;;  %vm6047_vm14 = vcmp.ne.s32.totalorder %v1122_v44, 0  ;;  %v6091_v50 = vsel %vm1573_vm2, 1.0, %v8092_v38 }
 0x21d   : > { %1040 = vst [vmem:[#allocation2 + $0x100] sm:$0xff] %v8016_v1  ;;  %v1171_v12 = vand.u32 15, %v1057_v33  ;;  %v6056_v33 = vmul.f32 %v6035_v43, %v6026_v61  ;;  %vm1571_vm1 = vcmp.ne.s32.totalorder %v1185_v23, 15  ;;  %v6078_v23 = vsel %vm6047_vm14, 1.0, %v8092_v38 }
 0x21e   : > { %1041 = vst [vmem:[#allocation2 + $0x108] sm:$0xff] %v1003_v34  ;;  %v6011_v34 = vsel %vm1563_vm12, 1.0, %v8092_v38  ;;  %v6071_v40 = vsel %vm1571_vm1, 1.0, %v8092_v38  ;;  %v1690_v51 = vmul.f32 %v6078_v23, %v1658_v14  ;;  %v2030_v14 = vld [vmem:[#allocation2 + $0xc1] sm:$0xff] }
 0x21f   : > { %8102 = vst [vmem:[#allocation29_spill] sm:$0xff] %v5991_v46  ;;  %v6043_v45 = vmul.f32 %v6011_v34, %v6013_v9  ;;  %vm1569_vm0 = vcmp.ne.s32.totalorder %v1171_v12, 15  ;;  %v6095_v1 = vmul.f32 %v6071_v40, %v6073_v3 }
 0x220   : > { %8103 = vst [vmem:[#allocation32_spill] sm:$0xff] %v5994_v54  ;;  %1815 = vmatmul.f32.gmra.mxu1 %v977_v31  ;;  %2339 = vmatmul.f32.gmra.mxu0 %v1657_v28  ;;  %v6068_v44 = vsel %vm1569_vm0, 1.0, %v8092_v38 }
 0x221   : > { %8104 = vst [vmem:[#allocation33_spill] sm:$0xff] %v6001_v53  ;;  %v6008_v8 = vld [vmem:[#allocation2 + $0xe7] sm:$0xff]  ;;  %1925 = vmatmul.f32.gmra.mxu2 %v1657_v28  ;;  %v6059_v28 = vsel %vm1567_vm15, 1.0, %v8092_v38  ;;  %v6087_v49 = vmul.f32 %v6068_v44, %v6061_v42 }
 0x222   : > { %8105 = vst [vmem:[#allocation34_spill] sm:$0xff] %v6006_v15  ;;  %v6018_v31 = vmul.f32 %v5991_v46, %v6008_v8  ;;  %1884 = vmatmul.f32.gmra.mxu3 %v1000_v5  ;;  %v1063_v5 = vadd.s32 152, %v5669_v35  ;;  %v6082_v41 = vmul.f32 %v6059_v28, %v6051_v52  ;;  %v2034_v37 = vld [vmem:[#allocation2 + $0xe1] sm:$0xff] }
 0x223   : > { %8106 = vst [vmem:[#allocation35_spill] sm:$0xff] %v6011_v34  ;;  %v6024_v21 = vld [vmem:[#allocation2 + $0xf7] sm:$0xff] }
 0x224   : > { %8107 = vst [vmem:[#allocation36_spill] sm:$0xff] %v6035_v43  ;;  %v6039_v13 = vmul.f32 %v6006_v15, %v6024_v21  ;;  %v1213_v12 = vand.u32 15, %v1063_v5  ;;  %v2028_v5 = vld [vmem:[#allocation2 + $0xb1] sm:$0xff] }
 0x225   : > { %8110 = vst [vmem:[#allocation37_spill] sm:$0xff] %v6056_v33 }
 0x226   : > { %8111 = vst [vmem:[#allocation38_spill] sm:$0xff] %v6059_v28  ;;  %vm1575_vm3 = vcmp.ne.s32.totalorder %v1213_v12, 15  ;;  %v1071_v12 = vadd.s32 216, %v5669_v35 }
 0x227   : > { %8112 = vst [vmem:[#allocation39_spill] sm:$0xff] %v6068_v44  ;;  %v6100_v62 = vsel %vm1575_vm3, 1.0, %v8092_v38 }
 0x228   : > { %1818 = vmatmul.f32.gmra.mxu1 %v978_v16  ;;  %8113 = vst [vmem:[#allocation40_spill] sm:$0xff] %v6071_v40  ;;  %2342 = vmatmul.f32.gmra.mxu0 %v2269_v4  ;;  %v1065_v16 = vadd.s32 168, %v5669_v35  ;;  %v1069_v4 = vadd.s32 200, %v5669_v35  ;;  %v6110_v33 = vmul.f32 %v6100_v62, %v2028_v5  ;;  %v1283_v5 = vand.u32 15, %v1073_v0 }
 0x229   : > { %8114 = vst [vmem:[#allocation41_spill] sm:$0xff] %v6078_v23  ;;  %1928 = vmatmul.f32.gmra.mxu2 %v1690_v51  ;;  %v1659_v51 = vld [vmem:[#allocation2 + $0x3f] sm:$0xff] }
 0x22a   : > { %8115 = vst [vmem:[#allocation42_spill] sm:$0xff] %v6082_v41  ;;  %v1227_v19 = vand.u32 15, %v1065_v16  ;;  %v1255_v47 = vand.u32 15, %v1069_v4  ;;  %v2500_v41 = vld [vmem:[#allocation8 + $0x240] sm:$0xff]  ;;  %vm1585_vm8 = vcmp.ne.s32.totalorder %v1283_v5, 15 }
 0x22b   : > { %8116 = vst [vmem:[#allocation43_spill] sm:$0xff] %v6087_v49  ;;  %v6104_v49 = vmul.f32 %v6091_v50, %v2026_v55  ;;  %2515 = vmatpush.msrb.mxu1 %v2500_v41  ;;  %v6117_v55 = vsel %vm1579_vm5, 1.0, %v8092_v38  ;;  %v2032_v4 = vld [vmem:[#allocation2 + $0xd1] sm:$0xff] }
 0x22c   : > { %8117 = vst [vmem:[#allocation44_spill] sm:$0xff] %v6091_v50  ;;  %vm1577_vm4 = vcmp.ne.s32.totalorder %v1227_v19, 15  ;;  %vm1581_vm6 = vcmp.ne.s32.totalorder %v1255_v47, 15  ;;  %v2036_v41 = vld [vmem:[#allocation2 + $0xf1] sm:$0xff] }
 0x22d   : > { %8118 = vst [vmem:[#allocation45_spill] sm:$0xff] %v6095_v1  ;;  %v8121_v1 = vmax.f32 %v5931_v26, 0.0  ;;  %v6114_v16 = vsel %vm1577_vm4, 1.0, %v8092_v38  ;;  %v1269_v26 = vand.u32 15, %v1071_v12  ;;  %v6122_v19 = vsel %vm1581_vm6, 1.0, %v8092_v38  ;;  %v2038_v12 = vld [vmem:[#allocation2 + $0x101] sm:$0xff] }
 0x22e   : > { %8119 = vst [vmem:[#allocation46_spill] sm:$0xff] %v6100_v62  ;;  %v6137_v0 = vmul.f32 %v6122_v19, %v2034_v37 }
 0x22f   : > { %8120 = vst [vmem:[#allocation47_spill] sm:$0xff] %v6104_v49  ;;  %1887 = vmatmul.f32.gmra.mxu3 %v8121_v1  ;;  %v8125_v1 = vmax.f32 %v5753_v17, 0.0  ;;  %vm1583_vm7 = vcmp.ne.s32.totalorder %v1269_v26, 15  ;;  %v1136_v49 = vand.u32 15, %v1052_v27  ;;  %v6131_v17 = vmul.f32 %v6117_v55, %v2032_v4 }
 0x230   : > { %8122 = vst [vmem:[#allocation48_spill] sm:$0xff] %v6110_v33  ;;  %v6125_v33 = vmul.f32 %v6114_v16, %v2030_v14  ;;  %2345 = vmatmul.f32.gmra.mxu0 %v1659_v51  ;;  %v6128_v47 = vsel %vm1583_vm7, 1.0, %v8092_v38  ;;  %v2684_v14 = vld [vmem:[#allocation2 + $0x111] sm:$0xff]  ;;  %v8134_v4 = vmax.f32 %v5943_v11, 0.0  ;;  %v1054_v11 = vadd.s32 80, %v5669_v35 }
 0x231   : > { %8123 = vst [vmem:[#allocation49_spill] sm:$0xff] %v6114_v16  ;;  %1821 = vmatmul.f32.gmra.mxu1 %v8125_v1  ;;  %v6134_v1 = vsel %vm1585_vm8, 1.0, %v8092_v38  ;;  %v6140_v26 = vmul.f32 %v6128_v47, %v2036_v41  ;;  %1931 = vmatmul.f32.gmra.mxu2 %v1659_v51  ;;  %vm1468_vm9 = vcmp.ne.s32.totalorder %v1136_v49, 0  ;;  %v8135_v41 = vmax.f32 %v5757_v60, 0.0  ;;  %v2086_v49 = vld [vmem:[#allocation8 + $0x170] sm:$0xff]  ;;  %v2499_v51 = vld [vmem:[#allocation8 + $0x238] sm:$0xff] }
 0x232   : > { %8124 = vst [vmem:[#allocation50_spill] sm:$0xff] %v6117_v55  ;;  %v6143_v27 = vmul.f32 %v6134_v1, %v2038_v12  ;;  %v6146_v5 = vmul.f32 %v6134_v1, %v2684_v14  ;;  %v6157_v14 = vld [vmem:[#allocation2 + $0xcf] sm:$0xff]  ;;  %2516 = vmatpush.msrb.mxu1 %v2499_v51  ;;  %v8137_v60 = vmax.f32 %v5763_v56, 0.0  ;;  %v2081_v56 = vld [vmem:[#allocation8 + $0x148] sm:$0xff]  ;;  %v2498_v51 = vld [vmem:[#allocation8 + $0x230] sm:$0xff]  ;;  %vm4120_vm7 = vcmask 64512  }
 0x233   : > { %8126 = vst [vmem:[#allocation51_spill] sm:$0xff] %v6125_v33  ;;  %v1660_v33 = vld [vmem:[#allocation2 + $0x47] sm:$0xff] }
 0x234   : > { %8127 = vst [vmem:[#allocation52_spill] sm:$0xff] %v6128_v47  ;;  %v2271_v37 = vmul.f32 %v6078_v23, %v1660_v33  ;;  %2517 = vmatpush.msrb.mxu1 %v2498_v51  ;;  %v1663_v51 = vld [vmem:[#allocation2 + $0x5f] sm:$0xff]  ;;  %v1672_v23 = vld [vmem:[#allocation2 + $0xa7] sm:$0xff] }
 0x235   : > { %8128 = vst [vmem:[#allocation53_spill] sm:$0xff] %v6131_v17  ;;  %v2087_v17 = vld [vmem:[#allocation8 + $0x178] sm:$0xff] }
 0x236   : > { %8129 = vst [vmem:[#allocation54_spill] sm:$0xff] %v6134_v1  ;;  %2088 = vmatpush.msrb.mxu3 %v2087_v17  ;;  %v2085_v17 = vld [vmem:[#allocation8 + $0x168] sm:$0xff] }
 0x237   : > { %8130 = vst [vmem:[#allocation55_spill] sm:$0xff] %v6137_v0  ;;  %1890 = vmatmul.f32.gmra.mxu3 %v8134_v4  ;;  %v2084_v4 = vld [vmem:[#allocation8 + $0x160] sm:$0xff]  ;;  %v2959_v0 = vld [vmem:[#allocation8 + $0x378] sm:$0xff]  ;;  %v2723_v1 = vld [vmem:[#allocation8 + $0x2a8] sm:$0xff] }
 0x238   : > { %8131 = vst [vmem:[#allocation56_spill] sm:$0xff] %v6140_v26  ;;  %v6154_v26 = vsel %vm1468_vm9, 1.0, %v8092_v38  ;;  %2348 = vmatmul.f32.gmra.mxu0 %v2271_v37  ;;  %2089 = vmatpush.msrb.mxu3 %v2086_v49  ;;  %v6163_v37 = vld [vmem:[#allocation2 + $0xd7] sm:$0xff]  ;;  %v2082_v49 = vld [vmem:[#allocation8 + $0x150] sm:$0xff] }
 0x239   : > { %8132 = vst [vmem:[#allocation57_spill] sm:$0xff] %v6143_v27  ;;  %1824 = vmatmul.f32.gmra.mxu1 %v8135_v41  ;;  %v1692_v12 = vmul.f32 %v6154_v26, %v1660_v33  ;;  %v1661_v41 = vld [vmem:[#allocation2 + $0x4f] sm:$0xff]  ;;  %v1150_v33 = vand.u32 15, %v1054_v11  ;;  %v1662_v27 = vld [vmem:[#allocation2 + $0x57] sm:$0xff] }
 0x23a   : > { %8133 = vst [vmem:[#allocation58_spill] sm:$0xff] %v6146_v5  ;;  %2090 = vmatpush.msrb.mxu3 %v2085_v17  ;;  %v1710_v5 = vmul.f32 %v5991_v46, %v6163_v37  ;;  %v8138_v17 = vmax.f32 %v5773_v29, 0.0  ;;  %v2080_v11 = vld [vmem:[#allocation8 + $0x140] sm:$0xff]  ;;  %v1056_v29 = vadd.s32 96, %v5669_v35 }
 0x23b   : > { %8136 = vst [vmem:[#allocation59_spill] sm:$0xff] %v6154_v26  ;;  %1934 = vmatmul.f32.gmra.mxu2 %v1692_v12  ;;  %v2083_v12 = vld [vmem:[#allocation8 + $0x158] sm:$0xff]  ;;  %vm1470_vm10 = vcmp.ne.s32.totalorder %v1150_v33, 0  ;;  %v2078_v33 = vld [vmem:[#allocation8 + $0x130] sm:$0xff] }
 0x23c   : > { %2091 = vmatpush.msrb.mxu3 %v2084_v4  ;;  %v6171_v4 = vsel %vm1470_vm10, 1.0, %v8092_v38 }
 0x23d   : > { %8139 = vst [vmem:[#allocation60_spill] sm:$0xff] %v6171_v4 }
 0x23e   : > { %2092 = vmatpush.msrb.mxu3 %v2083_v12  ;;  %v2079_v12 = vld [vmem:[#allocation8 + $0x138] sm:$0xff] }
 0x23f   : > { %1985 = vmatmul.f32.vlgmr.msra.gmra.mxu3 %v6157_v14 }
 0x240   : > { %2351 = vmatmul.f32.gmra.mxu0 %v1661_v41  ;;  %2093 = vmatpush.msrb.mxu3 %v2082_v49  ;;  %v2077_v49 = vld [vmem:[#allocation8 + $0x128] sm:$0xff] }
 0x241   : > { %1827 = vmatmul.f32.gmra.mxu1 %v8137_v60  ;;  %v2273_v60 = vmul.f32 %v6154_v26, %v1662_v27  ;;  %v6260_v26 = vld [vmem:[#allocation2 + $0x29] sm:$0xff] }
 0x242   : > { %2094 = vmatpush.msrb.mxu3 %v2081_v56  ;;  %v2076_v56 = vld [vmem:[#allocation8 + $0x120] sm:$0xff] }
 0x243   : > { %1937 = vmatmul.f32.gmra.mxu2 %v1661_v41  ;;  %v6174_v41 = vld [vmem:[#allocation2 + $0xdf] sm:$0xff] }
 0x244   : > { %2095 = vmatpush.msrb.mxu3 %v2080_v11  ;;  %v1712_v11 = vmul.f32 %v6006_v15, %v6008_v8 }
 0x246   : > { %2096 = vmatpush.msrb.mxu3 %v2079_v12  ;;  %v1664_v12 = vld [vmem:[#allocation2 + $0x67] sm:$0xff] }
 0x247   : > { %1988 = vmatmul.f32.gmra.mxu3 %v1710_v5  ;;  %v1694_v5 = vmul.f32 %v6171_v4, %v1662_v27  ;;  %v2075_v27 = vld [vmem:[#allocation8 + $0x118] sm:$0xff] }
 0x248   : > { %2354 = vmatmul.f32.gmra.mxu0 %v2273_v60  ;;  %2097 = vmatpush.msrb.mxu3 %v2078_v33  ;;  %v1164_v60 = vand.u32 15, %v1056_v29  ;;  %v2074_v33 = vld [vmem:[#allocation8 + $0x110] sm:$0xff]  ;;  %v8141_v29 = vmax.f32 %v5792_v63, 0.0  ;;  %v8143_v63 = vmax.f32 %v5800_v20, 0.0  ;;  %v8145_v20 = vmax.f32 %v5810_v58, 0.0 }
 0x249   : > { %1830 = vmatmul.f32.gmra.mxu1 %v8138_v17  ;;  %v8140_v17 = vmax.f32 %v5783_v18, 0.0  ;;  %v2073_v18 = vld [vmem:[#allocation8 + $0x108] sm:$0xff]  ;;  %v8147_v58 = vmax.f32 %v5818_v6, 0.0 }
 0x24a   : > { %2098 = vmatpush.msrb.mxu3 %v2077_v49  ;;  %vm1472_vm11 = vcmp.ne.s32.totalorder %v1164_v60, 0  ;;  %v2275_v49 = vmul.f32 %v6171_v4, %v1664_v12  ;;  %v2729_v4 = vld [vmem:[#allocation8 + $0x2d8] sm:$0xff] }
 0x24b   : > { %1940 = vmatmul.f32.gmra.mxu2 %v1694_v5  ;;  %v1074_v5 = vadd.s32 240, %v5669_v35  ;;  %v6187_v8 = vsel %vm1472_vm11, 1.0, %v8092_v38 }
 0x24c   : > { %2099 = vmatpush.msrb.mxu3 %v2076_v56  ;;  %v2072_v56 = vld [vmem:[#allocation8 + $0x100] sm:$0xff]  ;;  %8142 = vst [vmem:[#allocation61_spill] sm:$0xff] %v6187_v8  ;;  %v1696_v60 = vmul.f32 %v6187_v8, %v1664_v12 }
 0x24e   : > { %2100 = vmatpush.msrb.mxu3 %v2075_v27  ;;  %v6190_v27 = vld [vmem:[#allocation2 + $0xef] sm:$0xff] }
 0x24f   : > { %1991 = vmatmul.f32.gmra.mxu3 %v6174_v41 }
 0x250   : > { %2357 = vmatmul.f32.gmra.mxu0 %v1663_v51  ;;  %2101 = vmatpush.msrb.mxu3 %v2074_v33  ;;  %v1665_v33 = vld [vmem:[#allocation2 + $0x6f] sm:$0xff] }
 0x251   : > { %1833 = vmatmul.f32.gmra.mxu1 %v8140_v17  ;;  %v2497_v17 = vld [vmem:[#allocation8 + $0x228] sm:$0xff] }
 0x252   : > { %2518 = vmatpush.msrb.mxu1 %v2497_v17  ;;  %2102 = vmatpush.msrb.mxu3 %v2073_v18  ;;  %v1666_v18 = vld [vmem:[#allocation2 + $0x77] sm:$0xff] }
 0x253   : > { %1943 = vmatmul.f32.gmra.mxu2 %v1663_v51  ;;  %v1290_v51 = vand.u32 15, %v1074_v5 }
 0x254   : > { %2103 = vmatpush.msrb.mxu3 %v2072_v56  ;;  %v6204_v56 = vld [vmem:[#allocation2] sm:$0xff] }
 0x255   : > { %vm1490_vm12 = vcmp.ne.s32.totalorder %v1290_v51, 0 }
 0x256   : > { %v6197_v17 = vsel %vm1490_vm12, 1.0, %v8092_v38  ;;  %2960 = vmatpush.msra.mxu3 %v2959_v0 }
 0x257   : > { %1994 = vmatmul.f32.gmra.mxu3 %v1712_v11  ;;  %v1058_v11 = vadd.s32 112, %v5669_v35  ;;  %8144 = vst [vmem:[#allocation62_spill] sm:$0xff] %v6197_v17  ;;  %v1714_v12 = vmul.f32 %v6197_v17, %v6024_v21  ;;  %v6210_v21 = vld [vmem:[#allocation2 + $0xff] sm:$0xff] }
 0x258   : > { %2360 = vmatmul.f32.gmra.mxu0 %v2275_v49  ;;  %v2496_v49 = vld [vmem:[#allocation8 + $0x220] sm:$0xff] }
 0x259   : > { %1836 = vmatmul.f32.gmra.mxu1 %v8141_v29  ;;  %v1178_v5 = vand.u32 15, %v1058_v11  ;;  %v2277_v29 = vmul.f32 %v6187_v8, %v1666_v18  ;;  %v1060_v11 = vadd.s32 128, %v5669_v35  ;;  %v1064_v8 = vadd.s32 160, %v5669_v35 }
 0x25a   : > { %2519 = vmatpush.msrb.mxu1 %v2496_v49  ;;  %v1668_v49 = vld [vmem:[#allocation2 + $0x87] sm:$0xff] }
 0x25b   : > { %1946 = vmatmul.f32.gmra.mxu2 %v1696_v60  ;;  %vm1474_vm13 = vcmp.ne.s32.totalorder %v1178_v5, 0  ;;  %v2495_v5 = vld [vmem:[#allocation8 + $0x218] sm:$0xff] }
 0x25c   : > { %v6207_v38 = vsel %vm1474_vm13, 1.0, %v6204_v56  ;;  %2520 = vmatpush.msrb.mxu1 %v2495_v5 }
 0x25d   : > { %8146 = vst [vmem:[#allocation63_spill] sm:$0xff] %v6207_v38  ;;  %v1698_v51 = vmul.f32 %v6207_v38, %v1666_v18 }
 0x25f   : > { %1997 = vmatmul.f32.gmra.mxu3 %v6190_v27 }
 0x260   : > { %2363 = vmatmul.f32.gmra.mxu0 %v1665_v33 }
 0x261   : > { %1839 = vmatmul.f32.gmra.mxu1 %v8143_v63  ;;  %v1667_v63 = vld [vmem:[#allocation2 + $0x7f] sm:$0xff] }
 0x263   : > { %1949 = vmatmul.f32.gmra.mxu2 %v1665_v33  ;;  %v1192_v33 = vand.u32 15, %v1060_v11 }
 0x265   : > { %vm1476_vm14 = vcmp.ne.s32.totalorder %v1192_v33, 0  ;;  %v2494_v33 = vld [vmem:[#allocation8 + $0x210] sm:$0xff] }
 0x266   : > { %v6224_v6 = vsel %vm1476_vm14, 1.0, %v6204_v56  ;;  %2521 = vmatpush.msrb.mxu1 %v2494_v33 }
 0x267   : > { %2000 = vmatmul.f32.gmra.mxu3 %v1714_v12  ;;  %v2007_v12 = vld [vmem:[#allocation2 + $0x9] sm:$0xff]  ;;  %8149 = vst [vmem:[#allocation64_spill] sm:$0xff] %v6224_v6  ;;  %v1700_v11 = vmul.f32 %v6224_v6, %v1668_v49 }
 0x268   : > { %2366 = vmatmul.f32.gmra.mxu0 %v2277_v29  ;;  %v2279_v29 = vmul.f32 %v6207_v38, %v1668_v49  ;;  %v1670_v49 = vld [vmem:[#allocation2 + $0x97] sm:$0xff] }
 0x269   : > { %1842 = vmatmul.f32.gmra.mxu1 %v8145_v20  ;;  %v8148_v20 = vmax.f32 %v5827_v57, 0.0  ;;  %v8150_v57 = vmax.f32 %v5830_v22, 0.0  ;;  %v8151_v22 = vmax.f32 %v5850_v36, 0.0  ;;  %v2493_v38 = vld [vmem:[#allocation8 + $0x208] sm:$0xff]  ;;  %v2730_v36 = vld [vmem:[#allocation8 + $0x2e0] sm:$0xff] }
 0x26a   : > { %2522 = vmatpush.msrb.mxu1 %v2493_v38 }
 0x26b   : > { %1952 = vmatmul.f32.gmra.mxu2 %v1698_v51  ;;  %v2008_v51 = vld [vmem:[#allocation2 + $0x11] sm:$0xff] }
 0x26d   : > { %v6212_v60 = vpop.f32.mrf.mxu1 }
 0x26f   : > { %2003 = vmatmul.f32.gmra.mxu3 %v6210_v21 }
 0x270   : > { %2369 = vmatmul.f32.gmra.mxu0 %v1667_v63 }
 0x271   : > { %1845 = vmatmul.f32.gmra.mxu1 %v8147_v58  ;;  %v2040_v58 = vmul.f32 %v5970_v25, %v2008_v51  ;;  %v2733_v51 = vld [vmem:[#allocation8 + $0x2f8] sm:$0xff] }
 0x272   : > { %2734 = vmatpush.msrb.mxu2 %v2733_v51 }
 0x273   : > { %1955 = vmatmul.f32.gmra.mxu2 %v1667_v63  ;;  %v1062_v63 = vadd.s32 144, %v5669_v35 }
 0x275   : > { %v6218_v18 = vpop.f32.mrf.mxu1  ;;  %v1206_v15 = vand.u32 15, %v1062_v63 }
 0x277   : > { %2104 = vmatmul.f32.vlgmr.msrb.gmra.mxu3 %v2007_v12  ;;  %v6229_v12 = vpop.f32.mrf.mxu2  ;;  %vm1478_vm15 = vcmp.ne.s32.totalorder %v1206_v15, 0  ;;  %v2731_v15 = vld [vmem:[#allocation8 + $0x2e8] sm:$0xff] }
 0x278   : > { %2372 = vmatmul.f32.gmra.mxu0 %v2279_v29  ;;  %v6233_v29 = vld [vmem:[#allocation2 + $0x19] sm:$0xff]  ;;  %v6244_v63 = vsel %vm1478_vm15, 1.0, %v6204_v56 }
 0x279   : > { %1848 = vmatmul.f32.gmra.mxu1 %v8148_v20  ;;  %v1669_v20 = vld [vmem:[#allocation2 + $0x8f] sm:$0xff]  ;;  %8152 = vst [vmem:[#allocation65_spill] sm:$0xff] %v6244_v63  ;;  %v1702_v51 = vmul.f32 %v6244_v63, %v1670_v49 }
 0x27b   : > { %1958 = vmatmul.f32.gmra.mxu2 %v1700_v11 }
 0x27d   : > { %v1804_v5 = vpop.f32.mrf.mxu1 }
 0x27f   : > { %2107 = vmatmul.f32.gmra.mxu3 %v2040_v58  ;;  %v2281_v58 = vmul.f32 %v6224_v6, %v1670_v49  ;;  %v6241_v33 = vpop.f32.mrf.mxu2  ;;  %v2042_v6 = vmul.f32 %v5994_v54, %v5972_v30  ;;  %v2726_v54 = vld [vmem:[#allocation8 + $0x2c0] sm:$0xff] }
 0x280   : > { %2375 = vmatmul.f32.gmra.mxu0 %v1669_v20 }
 0x281   : > { %1851 = vmatmul.f32.gmra.mxu1 %v8150_v57 }
 0x283   : > { %1961 = vmatmul.f32.gmra.mxu2 %v1669_v20  ;;  %v2732_v20 = vld [vmem:[#allocation8 + $0x2f0] sm:$0xff] }
 0x284   : > { %2735 = vmatpush.msrb.mxu2 %v2732_v20  ;;  %v1671_v20 = vld [vmem:[#allocation2 + $0x9f] sm:$0xff] }
 0x285   : > { %v1807_v46 = vpop.f32.mrf.mxu1  ;;  %v6236_v11 = vpop.f32.mrf.mxu0 }
 0x286   : > { %v6246_v57 = vpop.f32.mrf.mxu3  ;;  %2736 = vmatpush.msrb.mxu2 %v2731_v15  ;;  %v1220_v15 = vand.u32 15, %v1064_v8  ;;  %v2283_v8 = vmul.f32 %v6244_v63, %v1672_v23  ;;  %v2719_v63 = vld [vmem:[#allocation8 + $0x288] sm:$0xff] }
 0x287   : > { %2110 = vmatmul.f32.gmra.mxu3 %v6233_v29 }
 0x288   : > { %2378 = vmatmul.f32.gmra.mxu0 %v2281_v58  ;;  %2737 = vmatpush.msrb.mxu2 %v2730_v36  ;;  %v8154_v58 = vmax.f32 %v5859_v39, 0.0  ;;  %vm1480_vm0 = vcmp.ne.s32.totalorder %v1220_v15, 0  ;;  %v2725_v39 = vld [vmem:[#allocation8 + $0x2b8] sm:$0xff]  ;;  %v2724_v15 = vld [vmem:[#allocation8 + $0x2b0] sm:$0xff] }
 0x289   : > { %1854 = vmatmul.f32.gmra.mxu1 %v8151_v22 }
 0x28a   : > { %2738 = vmatpush.msrb.mxu2 %v2729_v4  ;;  %v2492_v4 = vld [vmem:[#allocation8 + $0x200] sm:$0xff] }
 0x28b   : > { %1964 = vmatmul.f32.gmra.mxu2 %v1702_v51  ;;  %v2728_v51 = vld [vmem:[#allocation8 + $0x2d0] sm:$0xff]  ;;  %2523 = vmatpush.msrb.mxu1 %v2492_v4  ;;  %v2722_v4 = vld [vmem:[#allocation8 + $0x2a0] sm:$0xff] }
 0x28c   : > { %v1917_v38 = vpop.f32.mrf.mxu2  ;;  %2739 = vmatpush.msrb.mxu2 %v2728_v51  ;;  %v6271_v51 = vsel %vm1480_vm0, 1.0, %v6204_v56 }
 0x28d   : > { %v1810_v22 = vpop.f32.mrf.mxu1  ;;  %v6252_v25 = vpop.f32.mrf.mxu0  ;;  %v6258_v30 = vadd.f32 %v1917_v38, %v1804_v5  ;;  %8157 = vst [vmem:[#allocation68_spill] sm:$0xff] %v6271_v51 }
 0x28e   : > { %8153 = vst [vmem:[#allocation66_spill] sm:$0xff] %v6252_v25  ;;  %v6256_v49 = vpop.f32.mrf.mxu3 }
 0x28f   : > { %2113 = vmatmul.f32.gmra.mxu3 %v2042_v6  ;;  %v2727_v6 = vld [vmem:[#allocation8 + $0x2c8] sm:$0xff] }
 0x290   : > { %2381 = vmatmul.f32.gmra.mxu0 %v1671_v20  ;;  %2740 = vmatpush.msrb.mxu2 %v2727_v6 }
 0x291   : > { %1857 = vmatmul.f32.gmra.mxu1 %v8154_v58  ;;  %v8156_v58 = vmax.f32 %v5871_v48, 0.0  ;;  %v2044_v48 = vmul.f32 %v6001_v53, %v5996_v32  ;;  %v3379_v53 = vld [vmem:[#allocation8 + $0x478] sm:$0xff] }
 0x292   : > { %2741 = vmatpush.msrb.mxu2 %v2726_v54  ;;  %v1704_v54 = vmul.f32 %v6271_v51, %v1672_v23  ;;  %3380 = vmatpush.msra.mxu1 %v3379_v53 }
 0x293   : > { %1967 = vmatmul.f32.gmra.mxu2 %v1671_v20 }
 0x294   : > { %v1920_v38 = vpop.f32.mrf.mxu2  ;;  %2742 = vmatpush.msrb.mxu2 %v2725_v39  ;;  %v1066_v39 = vadd.s32 176, %v5669_v35 }
 0x295   : > { %v6262_v36 = vpop.f32.mrf.mxu1  ;;  %v6265_v5 = vpop.f32.mrf.mxu0  ;;  %v6275_v20 = vadd.f32 %v1920_v38, %v1807_v46  ;;  %v2721_v46 = vld [vmem:[#allocation8 + $0x298] sm:$0xff] }
 0x296   : > { %8155 = vst [vmem:[#allocation67_spill] sm:$0xff] %v6265_v5  ;;  %v6273_v6 = vpop.f32.mrf.mxu3  ;;  %2743 = vmatpush.msrb.mxu2 %v2724_v15  ;;  %v1673_v15 = vld [vmem:[#allocation2 + $0xaf] sm:$0xff]  ;;  %v2957_v5 = vld [vmem:[#allocation8 + $0x368] sm:$0xff] }
 0x297   : > { %2116 = vmatmul.f32.gmra.mxu3 %v6260_v26 }
 0x298   : > { %2384 = vmatmul.f32.gmra.mxu0 %v2283_v8  ;;  %2744 = vmatpush.msrb.mxu2 %v2723_v1  ;;  %v8159_v8 = vmax.f32 %v5881_v10, 0.0  ;;  %v1234_v1 = vand.u32 15, %v1066_v39  ;;  %v1674_v10 = vld [vmem:[#allocation2 + $0xb7] sm:$0xff]  ;;  %v6294_v39 = vld [vmem:[#allocation2 + $0xc0] sm:$0xff] }
 0x299   : > { %1860 = vmatmul.f32.gmra.mxu1 %v8156_v58  ;;  %8161 = vst [vmem:[#allocation71_spill] sm:$0xff] %v6294_v39 }
 0x29a   : > { %2745 = vmatpush.msrb.mxu2 %v2722_v4  ;;  %v2718_v4 = vld [vmem:[#allocation8 + $0x280] sm:$0xff]  ;;  %vm1482_vm1 = vcmp.ne.s32.totalorder %v1234_v1, 0 }
 0x29b   : > { %1970 = vmatmul.f32.gmra.mxu2 %v1704_v54  ;;  %v2720_v54 = vld [vmem:[#allocation8 + $0x290] sm:$0xff] }
 0x29c   : > { %v1923_v0 = vpop.f32.mrf.mxu2  ;;  %2746 = vmatpush.msrb.mxu2 %v2721_v46  ;;  %v2285_v46 = vmul.f32 %v6271_v51, %v1674_v10  ;;  %v1068_v51 = vadd.s32 192, %v5669_v35 }
 0x29d   : > { %v1816_v58 = vpop.f32.mrf.mxu1  ;;  %v6281_v38 = vpop.f32.mrf.mxu0  ;;  %v6287_v32 = vadd.f32 %v1923_v0, %v1810_v22  ;;  %v6299_v0 = vsel %vm1482_vm1, 1.0, %v6204_v56 }
 0x29e   : > { %8158 = vst [vmem:[#allocation69_spill] sm:$0xff] %v6281_v38  ;;  %v6285_v23 = vpop.f32.mrf.mxu3  ;;  %2747 = vmatpush.msrb.mxu2 %v2720_v54  ;;  %v6289_v38 = vld [vmem:[#allocation2 + $0x39] sm:$0xff]  ;;  %v1706_v1 = vmul.f32 %v6299_v0, %v1674_v10  ;;  %v1248_v10 = vand.u32 15, %v1068_v51 }
 0x29f   : > { %2119 = vmatmul.f32.gmra.mxu3 %v2044_v48  ;;  %v3153_v48 = vld [vmem:[#allocation8 + $0x3f8] sm:$0xff]  ;;  %8162 = vst [vmem:[#allocation72_spill] sm:$0xff] %v6299_v0 }
 0x2a0   : > { %2387 = vmatmul.f32.gmra.mxu0 %v1673_v15  ;;  %2748 = vmatpush.msrb.mxu2 %v2719_v63  ;;  %vm1484_vm2 = vcmp.ne.s32.totalorder %v1248_v10, 0  ;;  %v2048_v10 = vmul.f32 %v6035_v43, %v6013_v9  ;;  %v6343_v9 = vld [vmem:[#allocation2 + $0x59] sm:$0xff] }
 0x2a1   : > { %1863 = vmatmul.f32.gmra.mxu1 %v8159_v8  ;;  %3154 = vmatpush.msra.mxu0 %v3153_v48  ;;  %v2046_v48 = vmul.f32 %v6011_v34, %v6003_v7  ;;  %v3152_v7 = vld [vmem:[#allocation8 + $0x3f0] sm:$0xff]  ;;  %v6326_v51 = vsel %vm1484_vm2, 1.0, %v6204_v56 }
 0x2a2   : > { %2749 = vmatpush.msrb.mxu2 %v2718_v4  ;;  %v3378_v34 = vld [vmem:[#allocation8 + $0x470] sm:$0xff]  ;;  %8166 = vst [vmem:[#allocation76_spill] sm:$0xff] %v6326_v51 }
 0x2a3   : > { %1973 = vmatmul.f32.gmra.mxu2 %v1673_v15  ;;  %v2958_v15 = vld [vmem:[#allocation8 + $0x370] sm:$0xff]  ;;  %3155 = vmatpush.msra.mxu0 %v3152_v7 }
 0x2a4   : > { %v1926_v53 = vpop.f32.mrf.mxu2  ;;  %2961 = vmatpush.msra.mxu3 %v2958_v15  ;;  %3381 = vmatpush.msra.mxu1 %v3378_v34  ;;  %v6552_v43 = vld [vmem:[#allocation2 + $0xa0] sm:$0xff] }
 0x2a5   : > { %v1819_v8 = vpop.f32.mrf.mxu1  ;;  %v6292_v22 = vpop.f32.mrf.mxu0  ;;  %v6304_v63 = vadd.f32 %v1926_v53, %v6262_v36 }
 0x2a6   : > { %8160 = vst [vmem:[#allocation70_spill] sm:$0xff] %v6292_v22  ;;  %v6301_v54 = vpop.f32.mrf.mxu3  ;;  %2962 = vmatpush.msra.mxu3 %v2957_v5 }
 0x2a7   : > { %2122 = vmatmul.f32.gmra.mxu3 %v6289_v38 }
 0x2a8   : > { %2390 = vmatmul.f32.gmra.mxu0 %v2285_v46  ;;  %v1675_v46 = vld [vmem:[#allocation2 + $0xbf] sm:$0xff] }
 0x2a9   : > { %1866 = vmatmul.f32.gmra.mxu1 %v6294_v39  ;;  %v6312_v39 = vld [vmem:[#allocation2 + $0xc8] sm:$0xff] }
 0x2aa   : > { %8164 = vst [vmem:[#allocation74_spill] sm:$0xff] %v6312_v39 }
 0x2ab   : > { %1976 = vmatmul.f32.gmra.mxu2 %v1706_v1  ;;  %v6319_v1 = vld [vmem:[#allocation2 + $0x49] sm:$0xff] }
 0x2ac   : > { %v1929_v36 = vpop.f32.mrf.mxu2 }
 0x2ad   : > { %v6310_v22 = vpop.f32.mrf.mxu0  ;;  %v6317_v15 = vadd.f32 %v1929_v36, %v1816_v58 }
 0x2ae   : > { %v1822_v4 = vpop.f32.mrf.mxu1  ;;  %8163 = vst [vmem:[#allocation73_spill] sm:$0xff] %v6310_v22 }
 0x2af   : > { %2125 = vmatmul.f32.gmra.mxu3 %v2046_v48  ;;  %v1676_v48 = vld [vmem:[#allocation2 + $0xc7] sm:$0xff] }
 0x2b0   : > { %2393 = vmatmul.f32.gmra.mxu0 %v1675_v46  ;;  %v2287_v58 = vmul.f32 %v6299_v0, %v1676_v48 }
 0x2b1   : > { %1869 = vmatmul.f32.gmra.mxu1 %v6312_v39  ;;  %v2459_v39 = vld [vmem:[#allocation2 + $0x18] sm:$0xff] }
 0x2b2   : > { %v6315_v53 = vpop.f32.mrf.mxu3 }
 0x2b3   : > { %1979 = vmatmul.f32.gmra.mxu2 %v1675_v46  ;;  %v1708_v46 = vmul.f32 %v6326_v51, %v1676_v48  ;;  %v3377_v48 = vld [vmem:[#allocation8 + $0x468] sm:$0xff] }
 0x2b4   : > { %v1932_v36 = vpop.f32.mrf.mxu2  ;;  %3382 = vmatpush.msra.mxu1 %v3377_v48 }
 0x2b5   : > { %v6322_v35 = vpop.f32.mrf.mxu0  ;;  %v6330_v34 = vadd.f32 %v1932_v36, %v1819_v8  ;;  %v3151_v8 = vld [vmem:[#allocation8 + $0x3e8] sm:$0xff] }
 0x2b6   : > { %v1825_v22 = vpop.f32.mrf.mxu1  ;;  %8165 = vst [vmem:[#allocation75_spill] sm:$0xff] %v6322_v35  ;;  %3156 = vmatpush.msra.mxu0 %v3151_v8 }
 0x2b7   : > { %2128 = vmatmul.f32.gmra.mxu3 %v6319_v1 }
 0x2b8   : > { %2396 = vmatmul.f32.gmra.mxu0 %v2287_v58 }
 0x2b9   : > { %2524 = vmatmul.f32.vlgmr.msrb.gmra.mxu1 %v2459_v39  ;;  %v2460_v39 = vld [vmem:[#allocation2 + $0x20] sm:$0xff] }
 0x2ba   : > { %v6328_v7 = vpop.f32.mrf.mxu3 }
 0x2bb   : > { %1982 = vmatmul.f32.gmra.mxu2 %v1708_v46 }
 0x2bd   : > { %v6337_v47 = vpop.f32.mrf.mxu0 }
 0x2be   : > { %v1828_v35 = vpop.f32.mrf.mxu1  ;;  %v1935_v0 = vpop.f32.mrf.mxu2 }
 0x2bf   : > { %2131 = vmatmul.f32.gmra.mxu3 %v2048_v10  ;;  %v6335_v25 = vadd.f32 %v1935_v0, %v1822_v4  ;;  %v6347_v0 = vld [vmem:[#allocation2 + $0x28] sm:$0xff]  ;;  %v2289_v4 = vmul.f32 %v6326_v51, %v6163_v37  ;;  %v2956_v10 = vld [vmem:[#allocation8 + $0x360] sm:$0xff] }
 0x2c0   : > { %2399 = vmatmul.f32.gmra.mxu0 %v6157_v14  ;;  %2963 = vmatpush.msra.mxu3 %v2956_v10  ;;  %v6362_v37 = vld [vmem:[#allocation2 + $0x30] sm:$0xff]  ;;  %v6377_v10 = vld [vmem:[#allocation2 + $0x38] sm:$0xff] }
 0x2c1   : > { %2527 = vmatmul.f32.gmra.mxu1 %v2460_v39  ;;  %v2050_v39 = vmul.f32 %v6059_v28, %v6026_v61  ;;  %v6371_v61 = vld [vmem:[#allocation2 + $0x69] sm:$0xff] }
 0x2c2   : > { %v1986_v56 = vpop.f32.mrf.mxu3 }
 0x2c3   : > { %v6341_v5 = vadd.f32 %v1986_v56, %v6246_v57  ;;  %2750 = vmatmul.f32.vlgmr.msrb.gmra.mxu2 %v6233_v29 }
 0x2c5   : > { %v6357_v29 = vpop.f32.mrf.mxu0 }
 0x2c6   : > { %v1831_v58 = vpop.f32.mrf.mxu1  ;;  %v1938_v14 = vpop.f32.mrf.mxu2  ;;  %8167 = vst [vmem:[#allocation77_spill] sm:$0xff] %v6357_v29 }
 0x2c7   : > { %2134 = vmatmul.f32.gmra.mxu3 %v6343_v9  ;;  %v6352_v36 = vadd.f32 %v1938_v14, %v1825_v22  ;;  %v3376_v14 = vld [vmem:[#allocation8 + $0x460] sm:$0xff] }
 0x2c8   : > { %2402 = vmatmul.f32.gmra.mxu0 %v2289_v4  ;;  %v3150_v4 = vld [vmem:[#allocation8 + $0x3e0] sm:$0xff]  ;;  %3383 = vmatpush.msra.mxu1 %v3376_v14  ;;  %v2052_v14 = vmul.f32 %v6068_v44, %v6051_v52  ;;  %v6498_v44 = vld [vmem:[#allocation2 + $0x80] sm:$0xff] }
 0x2c9   : > { %2530 = vmatmul.f32.gmra.mxu1 %v6347_v0  ;;  %3157 = vmatpush.msra.mxu0 %v3150_v4  ;;  %v2955_v4 = vld [vmem:[#allocation8 + $0x358] sm:$0xff] }
 0x2ca   : > { %v1989_v57 = vpop.f32.mrf.mxu3  ;;  %2964 = vmatpush.msra.mxu3 %v2955_v4  ;;  %v3143_v4 = vld [vmem:[#allocation8 + $0x3a8] sm:$0xff] }
 0x2cb   : > { %v6355_v46 = vadd.f32 %v1989_v57, %v6256_v49  ;;  %2753 = vmatmul.f32.gmra.mxu2 %v5984_v24 }
 0x2cd   : > { %v6373_v57 = vpop.f32.mrf.mxu0 }
 0x2ce   : > { %v1834_v56 = vpop.f32.mrf.mxu1  ;;  %v1941_v22 = vpop.f32.mrf.mxu2  ;;  %8168 = vst [vmem:[#allocation78_spill] sm:$0xff] %v6373_v57 }
 0x2cf   : > { %2137 = vmatmul.f32.gmra.mxu3 %v2050_v39  ;;  %v6365_v48 = vadd.f32 %v1941_v22, %v1828_v35  ;;  %v3149_v35 = vld [vmem:[#allocation8 + $0x3d8] sm:$0xff] }
 0x2d0   : > { %2405 = vmatmul.f32.gmra.mxu0 %v6174_v41 }
 0x2d1   : > { %2533 = vmatmul.f32.gmra.mxu1 %v6362_v37  ;;  %3158 = vmatpush.msra.mxu0 %v3149_v35  ;;  %v3146_v35 = vld [vmem:[#allocation8 + $0x3c0] sm:$0xff] }
 0x2d2   : > { %v1992_v8 = vpop.f32.mrf.mxu3 }
 0x2d3   : > { %v6369_v49 = vadd.f32 %v1992_v8, %v6273_v6  ;;  %2756 = vmatmul.f32.gmra.mxu2 %v6260_v26  ;;  %v3148_v8 = vld [vmem:[#allocation8 + $0x3d0] sm:$0xff]  ;;  %v3147_v26 = vld [vmem:[#allocation8 + $0x3c8] sm:$0xff] }
 0x2d4   : > { %3159 = vmatpush.msra.mxu0 %v3148_v8 }
 0x2d6   : > { %v1837_v24 = vpop.f32.mrf.mxu1  ;;  %v1944_v41 = vpop.f32.mrf.mxu2  ;;  %3160 = vmatpush.msra.mxu0 %v3147_v26  ;;  %v3375_v26 = vld [vmem:[#allocation8 + $0x458] sm:$0xff] }
 0x2d7   : > { %2140 = vmatmul.f32.gmra.mxu3 %v6371_v61  ;;  %v6380_v39 = vadd.f32 %v1944_v41, %v1831_v58  ;;  %v3145_v58 = vld [vmem:[#allocation8 + $0x3b8] sm:$0xff]  ;;  %v6389_v41 = vld [vmem:[#allocation2 + $0x40] sm:$0xff]  ;;  %3384 = vmatpush.msra.mxu1 %v3375_v26 }
 0x2d8   : > { %2408 = vmatmul.f32.gmra.mxu0 %v6018_v31  ;;  %v6391_v31 = vpop.f32.mrf.mxu0  ;;  %v3139_v26 = vld [vmem:[#allocation8 + $0x388] sm:$0xff] }
 0x2d9   : > { %2536 = vmatmul.f32.gmra.mxu1 %v6377_v10  ;;  %3161 = vmatpush.msra.mxu0 %v3146_v35  ;;  %8169 = vst [vmem:[#allocation79_spill] sm:$0xff] %v6391_v31  ;;  %v6400_v35 = vld [vmem:[#allocation2 + $0x79] sm:$0xff] }
 0x2da   : > { %v1995_v6 = vpop.f32.mrf.mxu3  ;;  %v3138_v31 = vld [vmem:[#allocation8 + $0x380] sm:$0xff] }
 0x2db   : > { %v6384_v22 = vadd.f32 %v1995_v6, %v6285_v23  ;;  %2759 = vmatmul.f32.gmra.mxu2 %v6022_v59  ;;  %3162 = vmatpush.msra.mxu0 %v3145_v58  ;;  %v3144_v59 = vld [vmem:[#allocation8 + $0x3b0] sm:$0xff] }
 0x2dc   : > { %v6404_v58 = vld [vmem:[#allocation2 + $0x48] sm:$0xff] }
 0x2dd   : > { %3163 = vmatpush.msra.mxu0 %v3144_v59 }
 0x2de   : > { %v1840_v57 = vpop.f32.mrf.mxu1  ;;  %v1947_v23 = vpop.f32.mrf.mxu2 }
 0x2df   : > { %2143 = vmatmul.f32.gmra.mxu3 %v2052_v14  ;;  %v6394_v8 = vadd.f32 %v1947_v23, %v1834_v56  ;;  %v3142_v14 = vld [vmem:[#allocation8 + $0x3a0] sm:$0xff]  ;;  %3164 = vmatpush.msra.mxu0 %v3143_v4  ;;  %v3141_v56 = vld [vmem:[#allocation8 + $0x398] sm:$0xff]  ;;  %v2954_v4 = vld [vmem:[#allocation8 + $0x350] sm:$0xff] }
 0x2e0   : > { %2411 = vmatmul.f32.gmra.mxu0 %v6190_v27  ;;  %v6407_v23 = vpop.f32.mrf.mxu0  ;;  %2965 = vmatpush.msra.mxu3 %v2954_v4 }
 0x2e1   : > { %2539 = vmatmul.f32.gmra.mxu1 %v6389_v41  ;;  %3165 = vmatpush.msra.mxu0 %v3142_v14  ;;  %8170 = vst [vmem:[#allocation80_spill] sm:$0xff] %v6407_v23  ;;  %v2054_v14 = vmul.f32 %v6071_v40, %v6061_v42  ;;  %v3374_v42 = vld [vmem:[#allocation8 + $0x450] sm:$0xff] }
 0x2e2   : > { %v1998_v6 = vpop.f32.mrf.mxu3  ;;  %3385 = vmatpush.msra.mxu1 %v3374_v42  ;;  %v6446_v42 = vld [vmem:[#allocation2 + $0x60] sm:$0xff] }
 0x2e3   : > { %v6398_v52 = vadd.f32 %v1998_v6, %v6301_v54  ;;  %2762 = vmatmul.f32.gmra.mxu2 %v6289_v38  ;;  %3166 = vmatpush.msra.mxu0 %v3141_v56  ;;  %v3140_v38 = vld [vmem:[#allocation8 + $0x390] sm:$0xff] }
 0x2e5   : > { %3167 = vmatpush.msra.mxu0 %v3140_v38  ;;  %v2263_v38 = vld [vmem:[#allocation2 + $0x107] sm:$0xff] }
 0x2e6   : > { %v1843_v29 = vpop.f32.mrf.mxu1  ;;  %v1950_v27 = vpop.f32.mrf.mxu2 }
 0x2e7   : > { %2146 = vmatmul.f32.gmra.mxu3 %v6400_v35  ;;  %v6409_v6 = vadd.f32 %v1950_v27, %v1837_v24  ;;  %3168 = vmatpush.msra.mxu0 %v3139_v26  ;;  %v6418_v24 = vld [vmem:[#allocation2 + $0x50] sm:$0xff] }
 0x2e8   : > { %2414 = vmatmul.f32.gmra.mxu0 %v6039_v13 }
 0x2e9   : > { %2542 = vmatmul.f32.gmra.mxu1 %v6404_v58  ;;  %3169 = vmatpush.msra.mxu0 %v3138_v31  ;;  %v6433_v31 = vld [vmem:[#allocation2 + $0x58] sm:$0xff] }
 0x2ea   : > { %v2001_v54 = vpop.f32.mrf.mxu3 }
 0x2eb   : > { %v6413_v59 = vadd.f32 %v2001_v54, %v6315_v53  ;;  %2765 = vmatmul.f32.gmra.mxu2 %v6031_v2  ;;  %v6427_v54 = vpop.f32.mrf.mxu0  ;;  %v6429_v2 = vld [vmem:[#allocation2 + $0x89] sm:$0xff] }
 0x2ec   : > { %8171 = vst [vmem:[#allocation81_spill] sm:$0xff] %v6427_v54 }
 0x2ee   : > { %v1846_v51 = vpop.f32.mrf.mxu1  ;;  %v1953_v13 = vpop.f32.mrf.mxu2 }
 0x2ef   : > { %2149 = vmatmul.f32.gmra.mxu3 %v2054_v14  ;;  %v6421_v56 = vadd.f32 %v1953_v13, %v1840_v57  ;;  %v2295_v57 = vmul.f32 %v6197_v17, %v2263_v38  ;;  %v2953_v14 = vld [vmem:[#allocation8 + $0x348] sm:$0xff]  ;;  %v2056_v13 = vmul.f32 %v6091_v50, %v6073_v3  ;;  %v2264_v17 = vld [vmem:[#allocation2 + $0x10f] sm:$0xff] }
 0x2f0   : > { %2417 = vmatmul.f32.gmra.mxu0 %v6210_v21  ;;  %2966 = vmatpush.msra.mxu3 %v2953_v14  ;;  %v6453_v3 = vld [vmem:[#allocation2 + $0x99] sm:$0xff] }
 0x2f1   : > { %2545 = vmatmul.f32.gmra.mxu1 %v6418_v24  ;;  %v8174_v50 = vld [vmem:[#allocation37_spill] sm:$0xff] }
 0x2f2   : > { %v2004_v53 = vpop.f32.mrf.mxu3 }
 0x2f3   : > { %v6425_v27 = vadd.f32 %v2004_v53, %v6328_v7  ;;  %2768 = vmatmul.f32.gmra.mxu2 %v6319_v1  ;;  %v6443_v53 = vpop.f32.mrf.mxu0 }
 0x2f4   : > { %8172 = vst [vmem:[#allocation82_spill] sm:$0xff] %v6443_v53 }
 0x2f6   : > { %v1849_v4 = vpop.f32.mrf.mxu1  ;;  %v1956_v21 = vpop.f32.mrf.mxu2 }
 0x2f7   : > { %2152 = vmatmul.f32.gmra.mxu3 %v6429_v2  ;;  %v6439_v26 = vadd.f32 %v1956_v21, %v1843_v29  ;;  %v3373_v21 = vld [vmem:[#allocation8 + $0x448] sm:$0xff] }
 0x2f8   : > { %2420 = vmatmul.f32.gmra.mxu0 %v2295_v57  ;;  %3386 = vmatpush.msra.mxu1 %v3373_v21 }
 0x2f9   : > { %2548 = vmatmul.f32.gmra.mxu1 %v6433_v31 }
 0x2fa   : > { %v6437_v7 = vpop.f32.mrf.mxu3 }
 0x2fb   : > { %2771 = vmatmul.f32.gmra.mxu2 %v6043_v45  ;;  %v6457_v45 = vld [vmem:[#allocation2 + $0x68] sm:$0xff] }
 0x2fe   : > { %v1852_v1 = vpop.f32.mrf.mxu1  ;;  %v1959_v38 = vpop.f32.mrf.mxu2 }
 0x2ff   : > { %2155 = vmatmul.f32.gmra.mxu3 %v2056_v13  ;;  %v6451_v57 = vadd.f32 %v1959_v38, %v1846_v51  ;;  %v6459_v13 = vpop.f32.mrf.mxu0  ;;  %v2952_v38 = vld [vmem:[#allocation8 + $0x340] sm:$0xff] }
 0x300   : > { %2423 = vmatmul.f32.gmra.mxu0 %v2264_v17  ;;  %8173 = vst [vmem:[#allocation83_spill] sm:$0xff] %v6459_v13  ;;  %2967 = vmatpush.msra.mxu3 %v2952_v38  ;;  %v6470_v13 = vld [vmem:[#allocation2 + $0x70] sm:$0xff] }
 0x301   : > { %2551 = vmatmul.f32.gmra.mxu1 %v6446_v42  ;;  %v6481_v38 = vld [vmem:[#allocation2 + $0xa9] sm:$0xff] }
 0x302   : > { %v6449_v29 = vpop.f32.mrf.mxu3 }
 0x303   : > { %2774 = vmatmul.f32.gmra.mxu2 %v6343_v9  ;;  %v4749_v9 = vld [vmem:[#allocation2 + $0xa1] sm:$0xff] }
 0x304   : > { %v2058_v21 = vmul.f32 %v4749_v9, %v6100_v62  ;;  %v6485_v9 = vld [vmem:[#allocation2 + $0x78] sm:$0xff]  ;;  %v8177_v62 = vld [vmem:[#allocation42_spill] sm:$0xff] }
 0x306   : > { %v1855_v14 = vpop.f32.mrf.mxu1  ;;  %v1962_v53 = vpop.f32.mrf.mxu2 }
 0x307   : > { %2158 = vmatmul.f32.gmra.mxu3 %v6453_v3  ;;  %v6462_v51 = vadd.f32 %v1962_v53, %v1849_v4  ;;  %v6473_v40 = vpop.f32.mrf.mxu0 }
 0x308   : > { %3170 = vmatmul.f32.vlgmr.msra.gmra.mxu0 %v6347_v0  ;;  %8175 = vst [vmem:[#allocation37_spill] sm:$0xff] %v6473_v40 }
 0x309   : > { %2554 = vmatmul.f32.gmra.mxu1 %v6457_v45 }
 0x30a   : > { %v2111_v54 = vpop.f32.mrf.mxu3 }
 0x30b   : > { %v6466_v17 = vadd.f32 %v2111_v54, %v6258_v30  ;;  %2777 = vmatmul.f32.gmra.mxu2 %v8174_v50  ;;  %v3372_v54 = vld [vmem:[#allocation8 + $0x440] sm:$0xff] }
 0x30c   : > { %3387 = vmatpush.msra.mxu1 %v3372_v54 }
 0x30e   : > { %v1858_v23 = vpop.f32.mrf.mxu1  ;;  %v1965_v4 = vpop.f32.mrf.mxu2 }
 0x30f   : > { %2161 = vmatmul.f32.gmra.mxu3 %v2058_v21  ;;  %v6475_v0 = vadd.f32 %v1965_v4, %v1852_v1 }
 0x310   : > { %3173 = vmatmul.f32.gmra.mxu0 %v6362_v37  ;;  %v2951_v37 = vld [vmem:[#allocation8 + $0x338] sm:$0xff] }
 0x311   : > { %2557 = vmatmul.f32.gmra.mxu1 %v6470_v13  ;;  %2968 = vmatpush.msra.mxu3 %v2951_v37  ;;  %v6507_v37 = vld [vmem:[#allocation2 + $0xb9] sm:$0xff] }
 0x312   : > { %v2114_v53 = vpop.f32.mrf.mxu3 }
 0x313   : > { %v6479_v30 = vadd.f32 %v2114_v53, %v6275_v20  ;;  %2780 = vmatmul.f32.gmra.mxu2 %v6371_v61  ;;  %v6494_v53 = vpop.f32.mrf.mxu0  ;;  %v4750_v61 = vld [vmem:[#allocation2 + $0xb1] sm:$0xff] }
 0x314   : > { %8176 = vst [vmem:[#allocation84_spill] sm:$0xff] %v6494_v53  ;;  %v2060_v54 = vmul.f32 %v4750_v61, %v6114_v16  ;;  %v8179_v53 = vld [vmem:[#allocation43_spill] sm:$0xff] }
 0x315   : > { %v6524_v16 = vld [vmem:[#allocation2 + $0x90] sm:$0xff] }
 0x316   : > { %v1861_v50 = vpop.f32.mrf.mxu1  ;;  %v1968_v1 = vpop.f32.mrf.mxu2 }
 0x317   : > { %2164 = vmatmul.f32.gmra.mxu3 %v6481_v38  ;;  %v6488_v4 = vadd.f32 %v1968_v1, %v1855_v14 }
 0x318   : > { %3176 = vmatmul.f32.gmra.mxu0 %v6377_v10 }
 0x319   : > { %2560 = vmatmul.f32.gmra.mxu1 %v6485_v9 }
 0x31a   : > { %v2117_v21 = vpop.f32.mrf.mxu3 }
 0x31b   : > { %v6492_v20 = vadd.f32 %v2117_v21, %v6287_v32  ;;  %2783 = vmatmul.f32.gmra.mxu2 %v8177_v62  ;;  %v3371_v21 = vld [vmem:[#allocation8 + $0x438] sm:$0xff]  ;;  %v6509_v62 = vpop.f32.mrf.mxu0 }
 0x31c   : > { %3388 = vmatpush.msra.mxu1 %v3371_v21  ;;  %8178 = vst [vmem:[#allocation42_spill] sm:$0xff] %v6509_v62  ;;  %v4751_v21 = vld [vmem:[#allocation2 + $0xc1] sm:$0xff] }
 0x31e   : > { %v1864_v40 = vpop.f32.mrf.mxu1  ;;  %v1971_v14 = vpop.f32.mrf.mxu2 }
 0x31f   : > { %2167 = vmatmul.f32.gmra.mxu3 %v2060_v54  ;;  %v6501_v1 = vadd.f32 %v1971_v14, %v1858_v23  ;;  %v6513_v54 = vld [vmem:[#allocation2 + $0x88] sm:$0xff] }
 0x320   : > { %3179 = vmatmul.f32.gmra.mxu0 %v6389_v41 }
 0x321   : > { %2563 = vmatmul.f32.gmra.mxu1 %v6498_v44 }
 0x322   : > { %v2120_v10 = vpop.f32.mrf.mxu3 }
 0x323   : > { %v6505_v32 = vadd.f32 %v2120_v10, %v6304_v63  ;;  %2786 = vmatmul.f32.gmra.mxu2 %v6400_v35  ;;  %v2950_v10 = vld [vmem:[#allocation8 + $0x330] sm:$0xff]  ;;  %v2062_v35 = vmul.f32 %v4751_v21, %v6117_v55  ;;  %v6526_v28 = vpop.f32.mrf.mxu0  ;;  %v6539_v21 = vld [vmem:[#allocation2 + $0x98] sm:$0xff] }
 0x324   : > { %2969 = vmatpush.msra.mxu3 %v2950_v10  ;;  %8180 = vst [vmem:[#allocation43_spill] sm:$0xff] %v6526_v28  ;;  %v6535_v10 = vld [vmem:[#allocation2 + $0xc9] sm:$0xff]  ;;  %v8182_v55 = vld [vmem:[#allocation45_spill] sm:$0xff] }
 0x326   : > { %v1867_v61 = vpop.f32.mrf.mxu1  ;;  %v1974_v23 = vpop.f32.mrf.mxu2 }
 0x327   : > { %2170 = vmatmul.f32.gmra.mxu3 %v6507_v37  ;;  %v6516_v14 = vadd.f32 %v1974_v23, %v1861_v50 }
 0x328   : > { %3182 = vmatmul.f32.gmra.mxu0 %v6404_v58 }
 0x329   : > { %2566 = vmatmul.f32.gmra.mxu1 %v6513_v54 }
 0x32a   : > { %v2123_v41 = vpop.f32.mrf.mxu3 }
 0x32b   : > { %v6520_v63 = vadd.f32 %v2123_v41, %v6317_v15  ;;  %2789 = vmatmul.f32.gmra.mxu2 %v8179_v53  ;;  %v3370_v41 = vld [vmem:[#allocation8 + $0x430] sm:$0xff] }
 0x32c   : > { %3389 = vmatpush.msra.mxu1 %v3370_v41 }
 0x32e   : > { %v1870_v62 = vpop.f32.mrf.mxu1  ;;  %v1977_v50 = vpop.f32.mrf.mxu2 }
 0x32f   : > { %2173 = vmatmul.f32.gmra.mxu3 %v2062_v35  ;;  %v6529_v23 = vadd.f32 %v1977_v50, %v1864_v40  ;;  %v6542_v50 = vpop.f32.mrf.mxu0 }
 0x330   : > { %3185 = vmatmul.f32.gmra.mxu0 %v6418_v24  ;;  %8181 = vst [vmem:[#allocation85_spill] sm:$0xff] %v6542_v50  ;;  %v8187_v50 = vld [vmem:[#allocation47_spill] sm:$0xff] }
 0x331   : > { %2569 = vmatmul.f32.gmra.mxu1 %v6524_v16 }
 0x332   : > { %v2126_v58 = vpop.f32.mrf.mxu3 }
 0x333   : > { %v6533_v15 = vadd.f32 %v2126_v58, %v6330_v34  ;;  %2792 = vmatmul.f32.gmra.mxu2 %v6429_v2  ;;  %v2949_v58 = vld [vmem:[#allocation8 + $0x328] sm:$0xff]  ;;  %v4752_v2 = vld [vmem:[#allocation2 + $0xd1] sm:$0xff] }
 0x334   : > { %2970 = vmatpush.msra.mxu3 %v2949_v58  ;;  %v2064_v41 = vmul.f32 %v4752_v2, %v6122_v19 }
 0x336   : > { %v2525_v53 = vpop.f32.mrf.mxu1  ;;  %v1980_v40 = vpop.f32.mrf.mxu2 }
 0x337   : > { %2176 = vmatmul.f32.gmra.mxu3 %v6535_v10  ;;  %v6544_v24 = vadd.f32 %v1980_v40, %v1867_v61  ;;  %v1912_v61 = vadd.f32 %v6229_v12, %v6212_v60  ;;  %v6564_v2 = vpop.f32.mrf.mxu0 }
 0x338   : > { %3188 = vmatmul.f32.gmra.mxu0 %v6433_v31  ;;  %8183 = vst [vmem:[#allocation45_spill] sm:$0xff] %v6564_v2 }
 0x339   : > { %2572 = vmatmul.f32.gmra.mxu1 %v6539_v21 }
 0x33a   : > { %v2129_v35 = vpop.f32.mrf.mxu3 }
 0x33b   : > { %v6548_v34 = vadd.f32 %v2129_v35, %v6335_v25  ;;  %2795 = vmatmul.f32.gmra.mxu2 %v8182_v55  ;;  %v2201_v25 = vadd.f32 %v6437_v7, %v1912_v61  ;;  %v3369_v55 = vld [vmem:[#allocation8 + $0x428] sm:$0xff]  ;;  %v6571_v7 = vld [vmem:[#allocation2 + $0xa8] sm:$0xff] }
 0x33c   : > { %3390 = vmatpush.msra.mxu1 %v3369_v55  ;;  %v8184_v55 = vld [vmem:[#allocation52_spill] sm:$0xff] }
 0x33d   : > { %v2427_v12 = vadd.f32 %v6236_v11, %v2201_v25  ;;  %v4753_v25 = vld [vmem:[#allocation2 + $0xe1] sm:$0xff] }
 0x33e   : > { %v2528_v28 = vpop.f32.mrf.mxu1  ;;  %v1983_v31 = vpop.f32.mrf.mxu2  ;;  %v2066_v2 = vmul.f32 %v4753_v25, %v8184_v55  ;;  %v2946_v25 = vld [vmem:[#allocation8 + $0x310] sm:$0xff] }
 0x33f   : > { %2179 = vmatmul.f32.gmra.mxu3 %v2064_v41  ;;  %v6558_v35 = vadd.f32 %v1983_v31, %v1870_v62  ;;  %v6566_v41 = vld [vmem:[#allocation2 + $0xd9] sm:$0xff] }
 0x340   : > { %3191 = vmatmul.f32.gmra.mxu0 %v6446_v42  ;;  %v1915_v42 = vadd.f32 %v6241_v33, %v6218_v18  ;;  %v6584_v33 = vpop.f32.mrf.mxu0 }
 0x341   : > { %2575 = vmatmul.f32.gmra.mxu1 %v6552_v43  ;;  %8185 = vst [vmem:[#allocation86_spill] sm:$0xff] %v6584_v33  ;;  %v8194_v33 = vld [vmem:[#allocation71_spill] sm:$0xff] }
 0x342   : > { %v2132_v40 = vpop.f32.mrf.mxu3  ;;  %v2202_v31 = vadd.f32 %v6449_v29, %v1915_v42  ;;  %v6588_v29 = vld [vmem:[#allocation2 + $0xb0] sm:$0xff] }
 0x343   : > { %v6562_v58 = vadd.f32 %v2132_v40, %v6352_v36  ;;  %2798 = vmatmul.f32.gmra.mxu2 %v6453_v3  ;;  %v2621_v36 = vadd.f32 %v2525_v53, %v2427_v12  ;;  %v2948_v3 = vld [vmem:[#allocation8 + $0x320] sm:$0xff]  ;;  %v8186_v53 = vld [vmem:[#allocation66_spill] sm:$0xff] }
 0x344   : > { %2971 = vmatpush.msra.mxu3 %v2948_v3  ;;  %v2428_v12 = vadd.f32 %v8186_v53, %v2202_v31  ;;  %v2947_v3 = vld [vmem:[#allocation8 + $0x318] sm:$0xff]  ;;  %v6603_v53 = vld [vmem:[#allocation2 + $0xb8] sm:$0xff] }
 0x346   : > { %v2531_v60 = vpop.f32.mrf.mxu1  ;;  %v2751_v62 = vpop.f32.mrf.mxu2  ;;  %v2622_v42 = vadd.f32 %v2528_v28, %v2428_v12  ;;  %2972 = vmatpush.msra.mxu3 %v2947_v3  ;;  %v8188_v28 = vld [vmem:[#allocation67_spill] sm:$0xff]  ;;  %v8190_v3 = vld [vmem:[#allocation54_spill] sm:$0xff] }
 0x347   : > { %2182 = vmatmul.f32.gmra.mxu3 %v6566_v41  ;;  %v6577_v40 = vadd.f32 %v2751_v62, %v2621_v36  ;;  %v2429_v31 = vadd.f32 %v8188_v28, %v6466_v17 }
 0x348   : > { %3194 = vmatmul.f32.gmra.mxu0 %v6457_v45  ;;  %2973 = vmatpush.msra.mxu3 %v2946_v25 }
 0x349   : > { %2578 = vmatmul.f32.gmra.mxu1 %v6571_v7 }
 0x34a   : > { %v2135_v61 = vpop.f32.mrf.mxu3 }
 0x34b   : > { %v6581_v11 = vadd.f32 %v2135_v61, %v6365_v48  ;;  %2801 = vmatmul.f32.gmra.mxu2 %v8187_v50  ;;  %v3368_v61 = vld [vmem:[#allocation8 + $0x420] sm:$0xff]  ;;  %v6597_v50 = vld [vmem:[#allocation2 + $0xe9] sm:$0xff] }
 0x34c   : > { %3391 = vmatpush.msra.mxu1 %v3368_v61  ;;  %v4754_v61 = vld [vmem:[#allocation2 + $0xf1] sm:$0xff] }
 0x34d   : > { %v2068_v28 = vmul.f32 %v4754_v61, %v8190_v3  ;;  %v3367_v61 = vld [vmem:[#allocation8 + $0x418] sm:$0xff] }
 0x34e   : > { %v2534_v18 = vpop.f32.mrf.mxu1  ;;  %v2754_v48 = vpop.f32.mrf.mxu2  ;;  %3392 = vmatpush.msra.mxu1 %v3367_v61  ;;  %v8200_v61 = vld [vmem:[#allocation51_spill] sm:$0xff] }
 0x34f   : > { %2185 = vmatmul.f32.gmra.mxu3 %v2066_v2  ;;  %v6591_v36 = vadd.f32 %v2754_v48, %v2622_v42 }
 0x350   : > { %3197 = vmatmul.f32.gmra.mxu0 %v6470_v13  ;;  %v2623_v13 = vadd.f32 %v2531_v60, %v2429_v31  ;;  %v8191_v60 = vld [vmem:[#allocation69_spill] sm:$0xff] }
 0x351   : > { %2581 = vmatmul.f32.gmra.mxu1 %v6588_v29  ;;  %v2430_v31 = vadd.f32 %v8191_v60, %v6479_v30  ;;  %v8197_v60 = vld [vmem:[#allocation74_spill] sm:$0xff] }
 0x352   : > { %v2138_v45 = vpop.f32.mrf.mxu3 }
 0x353   : > { %v6595_v62 = vadd.f32 %v2138_v45, %v6380_v39  ;;  %2804 = vmatmul.f32.gmra.mxu2 %v6481_v38  ;;  %v6605_v39 = vpop.f32.mrf.mxu0  ;;  %v2945_v38 = vld [vmem:[#allocation8 + $0x308] sm:$0xff]  ;;  %v2944_v45 = vld [vmem:[#allocation8 + $0x300] sm:$0xff] }
 0x354   : > { %8189 = vst [vmem:[#allocation66_spill] sm:$0xff] %v6605_v39  ;;  %2974 = vmatpush.msra.mxu3 %v2945_v38  ;;  %v8192_v39 = vld [vmem:[#allocation48_spill] sm:$0xff] }
 0x356   : > { %v2537_v2 = vpop.f32.mrf.mxu1  ;;  %v2757_v12 = vpop.f32.mrf.mxu2  ;;  %2975 = vmatpush.msra.mxu3 %v2944_v45 }
 0x357   : > { %2188 = vmatmul.f32.gmra.mxu3 %v6597_v50  ;;  %v6608_v48 = vadd.f32 %v2757_v12, %v2623_v13  ;;  %v8193_v13 = vld [vmem:[#allocation27_spill] sm:$0xff] }
 0x358   : > { %3200 = vmatmul.f32.gmra.mxu0 %v6485_v9  ;;  %v1075_v12 = vadd.s32 248, %v8193_v13  ;;  %v2624_v9 = vadd.f32 %v2534_v18, %v2430_v31  ;;  %v8196_v18 = vld [vmem:[#allocation70_spill] sm:$0xff] }
 0x359   : > { %2584 = vmatmul.f32.gmra.mxu1 %v6603_v53  ;;  %v6635_v31 = vld [vmem:[#allocation2] sm:$0xff] }
 0x35a   : > { %v2141_v42 = vpop.f32.mrf.mxu3  ;;  %v1297_v30 = vand.u32 15, %v1075_v12 }
 0x35b   : > { %v6612_v17 = vadd.f32 %v2141_v42, %v6394_v8  ;;  %2807 = vmatmul.f32.gmra.mxu2 %v8192_v39  ;;  %v6620_v55 = vpop.f32.mrf.mxu0  ;;  %v6628_v39 = vld [vmem:[#allocation2 + $0xf9] sm:$0xff] }
 0x35c   : > { %8195 = vst [vmem:[#allocation47_spill] sm:$0xff] %v6620_v55  ;;  %vm1587_vm3 = vcmp.ne.s32.totalorder %v1297_v30, 15 }
 0x35d   : > { %v6638_v13 = vsel %vm1587_vm3, 1.0, %v6635_v31 }
 0x35e   : > { %v2540_v25 = vpop.f32.mrf.mxu1  ;;  %v2760_v8 = vpop.f32.mrf.mxu2 }
 0x35f   : > { %2191 = vmatmul.f32.gmra.mxu3 %v2068_v28  ;;  %v6622_v38 = vadd.f32 %v2760_v8, %v2624_v9  ;;  %v4756_v9 = vld [vmem:[#allocation2 + $0x101] sm:$0xff] }
 0x360   : > { %3203 = vmatmul.f32.gmra.mxu0 %v6498_v44 }
 0x361   : > { %2587 = vmatmul.f32.gmra.mxu1 %v8194_v33  ;;  %v2431_v33 = vadd.f32 %v8196_v18, %v6492_v20  ;;  %v6652_v18 = vld [vmem:[#allocation2 + $0xd0] sm:$0xff] }
 0x362   : > { %v2144_v42 = vpop.f32.mrf.mxu3 }
 0x363   : > { %v6626_v45 = vadd.f32 %v2144_v42, %v6409_v6  ;;  %2810 = vmatmul.f32.gmra.mxu2 %v6507_v37  ;;  %v2625_v28 = vadd.f32 %v2537_v2, %v2431_v33  ;;  %v6646_v37 = vpop.f32.mrf.mxu0  ;;  %v2070_v2 = vmul.f32 %v4756_v9, %v6638_v13  ;;  %v8199_v42 = vld [vmem:[#allocation73_spill] sm:$0xff]  ;;  %v8202_v9 = vld [vmem:[#allocation75_spill] sm:$0xff] }
 0x364   : > { %8198 = vst [vmem:[#allocation67_spill] sm:$0xff] %v6646_v37  ;;  %v2432_v30 = vadd.f32 %v8199_v42, %v6505_v32  ;;  %v6669_v42 = vld [vmem:[#allocation2 + $0xd8] sm:$0xff] }
 0x366   : > { %v2543_v3 = vpop.f32.mrf.mxu1  ;;  %v2763_v44 = vpop.f32.mrf.mxu2  ;;  %v2626_v33 = vadd.f32 %v2540_v25, %v2432_v30  ;;  %v2433_v25 = vadd.f32 %v8202_v9, %v6520_v63 }
 0x367   : > { %2194 = vmatmul.f32.gmra.mxu3 %v6628_v39  ;;  %v6640_v12 = vadd.f32 %v2763_v44, %v2625_v28  ;;  %v3366_v44 = vld [vmem:[#allocation8 + $0x410] sm:$0xff] }
 0x368   : > { %3206 = vmatmul.f32.gmra.mxu0 %v6513_v54  ;;  %3393 = vmatpush.msra.mxu1 %v3366_v44  ;;  %v2627_v30 = vadd.f32 %v2543_v3, %v2433_v25  ;;  %v6683_v3 = vld [vmem:[#allocation2 + $0xe0] sm:$0xff] }
 0x369   : > { %2590 = vmatmul.f32.gmra.mxu1 %v8197_v60 }
 0x36a   : > { %v2147_v6 = vpop.f32.mrf.mxu3 }
 0x36b   : > { %v6644_v20 = vadd.f32 %v2147_v6, %v6421_v56  ;;  %2813 = vmatmul.f32.gmra.mxu2 %v8200_v61  ;;  %v6663_v6 = vpop.f32.mrf.mxu0 }
 0x36c   : > { %8201 = vst [vmem:[#allocation54_spill] sm:$0xff] %v6663_v6 }
 0x36e   : > { %v2546_v8 = vpop.f32.mrf.mxu1  ;;  %v2766_v54 = vpop.f32.mrf.mxu2 }
 0x36f   : > { %2197 = vmatmul.f32.gmra.mxu3 %v2070_v2  ;;  %v6655_v28 = vadd.f32 %v2766_v54, %v2626_v33  ;;  %v8203_v2 = vld [vmem:[#allocation30_spill] sm:$0xff]  ;;  %v2880_v54 = vld [vmem:[#allocation2 + $0x2f] sm:$0xff] }
 0x370   : > { %3209 = vmatmul.f32.gmra.mxu0 %v6524_v16 }
 0x371   : > { %2593 = vmatmul.f32.gmra.mxu1 %v6652_v18 }
 0x372   : > { %v2150_v56 = vpop.f32.mrf.mxu3 }
 0x373   : > { %v6659_v60 = vadd.f32 %v2150_v56, %v6439_v26  ;;  %2816 = vmatmul.f32.gmra.mxu2 %v6535_v10  ;;  %v2434_v10 = vadd.f32 %v6337_v47, %v6533_v15  ;;  %v8204_v56 = vld [vmem:[#allocation53_spill] sm:$0xff]  ;;  %v6685_v44 = vpop.f32.mrf.mxu0  ;;  %v8206_v15 = vld [vmem:[#allocation31_spill] sm:$0xff] }
 0x374   : > { %8205 = vst [vmem:[#allocation69_spill] sm:$0xff] %v6685_v44  ;;  %v3365_v47 = vld [vmem:[#allocation8 + $0x408] sm:$0xff]  ;;  %v6766_v44 = vld [vmem:[#allocation2 + $0x109] sm:$0xff] }
 0x375   : > { %v2628_v9 = vadd.f32 %v2546_v8, %v2434_v10  ;;  %3394 = vmatpush.msra.mxu1 %v3365_v47  ;;  %v6698_v8 = vld [vmem:[#allocation2 + $0xe8] sm:$0xff]  ;;  %v8210_v47 = vld [vmem:[#allocation25_spill] sm:$0xff] }
 0x376   : > { %v6661_v32 = vpop.f32.mrf.mxu1  ;;  %v2769_v16 = vpop.f32.mrf.mxu2 }
 0x377   : > { %2976 = vmatmul.f32.vlgmr.msra.gmra.mxu3 %v8203_v2  ;;  %v6672_v61 = vadd.f32 %v2769_v16, %v2627_v30 }
 0x378   : > { %3212 = vmatmul.f32.gmra.mxu0 %v6539_v21 }
 0x379   : > { %2596 = vmatmul.f32.gmra.mxu1 %v6669_v42 }
 0x37a   : > { %v2153_v26 = vpop.f32.mrf.mxu3 }
 0x37b   : > { %v6676_v33 = vadd.f32 %v2153_v26, %v6451_v57  ;;  %2819 = vmatmul.f32.gmra.mxu2 %v8204_v56  ;;  %v2881_v57 = vld [vmem:[#allocation2 + $0x37] sm:$0xff]  ;;  %v6701_v10 = vpop.f32.mrf.mxu0 }
 0x37c   : > { %v2913_v16 = vmul.f32 %v8206_v15, %v2881_v57  ;;  %8207 = vst [vmem:[#allocation48_spill] sm:$0xff] %v6701_v10 }
 0x37e   : > { %v6678_v63 = vpop.f32.mrf.mxu1  ;;  %v2772_v21 = vpop.f32.mrf.mxu2 }
 0x37f   : > { %2979 = vmatmul.f32.gmra.mxu3 %v2880_v54  ;;  %v6688_v2 = vadd.f32 %v2772_v21, %v2628_v9  ;;  %v8208_v9 = vld [vmem:[#allocation55_spill] sm:$0xff] }
 0x380   : > { %3215 = vmatmul.f32.gmra.mxu0 %v6552_v43 }
 0x381   : > { %2599 = vmatmul.f32.gmra.mxu1 %v6683_v3 }
 0x382   : > { %v2156_v25 = vpop.f32.mrf.mxu3 }
 0x383   : > { %v6692_v30 = vadd.f32 %v2156_v25, %v6462_v51  ;;  %2822 = vmatmul.f32.gmra.mxu2 %v6566_v41  ;;  %v2882_v51 = vld [vmem:[#allocation2 + $0x3f] sm:$0xff]  ;;  %v6710_v41 = vld [vmem:[#allocation2 + $0xf0] sm:$0xff]  ;;  %v2883_v25 = vld [vmem:[#allocation2 + $0x47] sm:$0xff] }
 0x384   : > { %v2915_v15 = vmul.f32 %v8210_v47, %v2883_v25  ;;  %v8212_v25 = vld [vmem:[#allocation56_spill] sm:$0xff] }
 0x386   : > { %v6695_v26 = vpop.f32.mrf.mxu1 }
 0x387   : > { %2982 = vmatmul.f32.gmra.mxu3 %v2913_v16 }
 0x388   : > { %3218 = vmatmul.f32.gmra.mxu0 %v6571_v7  ;;  %v3364_v7 = vld [vmem:[#allocation8 + $0x400] sm:$0xff] }
 0x389   : > { %2602 = vmatmul.f32.gmra.mxu1 %v6698_v8 }
 0x38a   : > { %v2159_v54 = vpop.f32.mrf.mxu3  ;;  %3395 = vmatpush.msra.mxu1 %v3364_v7  ;;  %v3124_v7 = vld [vmem:[#allocation2 + $0xc0] sm:$0xff] }
 0x38b   : > { %v6705_v43 = vadd.f32 %v2159_v54, %v6475_v0  ;;  %2825 = vmatmul.f32.gmra.mxu2 %v8208_v9  ;;  %v6717_v0 = vpop.f32.mrf.mxu0  ;;  %v6723_v54 = vld [vmem:[#allocation2 + $0xf8] sm:$0xff] }
 0x38c   : > { %8209 = vst [vmem:[#allocation27_spill] sm:$0xff] %v6717_v0 }
 0x38e   : > { %v6707_v56 = vpop.f32.mrf.mxu1 }
 0x38f   : > { %2985 = vmatmul.f32.gmra.mxu3 %v2882_v51 }
 0x390   : > { %3221 = vmatmul.f32.gmra.mxu0 %v6588_v29  ;;  %v2884_v29 = vld [vmem:[#allocation2 + $0x4f] sm:$0xff] }
 0x391   : > { %2605 = vmatmul.f32.gmra.mxu1 %v6710_v41 }
 0x392   : > { %v2162_v21 = vpop.f32.mrf.mxu3 }
 0x393   : > { %v6715_v57 = vadd.f32 %v2162_v21, %v6488_v4  ;;  %2828 = vmatmul.f32.gmra.mxu2 %v6597_v50  ;;  %v6732_v21 = vpop.f32.mrf.mxu0  ;;  %v6735_v50 = vld [vmem:[#allocation2 + $0x100] sm:$0xff] }
 0x394   : > { %8211 = vst [vmem:[#allocation71_spill] sm:$0xff] %v6732_v21  ;;  %v3125_v21 = vld [vmem:[#allocation2 + $0xc8] sm:$0xff] }
 0x396   : > { %v6720_v16 = vpop.f32.mrf.mxu1 }
 0x397   : > { %2988 = vmatmul.f32.gmra.mxu3 %v2915_v15  ;;  %v2885_v15 = vld [vmem:[#allocation2 + $0x57] sm:$0xff] }
 0x398   : > { %3224 = vmatmul.f32.gmra.mxu0 %v6603_v53 }
 0x399   : > { %2608 = vmatmul.f32.gmra.mxu1 %v6723_v54 }
 0x39a   : > { %v2165_v51 = vpop.f32.mrf.mxu3 }
 0x39b   : > { %v6728_v4 = vadd.f32 %v2165_v51, %v6501_v1  ;;  %2831 = vmatmul.f32.gmra.mxu2 %v8212_v25  ;;  %v8214_v1 = vld [vmem:[#allocation41_spill] sm:$0xff]  ;;  %v6745_v25 = vld [vmem:[#allocation2 + $0x108] sm:$0xff] }
 0x39c   : > { %v2917_v51 = vmul.f32 %v8214_v1, %v2885_v15  ;;  %v8217_v15 = vld [vmem:[#allocation57_spill] sm:$0xff] }
 0x39e   : > { %v6730_v9 = vpop.f32.mrf.mxu1 }
 0x39f   : > { %2991 = vmatmul.f32.gmra.mxu3 %v2884_v29  ;;  %v6747_v29 = vpop.f32.mrf.mxu0 }
 0x3a0   : > { %3227 = vmatmul.f32.gmra.mxu0 %v3124_v7  ;;  %8215 = vst [vmem:[#allocation74_spill] sm:$0xff] %v6747_v29 }
 0x3a1   : > { %2611 = vmatmul.f32.gmra.mxu1 %v6735_v50 }
 0x3a2   : > { %v2168_v47 = vpop.f32.mrf.mxu3 }
 0x3a3   : > { %v6739_v53 = vadd.f32 %v2168_v47, %v6516_v14  ;;  %2834 = vmatmul.f32.gmra.mxu2 %v6628_v39  ;;  %v2886_v14 = vld [vmem:[#allocation2 + $0x5f] sm:$0xff]  ;;  %v6756_v39 = vld [vmem:[#allocation2 + $0x110] sm:$0xff] }
 0x3a5   : > { %8213 = vst [vmem:[#allocation70_spill] sm:$0xff] %v6739_v53 }
 0x3a6   : > { %v6742_v0 = vpop.f32.mrf.mxu1 }
 0x3a7   : > { %2994 = vmatmul.f32.gmra.mxu3 %v2917_v51  ;;  %v2887_v51 = vld [vmem:[#allocation2 + $0x67] sm:$0xff]  ;;  %v6759_v29 = vpop.f32.mrf.mxu0 }
 0x3a8   : > { %3230 = vmatmul.f32.gmra.mxu0 %v3125_v21  ;;  %8218 = vst [vmem:[#allocation51_spill] sm:$0xff] %v6759_v29 }
 0x3a9   : > { %2614 = vmatmul.f32.gmra.mxu1 %v6745_v25 }
 0x3aa   : > { %v2171_v10 = vpop.f32.mrf.mxu3 }
 0x3ab   : > { %v6751_v7 = vadd.f32 %v2171_v10, %v6529_v23  ;;  %2837 = vmatmul.f32.gmra.mxu2 %v8217_v15  ;;  %v8220_v23 = vld [vmem:[#allocation59_spill] sm:$0xff] }
 0x3ac   : > { %v2919_v10 = vmul.f32 %v8220_v23, %v2887_v51  ;;  %v2888_v23 = vld [vmem:[#allocation2 + $0x6f] sm:$0xff] }
 0x3ad   : > { %8216 = vst [vmem:[#allocation73_spill] sm:$0xff] %v6751_v7  ;;  %v3301_v7 = vld [vmem:[#allocation2 + $0x39] sm:$0xff] }
 0x3ae   : > { %v6753_v47 = vpop.f32.mrf.mxu1 }
 0x3af   : > { %2997 = vmatmul.f32.gmra.mxu3 %v2886_v14  ;;  %v3299_v14 = vld [vmem:[#allocation2 + $0x29] sm:$0xff] }
 0x3b0   : > { %3233 = vmatmul.f32.gmra.mxu0 %v6652_v18  ;;  %v3300_v18 = vld [vmem:[#allocation2 + $0x31] sm:$0xff] }
 0x3b1   : > { %2617 = vmatmul.f32.gmra.mxu1 %v6756_v39 }
 0x3b2   : > { %v2174_v1 = vpop.f32.mrf.mxu3 }
 0x3b3   : > { %v6763_v21 = vadd.f32 %v2174_v1, %v6544_v24  ;;  %2840 = vmatmul.f32.gmra.mxu2 %v6766_v44  ;;  %v6775_v24 = vpop.f32.mrf.mxu0  ;;  %v4757_v1 = vld [vmem:[#allocation2 + $0x111] sm:$0xff] }
 0x3b4   : > { %v2716_v51 = vmul.f32 %v4757_v1, %v6638_v13 }
 0x3b5   : > { %8219 = vst [vmem:[#allocation75_spill] sm:$0xff] %v6763_v21  ;;  %v2889_v21 = vld [vmem:[#allocation2 + $0x77] sm:$0xff] }
 0x3b6   : > { %v6768_v6 = vpop.f32.mrf.mxu1 }
 0x3b7   : > { %3000 = vmatmul.f32.gmra.mxu3 %v2919_v10  ;;  %v8222_v10 = vld [vmem:[#allocation28_spill] sm:$0xff] }
 0x3b8   : > { %3236 = vmatmul.f32.gmra.mxu0 %v6669_v42  ;;  %v3332_v55 = vmul.f32 %v8222_v10, %v3300_v18  ;;  %v8224_v42 = vld [vmem:[#allocation60_spill] sm:$0xff]  ;;  %v3302_v18 = vld [vmem:[#allocation2 + $0x41] sm:$0xff] }
 0x3b9   : > { %3396 = vmatmul.f32.vlgmr.msra.gmra.mxu1 %v3299_v14 }
 0x3ba   : > { %v2177_v15 = vpop.f32.mrf.mxu3 }
 0x3bb   : > { %v6773_v29 = vadd.f32 %v2177_v15, %v6558_v35  ;;  %2843 = vmatmul.f32.gmra.mxu2 %v2716_v51  ;;  %v2921_v15 = vmul.f32 %v8224_v42, %v2889_v21  ;;  %v6788_v1 = vpop.f32.mrf.mxu0  ;;  %v2891_v42 = vld [vmem:[#allocation2 + $0x87] sm:$0xff] }
 0x3bd   : > { %8221 = vst [vmem:[#allocation30_spill] sm:$0xff] %v6773_v29 }
 0x3be   : > { %v6778_v37 = vpop.f32.mrf.mxu1 }
 0x3bf   : > { %3003 = vmatmul.f32.gmra.mxu3 %v2888_v23 }
 0x3c0   : > { %3239 = vmatmul.f32.gmra.mxu0 %v6683_v3  ;;  %v2890_v3 = vld [vmem:[#allocation2 + $0x7f] sm:$0xff] }
 0x3c1   : > { %3399 = vmatmul.f32.gmra.mxu1 %v3332_v55 }
 0x3c2   : > { %v2180_v14 = vpop.f32.mrf.mxu3 }
 0x3c3   : > { %v6783_v35 = vadd.f32 %v2180_v14, %v6341_v5  ;;  %v8226_v5 = vld [vmem:[#allocation32_spill] sm:$0xff]  ;;  %v6797_v10 = vpop.f32.mrf.mxu0 }
 0x3c4   : > { %v3334_v21 = vmul.f32 %v8226_v5, %v3302_v18  ;;  %v3304_v5 = vld [vmem:[#allocation2 + $0x51] sm:$0xff] }
 0x3c5   : > { %8223 = vst [vmem:[#allocation53_spill] sm:$0xff] %v6783_v35  ;;  %v2899_v35 = vld [vmem:[#allocation2 + $0xc7] sm:$0xff] }
 0x3c6   : > { %v6786_v29 = vpop.f32.mrf.mxu1 }
 0x3c7   : > { %3006 = vmatmul.f32.gmra.mxu3 %v2921_v15 }
 0x3c8   : > { %3242 = vmatmul.f32.gmra.mxu0 %v6698_v8  ;;  %v8228_v8 = vld [vmem:[#allocation61_spill] sm:$0xff] }
 0x3c9   : > { %3402 = vmatmul.f32.gmra.mxu1 %v3301_v7 }
 0x3ca   : > { %v2183_v51 = vpop.f32.mrf.mxu3 }
 0x3cb   : > { %v6792_v55 = vadd.f32 %v2183_v51, %v6355_v46  ;;  %v2923_v46 = vmul.f32 %v8228_v8, %v2891_v42  ;;  %v3303_v51 = vld [vmem:[#allocation2 + $0x49] sm:$0xff]  ;;  %v2893_v8 = vld [vmem:[#allocation2 + $0x97] sm:$0xff] }
 0x3cd   : > { %8225 = vst [vmem:[#allocation31_spill] sm:$0xff] %v6792_v55  ;;  %v6806_v55 = vpop.f32.mrf.mxu0 }
 0x3ce   : > { %v6794_v23 = vpop.f32.mrf.mxu1 }
 0x3cf   : > { %3009 = vmatmul.f32.gmra.mxu3 %v2890_v3 }
 0x3d0   : > { %3245 = vmatmul.f32.gmra.mxu0 %v6710_v41  ;;  %v2892_v41 = vld [vmem:[#allocation2 + $0x8f] sm:$0xff] }
 0x3d1   : > { %3405 = vmatmul.f32.gmra.mxu1 %v3334_v21 }
 0x3d2   : > { %v2186_v14 = vpop.f32.mrf.mxu3 }
 0x3d3   : > { %v6801_v7 = vadd.f32 %v2186_v14, %v6369_v49  ;;  %v8231_v49 = vld [vmem:[#allocation33_spill] sm:$0xff] }
 0x3d4   : > { %v3336_v14 = vmul.f32 %v8231_v49, %v3304_v5  ;;  %v3306_v49 = vld [vmem:[#allocation2 + $0x61] sm:$0xff] }
 0x3d5   : > { %8227 = vst [vmem:[#allocation55_spill] sm:$0xff] %v6801_v7  ;;  %v3309_v7 = vld [vmem:[#allocation2 + $0x79] sm:$0xff] }
 0x3d6   : > { %v6804_v15 = vpop.f32.mrf.mxu1 }
 0x3d7   : > { %3012 = vmatmul.f32.gmra.mxu3 %v2923_v46 }
 0x3d8   : > { %3248 = vmatmul.f32.gmra.mxu0 %v6723_v54  ;;  %v8234_v54 = vld [vmem:[#allocation63_spill] sm:$0xff] }
 0x3d9   : > { %3408 = vmatmul.f32.gmra.mxu1 %v3303_v51  ;;  %v6819_v51 = vpop.f32.mrf.mxu0 }
 0x3da   : > { %v2189_v3 = vpop.f32.mrf.mxu3  ;;  %8233 = vst [vmem:[#allocation57_spill] sm:$0xff] %v6819_v51 }
 0x3db   : > { %v6810_v18 = vadd.f32 %v2189_v3, %v6384_v22  ;;  %v2925_v22 = vmul.f32 %v8234_v54, %v2893_v8 }
 0x3dd   : > { %8229 = vst [vmem:[#allocation25_spill] sm:$0xff] %v6810_v18  ;;  %v3305_v18 = vld [vmem:[#allocation2 + $0x59] sm:$0xff] }
 0x3de   : > { %v6812_v21 = vpop.f32.mrf.mxu1 }
 0x3df   : > { %8230 = vst [vmem:[#allocation56_spill] sm:$0xff] %v6812_v21  ;;  %3015 = vmatmul.f32.gmra.mxu3 %v2892_v41 }
 0x3e0   : > { %3251 = vmatmul.f32.gmra.mxu0 %v6735_v50  ;;  %v2894_v50 = vld [vmem:[#allocation2 + $0x9f] sm:$0xff] }
 0x3e1   : > { %3411 = vmatmul.f32.gmra.mxu1 %v3336_v14 }
 0x3e2   : > { %v2192_v42 = vpop.f32.mrf.mxu3 }
 0x3e3   : > { %v6817_v46 = vadd.f32 %v2192_v42, %v6398_v52  ;;  %v6830_v52 = vpop.f32.mrf.mxu0  ;;  %v8239_v42 = vld [vmem:[#allocation35_spill] sm:$0xff] }
 0x3e4   : > { %8238 = vst [vmem:[#allocation32_spill] sm:$0xff] %v6830_v52  ;;  %v3338_v8 = vmul.f32 %v8239_v42, %v3306_v49  ;;  %v3308_v42 = vld [vmem:[#allocation2 + $0x71] sm:$0xff]  ;;  %v3318_v52 = vld [vmem:[#allocation2 + $0xc1] sm:$0xff] }
 0x3e5   : > { %8232 = vst [vmem:[#allocation41_spill] sm:$0xff] %v6817_v46 }
 0x3e6   : > { %v6822_v3 = vpop.f32.mrf.mxu1 }
 0x3e7   : > { %8235 = vst [vmem:[#allocation59_spill] sm:$0xff] %v6822_v3  ;;  %3018 = vmatmul.f32.gmra.mxu3 %v2925_v22  ;;  %v2895_v22 = vld [vmem:[#allocation2 + $0xa7] sm:$0xff]  ;;  %v2904_v3 = vld [vmem:[#allocation2 + $0xef] sm:$0xff] }
 0x3e8   : > { %3254 = vmatmul.f32.gmra.mxu0 %v6745_v25  ;;  %v8241_v25 = vld [vmem:[#allocation64_spill] sm:$0xff] }
 0x3e9   : > { %3414 = vmatmul.f32.gmra.mxu1 %v3305_v18 }
 0x3ea   : > { %v2195_v41 = vpop.f32.mrf.mxu3 }
 0x3eb   : > { %v6826_v5 = vadd.f32 %v2195_v41, %v6413_v59  ;;  %v2927_v59 = vmul.f32 %v8241_v25, %v2895_v22  ;;  %v6840_v46 = vpop.f32.mrf.mxu0  ;;  %v2897_v25 = vld [vmem:[#allocation2 + $0xb7] sm:$0xff] }
 0x3ec   : > { %8243 = vst [vmem:[#allocation63_spill] sm:$0xff] %v6840_v46  ;;  %v3317_v46 = vld [vmem:[#allocation2 + $0xb9] sm:$0xff] }
 0x3ed   : > { %8236 = vst [vmem:[#allocation28_spill] sm:$0xff] %v6826_v5  ;;  %v3307_v5 = vld [vmem:[#allocation2 + $0x69] sm:$0xff] }
 0x3ee   : > { %v6828_v14 = vpop.f32.mrf.mxu1 }
 0x3ef   : > { %8237 = vst [vmem:[#allocation60_spill] sm:$0xff] %v6828_v14  ;;  %3021 = vmatmul.f32.gmra.mxu3 %v2894_v50 }
 0x3f0   : > { %3257 = vmatmul.f32.gmra.mxu0 %v6756_v39  ;;  %v2896_v39 = vld [vmem:[#allocation2 + $0xaf] sm:$0xff] }
 0x3f1   : > { %3417 = vmatmul.f32.gmra.mxu1 %v3338_v8 }
 0x3f2   : > { %v2198_v54 = vpop.f32.mrf.mxu3 }
 0x3f3   : > { %v6835_v18 = vadd.f32 %v2198_v54, %v6425_v27  ;;  %v8245_v27 = vld [vmem:[#allocation36_spill] sm:$0xff] }
 0x3f4   : > { %v3340_v54 = vmul.f32 %v8245_v27, %v3308_v42  ;;  %v3310_v27 = vld [vmem:[#allocation2 + $0x81] sm:$0xff] }
 0x3f5   : > { %8240 = vst [vmem:[#allocation61_spill] sm:$0xff] %v6835_v18 }
 0x3f6   : > { %v6838_v41 = vpop.f32.mrf.mxu1 }
 0x3f7   : > { %8242 = vst [vmem:[#allocation33_spill] sm:$0xff] %v6838_v41  ;;  %3024 = vmatmul.f32.gmra.mxu3 %v2927_v59  ;;  %v6849_v59 = vpop.f32.mrf.mxu0 }
 0x3f8   : > { %3260 = vmatmul.f32.gmra.mxu0 %v6635_v31  ;;  %8246 = vst [vmem:[#allocation64_spill] sm:$0xff] %v6849_v59 }
 0x3f9   : > { %3420 = vmatmul.f32.gmra.mxu1 %v3307_v5 }
 0x3fa   : > { %v2977_v50 = vpop.f32.mrf.mxu3 }
 0x3fb   : > { %v6843_v49 = vadd.f32 %v2977_v50, %v6577_v40  ;;  %v8247_v40 = vld [vmem:[#allocation65_spill] sm:$0xff] }
 0x3fc   : > { %v2929_v50 = vmul.f32 %v8247_v40, %v2897_v25  ;;  %v8251_v40 = vld [vmem:[#allocation68_spill] sm:$0xff] }
 0x3fe   : > { %v6846_v8 = vpop.f32.mrf.mxu1 }
 0x3ff   : > { %8244 = vst [vmem:[#allocation35_spill] sm:$0xff] %v6846_v8  ;;  %3027 = vmatmul.f32.gmra.mxu3 %v2896_v39 }
 0x400   : > { %3263 = vmatmul.f32.gmra.mxu0 %v6635_v31 }
 0x401   : > { %3423 = vmatmul.f32.gmra.mxu1 %v3340_v54  ;;  %v2898_v54 = vld [vmem:[#allocation2 + $0xbf] sm:$0xff] }
 0x402   : > { %v2980_v22 = vpop.f32.mrf.mxu3 }
 0x403   : > { %v6852_v5 = vadd.f32 %v2980_v22, %v6591_v36  ;;  %v8250_v36 = vld [vmem:[#allocation38_spill] sm:$0xff] }
 0x404   : > { %v3342_v22 = vmul.f32 %v8250_v36, %v3310_v27  ;;  %v2900_v27 = vld [vmem:[#allocation2 + $0xcf] sm:$0xff] }
 0x406   : > { %v6856_v18 = vpop.f32.mrf.mxu1 }
 0x407   : > { %8248 = vst [vmem:[#allocation36_spill] sm:$0xff] %v6856_v18  ;;  %3030 = vmatmul.f32.gmra.mxu3 %v2929_v50  ;;  %v2931_v50 = vmul.f32 %v8251_v40, %v2899_v35 }
 0x409   : > { %3426 = vmatmul.f32.gmra.mxu1 %v3309_v7 }
 0x40a   : > { %v2983_v39 = vpop.f32.mrf.mxu3 }
 0x40b   : > { %v6859_v42 = vadd.f32 %v2983_v39, %v6608_v48  ;;  %v3311_v48 = vld [vmem:[#allocation2 + $0x89] sm:$0xff] }
 0x40e   : > { %v6861_v8 = vpop.f32.mrf.mxu1 }
 0x40f   : > { %8249 = vst [vmem:[#allocation65_spill] sm:$0xff] %v6861_v8  ;;  %3033 = vmatmul.f32.gmra.mxu3 %v2898_v54  ;;  %v3312_v54 = vld [vmem:[#allocation2 + $0x91] sm:$0xff]  ;;  %v6873_v8 = vpop.f32.mrf.mxu2 }
 0x411   : > { %3429 = vmatmul.f32.gmra.mxu1 %v3342_v22 }
 0x412   : > { %v2986_v31 = vpop.f32.mrf.mxu3 }
 0x413   : > { %v6865_v25 = vadd.f32 %v2986_v31, %v6622_v38  ;;  %v8255_v38 = vld [vmem:[#allocation39_spill] sm:$0xff]  ;;  %v2901_v31 = vld [vmem:[#allocation2 + $0xd7] sm:$0xff] }
 0x414   : > { %v3344_v22 = vmul.f32 %v8255_v38, %v3312_v54  ;;  %v3314_v54 = vld [vmem:[#allocation2 + $0xa1] sm:$0xff] }
 0x415   : > { %v2902_v38 = vld [vmem:[#allocation2 + $0xdf] sm:$0xff] }
 0x416   : > { %v6868_v7 = vpop.f32.mrf.mxu1 }
 0x417   : > { %8252 = vst [vmem:[#allocation38_spill] sm:$0xff] %v6868_v7  ;;  %3036 = vmatmul.f32.gmra.mxu3 %v2931_v50  ;;  %v8257_v50 = vld [vmem:[#allocation72_spill] sm:$0xff] }
 0x419   : > { %3432 = vmatmul.f32.gmra.mxu1 %v3311_v48  ;;  %v2933_v48 = vmul.f32 %v8257_v50, %v2901_v31 }
 0x41a   : > { %v2989_v39 = vpop.f32.mrf.mxu3 }
 0x41b   : > { %v6871_v18 = vadd.f32 %v2989_v39, %v6640_v12  ;;  %v6884_v12 = vpop.f32.mrf.mxu2  ;;  %v3313_v39 = vld [vmem:[#allocation2 + $0x99] sm:$0xff] }
 0x41d   : > { %8253 = vst [vmem:[#allocation68_spill] sm:$0xff] %v6871_v18 }
 0x41e   : > { %v6875_v36 = vpop.f32.mrf.mxu1 }
 0x41f   : > { %8254 = vst [vmem:[#allocation87_spill] sm:$0xff] %v6875_v36  ;;  %3039 = vmatmul.f32.gmra.mxu3 %v2900_v27  ;;  %v8263_v36 = vld [vmem:[#allocation76_spill] sm:$0xff] }
 0x421   : > { %3435 = vmatmul.f32.gmra.mxu1 %v3344_v22 }
 0x422   : > { %v2992_v35 = vpop.f32.mrf.mxu3 }
 0x423   : > { %v6879_v40 = vadd.f32 %v2992_v35, %v6655_v28  ;;  %v8261_v28 = vld [vmem:[#allocation40_spill] sm:$0xff]  ;;  %v2781_v31 = vpop.f32.mrf.mxu2 }
 0x424   : > { %v3346_v35 = vmul.f32 %v8261_v28, %v3314_v54  ;;  %v6902_v28 = vpop.f32.mrf.mxu0 }
 0x425   : > { %8256 = vst [vmem:[#allocation39_spill] sm:$0xff] %v6879_v40 }
 0x426   : > { %v6882_v7 = vpop.f32.mrf.mxu1 }
 0x427   : > { %8258 = vst [vmem:[#allocation72_spill] sm:$0xff] %v6882_v7  ;;  %3042 = vmatmul.f32.gmra.mxu3 %v2933_v48  ;;  %v2903_v7 = vld [vmem:[#allocation2 + $0xe7] sm:$0xff] }
 0x429   : > { %3438 = vmatmul.f32.gmra.mxu1 %v3313_v39  ;;  %v2935_v39 = vmul.f32 %v8263_v36, %v2903_v7  ;;  %v2905_v7 = vld [vmem:[#allocation2 + $0xf7] sm:$0xff]  ;;  %v8265_v36 = vld [vmem:[#allocation79_spill] sm:$0xff] }
 0x42a   : > { %v2995_v41 = vpop.f32.mrf.mxu3 }
 0x42b   : > { %v6887_v27 = vadd.f32 %v2995_v41, %v6672_v61  ;;  %v3315_v61 = vld [vmem:[#allocation2 + $0xa9] sm:$0xff] }
 0x42d   : > { %8259 = vst [vmem:[#allocation88_spill] sm:$0xff] %v6887_v27 }
 0x42e   : > { %v6889_v22 = vpop.f32.mrf.mxu1 }
 0x42f   : > { %8260 = vst [vmem:[#allocation89_spill] sm:$0xff] %v6889_v22  ;;  %3045 = vmatmul.f32.gmra.mxu3 %v2902_v38  ;;  %v2784_v22 = vpop.f32.mrf.mxu2  ;;  %v3316_v38 = vld [vmem:[#allocation2 + $0xb1] sm:$0xff] }
 0x431   : > { %3441 = vmatmul.f32.gmra.mxu1 %v3346_v35  ;;  %v8264_v35 = vld [vmem:[#allocation44_spill] sm:$0xff] }
 0x432   : > { %v2998_v50 = vpop.f32.mrf.mxu3 }
 0x433   : > { %v6893_v48 = vadd.f32 %v2998_v50, %v6688_v2  ;;  %v3348_v2 = vmul.f32 %v8264_v35, %v3316_v38 }
 0x435   : > { %8262 = vst [vmem:[#allocation40_spill] sm:$0xff] %v6893_v48 }
 0x436   : > { %v6896_v14 = vpop.f32.mrf.mxu1 }
 0x437   : > { %3048 = vmatmul.f32.gmra.mxu3 %v2935_v39  ;;  %v2437_v39 = vadd.f32 %v8265_v36, %v6581_v11  ;;  %v2787_v53 = vpop.f32.mrf.mxu2  ;;  %v8267_v11 = vld [vmem:[#allocation80_spill] sm:$0xff]  ;;  %v2906_v36 = vld [vmem:[#allocation2 + $0xff] sm:$0xff] }
 0x439   : > { %3444 = vmatmul.f32.gmra.mxu1 %v3315_v61  ;;  %v8266_v61 = vld [vmem:[#allocation29_spill] sm:$0xff]  ;;  %v2631_v48 = vadd.f32 %v6695_v26, %v2437_v39 }
 0x43a   : > { %v6898_v41 = vpop.f32.mrf.mxu3  ;;  %v2937_v21 = vmul.f32 %v8266_v61, %v2905_v7  ;;  %v2438_v7 = vadd.f32 %v8267_v11, %v6595_v62  ;;  %v8270_v11 = vld [vmem:[#allocation34_spill] sm:$0xff] }
 0x43b   : > { %v2857_v27 = vadd.f32 %v2781_v31, %v2631_v48 }
 0x43c   : > { %v2632_v26 = vadd.f32 %v6707_v56, %v2438_v7 }
 0x43e   : > { %v6900_v54 = vpop.f32.mrf.mxu1  ;;  %v2858_v39 = vadd.f32 %v2784_v22, %v2632_v26 }
 0x43f   : > { %3051 = vmatmul.f32.gmra.mxu3 %v2904_v3  ;;  %v6913_v3 = vpop.f32.mrf.mxu0  ;;  %v2790_v48 = vpop.f32.mrf.mxu2 }
 0x441   : > { %3447 = vmatmul.f32.gmra.mxu1 %v3348_v2  ;;  %v3769_v2 = vld [vmem:[#allocation12 + $0x78] sm:$0xff] }
 0x442   : > { %v6905_v50 = vpop.f32.mrf.mxu3  ;;  %3770 = vmatpush.msra.mxu2 %v3769_v2  ;;  %v8269_v2 = vld [vmem:[#allocation81_spill] sm:$0xff] }
 0x443   : > { %v2439_v62 = vadd.f32 %v8269_v2, %v6612_v17 }
 0x445   : > { %v2633_v56 = vadd.f32 %v6720_v16, %v2439_v62 }
 0x446   : > { %v6910_v59 = vpop.f32.mrf.mxu1 }
 0x447   : > { %3054 = vmatmul.f32.gmra.mxu3 %v2937_v21  ;;  %v8268_v21 = vld [vmem:[#allocation46_spill] sm:$0xff]  ;;  %v2859_v7 = vadd.f32 %v2787_v53, %v2633_v56  ;;  %v2793_v22 = vpop.f32.mrf.mxu2  ;;  %v8274_v53 = vld [vmem:[#allocation49_spill] sm:$0xff] }
 0x448   : > { %v3350_v31 = vmul.f32 %v8268_v21, %v3318_v52  ;;  %v3319_v52 = vld [vmem:[#allocation2 + $0xc9] sm:$0xff]  ;;  %v2909_v56 = vld [vmem:[#allocation2 + $0x117] sm:$0xff] }
 0x449   : > { %3450 = vmatmul.f32.gmra.mxu1 %v3317_v46  ;;  %v3768_v21 = vld [vmem:[#allocation12 + $0x70] sm:$0xff] }
 0x44a   : > { %v3007_v38 = vpop.f32.mrf.mxu3  ;;  %3771 = vmatpush.msra.mxu2 %v3768_v21  ;;  %v8276_v21 = vld [vmem:[#allocation62_spill] sm:$0xff] }
 0x44b   : > { %v6915_v35 = vadd.f32 %v3007_v38, %v2857_v27  ;;  %v2907_v27 = vld [vmem:[#allocation2 + $0x107] sm:$0xff]  ;;  %v6923_v38 = vpop.f32.mrf.mxu0 }
 0x44c   : > { %v2939_v51 = vmul.f32 %v8270_v11, %v2907_v27  ;;  %v2908_v27 = vld [vmem:[#allocation2 + $0x10f] sm:$0xff] }
 0x44e   : > { %v6919_v61 = vpop.f32.mrf.mxu1 }
 0x44f   : > { %3057 = vmatmul.f32.gmra.mxu3 %v2906_v36 }
 0x451   : > { %3453 = vmatmul.f32.gmra.mxu1 %v3350_v31  ;;  %v3320_v31 = vld [vmem:[#allocation2 + $0xd1] sm:$0xff] }
 0x452   : > { %v3010_v46 = vpop.f32.mrf.mxu3 }
 0x453   : > { %v6925_v40 = vadd.f32 %v3010_v46, %v2858_v39  ;;  %v8272_v39 = vld [vmem:[#allocation82_spill] sm:$0xff]  ;;  %v6937_v46 = vpop.f32.mrf.mxu0 }
 0x454   : > { %v2440_v17 = vadd.f32 %v8272_v39, %v6626_v45  ;;  %v2941_v39 = vmul.f32 %v8276_v21, %v2909_v56 }
 0x456   : > { %v6930_v18 = vpop.f32.mrf.mxu1  ;;  %v2634_v16 = vadd.f32 %v6730_v9, %v2440_v17 }
 0x457   : > { %8271 = vst [vmem:[#allocation76_spill] sm:$0xff] %v6930_v18  ;;  %3060 = vmatmul.f32.gmra.mxu3 %v2939_v51  ;;  %v3352_v51 = vmul.f32 %v8274_v53, %v3320_v31  ;;  %v3321_v31 = vld [vmem:[#allocation2 + $0xd9] sm:$0xff] }
 0x458   : > { %v2860_v62 = vadd.f32 %v2790_v48, %v2634_v16 }
 0x459   : > { %3456 = vmatmul.f32.gmra.mxu1 %v3319_v52 }
 0x45a   : > { %v3013_v36 = vpop.f32.mrf.mxu3 }
 0x45b   : > { %v6933_v26 = vadd.f32 %v3013_v36, %v2859_v7  ;;  %v2796_v7 = vpop.f32.mrf.mxu2  ;;  %v8275_v36 = vld [vmem:[#allocation83_spill] sm:$0xff]  ;;  %v6951_v9 = vpop.f32.mrf.mxu0 }
 0x45c   : > { %v2441_v45 = vadd.f32 %v8275_v36, %v6644_v20  ;;  %v2910_v20 = vld [vmem:[#allocation2 + $0x11f] sm:$0xff] }
 0x45e   : > { %v6939_v2 = vpop.f32.mrf.mxu1 }
 0x45f   : > { %8273 = vst [vmem:[#allocation44_spill] sm:$0xff] %v6939_v2  ;;  %3063 = vmatmul.f32.gmra.mxu3 %v2908_v27  ;;  %v2635_v2 = vadd.f32 %v6742_v0, %v2441_v45  ;;  %v8277_v27 = vld [vmem:[#allocation77_spill] sm:$0xff] }
 0x460   : > { %v2435_v16 = vadd.f32 %v8277_v27, %v6548_v34  ;;  %v8278_v0 = vld [vmem:[#allocation37_spill] sm:$0xff]  ;;  %v8279_v34 = vld [vmem:[#allocation50_spill] sm:$0xff] }
 0x461   : > { %3459 = vmatmul.f32.gmra.mxu1 %v3352_v51  ;;  %v2861_v48 = vadd.f32 %v2793_v22, %v2635_v2  ;;  %v3767_v51 = vld [vmem:[#allocation12 + $0x68] sm:$0xff]  ;;  %v2442_v56 = vadd.f32 %v8278_v0, %v6659_v60  ;;  %v3323_v0 = vld [vmem:[#allocation2 + $0xe9] sm:$0xff] }
 0x462   : > { %v3016_v11 = vpop.f32.mrf.mxu3  ;;  %3772 = vmatpush.msra.mxu2 %v3767_v51 }
 0x463   : > { %v6943_v52 = vadd.f32 %v3016_v11, %v2860_v62  ;;  %v3322_v62 = vld [vmem:[#allocation2 + $0xe1] sm:$0xff]  ;;  %v2629_v11 = vadd.f32 %v6661_v32, %v2435_v16  ;;  %v2799_v36 = vpop.f32.mrf.mxu2  ;;  %v2636_v2 = vadd.f32 %v6753_v47, %v2442_v56 }
 0x464   : > { %v3354_v21 = vmul.f32 %v8279_v34, %v3322_v62  ;;  %v3324_v34 = vld [vmem:[#allocation2 + $0xf1] sm:$0xff] }
 0x465   : > { %v2855_v22 = vadd.f32 %v6873_v8, %v2629_v11  ;;  %v8281_v8 = vld [vmem:[#allocation84_spill] sm:$0xff] }
 0x466   : > { %v6948_v18 = vpop.f32.mrf.mxu1  ;;  %v2443_v47 = vadd.f32 %v8281_v8, %v6676_v33  ;;  %v3766_v33 = vld [vmem:[#allocation12 + $0x60] sm:$0xff] }
 0x467   : > { %3066 = vmatmul.f32.gmra.mxu3 %v2941_v39  ;;  %v2862_v39 = vadd.f32 %v2796_v7, %v2636_v2  ;;  %3773 = vmatpush.msra.mxu2 %v3766_v33 }
 0x468   : > { %v2637_v62 = vadd.f32 %v6768_v6, %v2443_v47 }
 0x469   : > { %3462 = vmatmul.f32.gmra.mxu1 %v3321_v31  ;;  %v6965_v31 = vpop.f32.mrf.mxu0 }
 0x46a   : > { %v3019_v17 = vpop.f32.mrf.mxu3  ;;  %v2863_v56 = vadd.f32 %v2799_v36, %v2637_v62 }
 0x46b   : > { %v6955_v53 = vadd.f32 %v3019_v17, %v2861_v48  ;;  %v3081_v48 = vadd.f32 %v6898_v41, %v2855_v22  ;;  %v8280_v17 = vld [vmem:[#allocation78_spill] sm:$0xff]  ;;  %v2802_v11 = vpop.f32.mrf.mxu2 }
 0x46c   : > { %v2436_v60 = vadd.f32 %v8280_v17, %v6562_v58 }
 0x46d   : > { %v3275_v51 = vadd.f32 %v6902_v28, %v3081_v48  ;;  %v8283_v28 = vld [vmem:[#allocation42_spill] sm:$0xff] }
 0x46e   : > { %v6960_v45 = vpop.f32.mrf.mxu1  ;;  %v2630_v16 = vadd.f32 %v6678_v63, %v2436_v60 }
 0x46f   : > { %3069 = vmatmul.f32.gmra.mxu3 %v2910_v20 }
 0x470   : > { %v2856_v7 = vadd.f32 %v6884_v12, %v2630_v16  ;;  %v2444_v12 = vadd.f32 %v8283_v28, %v6692_v30  ;;  %v8285_v16 = vld [vmem:[#allocation43_spill] sm:$0xff]  ;;  %v3277_v30 = vadd.f32 %v6923_v38, %v6915_v35  ;;  %v3278_v35 = vadd.f32 %v6937_v46, %v6925_v40 }
 0x471   : > { %3465 = vmatmul.f32.gmra.mxu1 %v3354_v21  ;;  %v3213_v63 = vpop.f32.mrf.mxu0  ;;  %v2445_v8 = vadd.f32 %v8285_v16, %v6705_v43  ;;  %v8287_v43 = vld [vmem:[#allocation85_spill] sm:$0xff] }
 0x472   : > { %v3022_v32 = vpop.f32.mrf.mxu3  ;;  %v3082_v58 = vadd.f32 %v6905_v50, %v2856_v7  ;;  %v3356_v50 = vmul.f32 %v6122_v19, %v3324_v34  ;;  %v8289_v34 = vld [vmem:[#allocation52_spill] sm:$0xff] }
 0x473   : > { %v6970_v27 = vadd.f32 %v3022_v32, %v2862_v39  ;;  %v2638_v39 = vadd.f32 %v6778_v37, %v2444_v12  ;;  %v2805_v32 = vpop.f32.mrf.mxu2  ;;  %v2639_v37 = vadd.f32 %v6786_v29, %v2445_v8 }
 0x474   : > { %v3276_v6 = vadd.f32 %v6913_v3, %v3082_v58  ;;  %v2446_v58 = vadd.f32 %v8287_v43, %v6715_v57  ;;  %v3279_v57 = vadd.f32 %v6951_v9, %v6933_v26  ;;  %v8293_v26 = vld [vmem:[#allocation58_spill] sm:$0xff] }
 0x475   : > { %v2864_v36 = vadd.f32 %v2802_v11, %v2638_v39  ;;  %v2865_v19 = vadd.f32 %v2805_v32, %v2639_v37  ;;  %v3765_v11 = vld [vmem:[#allocation12 + $0x58] sm:$0xff]  ;;  %v8290_v39 = vld [vmem:[#allocation45_spill] sm:$0xff] }
 0x476   : > { %v3421_v20 = vpop.f32.mrf.mxu1  ;;  %3774 = vmatpush.msra.mxu2 %v3765_v11  ;;  %v2640_v29 = vadd.f32 %v6794_v23, %v2446_v58  ;;  %v3763_v11 = vld [vmem:[#allocation12 + $0x48] sm:$0xff] }
 0x477   : > { %v6978_v41 = vadd.f32 %v3421_v20, %v3275_v51  ;;  %v3325_v20 = vld [vmem:[#allocation2 + $0xf9] sm:$0xff] }
 0x479   : > { %8282 = vst [vmem:[#allocation79_spill] sm:$0xff] %v6978_v41  ;;  %3468 = vmatmul.f32.gmra.mxu1 %v3323_v0  ;;  %v3216_v47 = vpop.f32.mrf.mxu0 }
 0x47a   : > { %v3025_v22 = vpop.f32.mrf.mxu3 }
 0x47b   : > { %v6981_v2 = vadd.f32 %v3025_v22, %v2863_v56  ;;  %v2808_v0 = vpop.f32.mrf.mxu2  ;;  %v3326_v56 = vld [vmem:[#allocation2 + $0x101] sm:$0xff] }
 0x47c   : > { %v3358_v28 = vmul.f32 %v8289_v34, %v3326_v56  ;;  %v2866_v12 = vadd.f32 %v2808_v0, %v2640_v29  ;;  %v3282_v56 = vadd.f32 %v3216_v47, %v6970_v27  ;;  %v3762_v29 = vld [vmem:[#allocation12 + $0x40] sm:$0xff] }
 0x47e   : > { %v3424_v21 = vpop.f32.mrf.mxu1 }
 0x47f   : > { %v6987_v48 = vadd.f32 %v3424_v21, %v3276_v6 }
 0x481   : > { %8284 = vst [vmem:[#allocation29_spill] sm:$0xff] %v6987_v48  ;;  %3471 = vmatmul.f32.gmra.mxu1 %v3356_v50  ;;  %v3219_v22 = vpop.f32.mrf.mxu0  ;;  %v2447_v50 = vadd.f32 %v8290_v39, %v6728_v4  ;;  %v3280_v4 = vadd.f32 %v6965_v31, %v6943_v52 }
 0x482   : > { %v3028_v17 = vpop.f32.mrf.mxu3  ;;  %v3283_v58 = vadd.f32 %v3219_v22, %v6981_v2 }
 0x483   : > { %v6990_v60 = vadd.f32 %v3028_v17, %v2864_v36  ;;  %v2811_v36 = vpop.f32.mrf.mxu2  ;;  %v2641_v46 = vadd.f32 %v6804_v15, %v2447_v50  ;;  %v3281_v15 = vadd.f32 %v3213_v63, %v6955_v53 }
 0x485   : > { %v2867_v32 = vadd.f32 %v2811_v36, %v2641_v46  ;;  %v3761_v36 = vld [vmem:[#allocation12 + $0x38] sm:$0xff] }
 0x486   : > { %v3427_v3 = vpop.f32.mrf.mxu1 }
 0x487   : > { %v6997_v51 = vadd.f32 %v3427_v3, %v3277_v30  ;;  %v3764_v30 = vld [vmem:[#allocation12 + $0x50] sm:$0xff] }
 0x488   : > { %3775 = vmatpush.msra.mxu2 %v3764_v30  ;;  %v4094_v30 = vld [vmem:[%s7987_s10 + $0x70] sm:$0xff] }
 0x489   : > { %8286 = vst [vmem:[#allocation80_spill] sm:$0xff] %v6997_v51  ;;  %3474 = vmatmul.f32.gmra.mxu1 %v3325_v20  ;;  %v3222_v17 = vpop.f32.mrf.mxu0 }
 0x48a   : > { %v3031_v7 = vpop.f32.mrf.mxu3  ;;  %3776 = vmatpush.msra.mxu2 %v3763_v11  ;;  %v3284_v34 = vadd.f32 %v3222_v17, %v6990_v60  ;;  %v4095_v60 = vld [vmem:[%s7987_s10 + $0x78] sm:$0xff] }
 0x48b   : > { %v3091_v62 = vadd.f32 %v3031_v7, %v2865_v19  ;;  %v3329_v19 = vld [vmem:[#allocation2 + $0x119] sm:$0xff]  ;;  %4097 = vmatpush.msrb.mxu3 %v4095_v60 }
 0x48c   : > { %3777 = vmatpush.msra.mxu2 %v3762_v29  ;;  %v3759_v11 = vld [vmem:[#allocation12 + $0x28] sm:$0xff]  ;;  %v8301_v60 = vld [vmem:[#allocation44_spill] sm:$0xff] }
 0x48d   : > { %4098 = vmatpush.msrb.mxu3 %v4094_v30 }
 0x48e   : > { %v3430_v38 = vpop.f32.mrf.mxu1  ;;  %3778 = vmatpush.msra.mxu2 %v3761_v36 }
 0x48f   : > { %v7004_v33 = vadd.f32 %v3430_v38, %v3278_v35 }
 0x491   : > { %8288 = vst [vmem:[#allocation46_spill] sm:$0xff] %v7004_v33  ;;  %3477 = vmatmul.f32.gmra.mxu1 %v3358_v28  ;;  %v3225_v9 = vpop.f32.mrf.mxu0 }
 0x492   : > { %v3034_v6 = vpop.f32.mrf.mxu3  ;;  %v3285_v47 = vadd.f32 %v3225_v9, %v3091_v62 }
 0x493   : > { %v3092_v21 = vadd.f32 %v3034_v6, %v2866_v12  ;;  %v7031_v12 = vpop.f32.mrf.mxu2 }
 0x496   : > { %v3433_v40 = vpop.f32.mrf.mxu1 }
 0x497   : > { %v7012_v23 = vadd.f32 %v3433_v40, %v3279_v57 }
 0x499   : > { %8291 = vst [vmem:[#allocation81_spill] sm:$0xff] %v7012_v23  ;;  %3480 = vmatmul.f32.gmra.mxu1 %v6766_v44  ;;  %v3330_v44 = vld [vmem:[#allocation2 + $0x121] sm:$0xff]  ;;  %v3228_v0 = vpop.f32.mrf.mxu0 }
 0x49a   : > { %v3037_v16 = vpop.f32.mrf.mxu3  ;;  %v3362_v52 = vmul.f32 %v6638_v13, %v3330_v44  ;;  %v3286_v57 = vadd.f32 %v3228_v0, %v3092_v21  ;;  %v3760_v21 = vld [vmem:[#allocation12 + $0x30] sm:$0xff] }
 0x49b   : > { %v3093_v8 = vadd.f32 %v3037_v16, %v2867_v32  ;;  %v7041_v22 = vpop.f32.mrf.mxu2  ;;  %3779 = vmatpush.msra.mxu2 %v3760_v21  ;;  %v4093_v0 = vld [vmem:[%s7987_s10 + $0x68] sm:$0xff] }
 0x49c   : > { %4099 = vmatpush.msrb.mxu3 %v4093_v0  ;;  %v8304_v21 = vld [vmem:[#allocation63_spill] sm:$0xff] }
 0x49d   : > { %3780 = vmatpush.msra.mxu2 %v3759_v11 }
 0x49e   : > { %v3436_v3 = vpop.f32.mrf.mxu1 }
 0x49f   : > { %v7017_v37 = vadd.f32 %v3436_v3, %v3280_v4 }
 0x4a1   : > { %8292 = vst [vmem:[#allocation34_spill] sm:$0xff] %v7017_v37  ;;  %3483 = vmatmul.f32.gmra.mxu1 %v8293_v26  ;;  %v3231_v63 = vpop.f32.mrf.mxu0 }
 0x4a2   : > { %v3287_v38 = vadd.f32 %v3231_v63, %v3093_v8  ;;  %v7035_v13 = vpop.f32.mrf.mxu3 }
 0x4a3   : > { %v7052_v32 = vpop.f32.mrf.mxu2 }
 0x4a6   : > { %v3439_v20 = vpop.f32.mrf.mxu1 }
 0x4a7   : > { %v7021_v7 = vadd.f32 %v3439_v20, %v3281_v15 }
 0x4a9   : > { %3486 = vmatmul.f32.gmra.mxu1 %v3329_v19  ;;  %v7039_v2 = vpop.f32.mrf.mxu0 }
 0x4aa   : > { %v7043_v50 = vpop.f32.mrf.mxu3 }
 0x4ab   : > { %v7063_v3 = vpop.f32.mrf.mxu2 }
 0x4ae   : > { %v3442_v31 = vpop.f32.mrf.mxu1 }
 0x4af   : > { %v7025_v43 = vadd.f32 %v3442_v31, %v3282_v56  ;;  %v3268_v56 = vadd.f32 %v6788_v1, %v6852_v5  ;;  %v3270_v5 = vadd.f32 %v6806_v55, %v6865_v25  ;;  %v8297_v55 = vld [vmem:[#allocation76_spill] sm:$0xff] }
 0x4b1   : > { %3489 = vmatmul.f32.gmra.mxu1 %v3362_v52  ;;  %v7050_v62 = vpop.f32.mrf.mxu0  ;;  %v3267_v52 = vadd.f32 %v6775_v24, %v6843_v49  ;;  %v7085_v31 = vadd.f32 %v6900_v54, %v3268_v56  ;;  %v8296_v54 = vld [vmem:[#allocation57_spill] sm:$0xff] }
 0x4b2   : > { %v7054_v17 = vpop.f32.mrf.mxu3 }
 0x4b3   : > { %v7073_v19 = vpop.f32.mrf.mxu2  ;;  %v7092_v63 = vadd.f32 %v6896_v14, %v3267_v52  ;;  %v3564_v49 = vmul.f32 %v7085_v31, %v7085_v31 }
 0x4b6   : > { %v3445_v53 = vpop.f32.mrf.mxu1 }
 0x4b7   : > { %v7028_v35 = vadd.f32 %v3445_v53, %v3283_v58  ;;  %v3269_v58 = vadd.f32 %v6797_v10, %v6859_v42  ;;  %v7106_v10 = vadd.f32 %v6919_v61, %v3270_v5  ;;  %v8295_v42 = vld [vmem:[#allocation68_spill] sm:$0xff]  ;;  %v3525_v61 = vadd.f32 %v7085_v31, %v7092_v63 }
 0x4b8   : > { %v3271_v14 = vadd.f32 %v8296_v54, %v8295_v42  ;;  %v8306_v5 = vld [vmem:[#allocation40_spill] sm:$0xff] }
 0x4b9   : > { %v7061_v4 = vpop.f32.mrf.mxu0  ;;  %8294 = vst [vmem:[#allocation82_spill] sm:$0xff] %v7106_v10  ;;  %v3566_v36 = vmul.f32 %v7106_v10, %v7106_v10 }
 0x4ba   : > { %v7067_v9 = vpop.f32.mrf.mxu3  ;;  %v7117_v25 = vadd.f32 %v8297_v55, %v3271_v14 }
 0x4bb   : > { %v7101_v24 = vpop.f32.mrf.mxu2 }
 0x4bc   : > { %8298 = vst [vmem:[#allocation49_spill] sm:$0xff] %v7117_v25  ;;  %v3567_v52 = vmul.f32 %v7117_v25, %v7117_v25 }
 0x4be   : > { %v3448_v28 = vpop.f32.mrf.mxu1 }
 0x4bf   : > { %v7033_v27 = vadd.f32 %v3448_v28, %v3284_v34  ;;  %v8299_v28 = vld [vmem:[#allocation39_spill] sm:$0xff] }
 0x4c1   : > { %v7069_v15 = vpop.f32.mrf.mxu0 }
 0x4c2   : > { %v7075_v44 = vpop.f32.mrf.mxu3 }
 0x4c6   : > { %v3451_v6 = vpop.f32.mrf.mxu1 }
 0x4c7   : > { %v7037_v39 = vadd.f32 %v3451_v6, %v3285_v47  ;;  %v8300_v47 = vld [vmem:[#allocation32_spill] sm:$0xff] }
 0x4c8   : > { %v3272_v6 = vadd.f32 %v8300_v47, %v8299_v28 }
 0x4c9   : > { %v7097_v1 = vpop.f32.mrf.mxu0 }
 0x4ca   : > { %v7110_v29 = vpop.f32.mrf.mxu3 }
 0x4ce   : > { %v3454_v40 = vpop.f32.mrf.mxu1 }
 0x4cf   : > { %v7048_v46 = vadd.f32 %v3454_v40, %v3286_v57  ;;  %v7126_v40 = vadd.f32 %v8301_v60, %v3272_v6  ;;  %v4092_v6 = vld [vmem:[%s7987_s10 + $0x60] sm:$0xff] }
 0x4d0   : > { %4100 = vmatpush.msrb.mxu3 %v4092_v6 }
 0x4d1   : > { %8302 = vst [vmem:[#allocation83_spill] sm:$0xff] %v7126_v40  ;;  %v3568_v55 = vmul.f32 %v7126_v40, %v7126_v40 }
 0x4d2   : > { %v7157_v60 = vpop.f32.mrf.mxu3 }
 0x4d6   : > { %v3457_v16 = vpop.f32.mrf.mxu1 }
 0x4d7   : > { %v7056_v8 = vadd.f32 %v3457_v16, %v3287_v38  ;;  %v7095_v38 = vadd.f32 %v6910_v59, %v3269_v58  ;;  %v3563_v59 = vmul.f32 %v7092_v63, %v7092_v63  ;;  %v8303_v16 = vld [vmem:[#allocation88_spill] sm:$0xff] }
 0x4d8   : > { %v3273_v30 = vadd.f32 %v8304_v21, %v8303_v16 }
 0x4d9   : > { %v3565_v34 = vmul.f32 %v7095_v38, %v7095_v38  ;;  %v3595_v57 = vadd.f32 %v3564_v49, %v3563_v59  ;;  %v3526_v0 = vadd.f32 %v3525_v61, %v7095_v38  ;;  %v8307_v49 = vld [vmem:[#allocation64_spill] sm:$0xff]  ;;  %v7141_v59 = vpop.f32.mrf.mxu0 }
 0x4da   : > { %v7136_v58 = vadd.f32 %v6948_v18, %v3273_v30  ;;  %v3274_v42 = vadd.f32 %v8307_v49, %v8306_v5  ;;  %v3758_v18 = vld [vmem:[#allocation12 + $0x20] sm:$0xff]  ;;  %v3572_v49 = vmul.f32 %v6987_v48, %v6987_v48 }
 0x4db   : > { %v3596_v56 = vadd.f32 %v3595_v57, %v3565_v34  ;;  %v3527_v54 = vadd.f32 %v3526_v0, %v7106_v10  ;;  %v7148_v34 = vpop.f32.mrf.mxu2  ;;  %3781 = vmatpush.msra.mxu2 %v3758_v18 }
 0x4dc   : > { %8305 = vst [vmem:[#allocation62_spill] sm:$0xff] %v7136_v58  ;;  %v7146_v28 = vadd.f32 %v6960_v45, %v3274_v42  ;;  %v3569_v57 = vmul.f32 %v7136_v58, %v7136_v58 }
 0x4dd   : > { %v3597_v14 = vadd.f32 %v3596_v56, %v3566_v36  ;;  %v3528_v47 = vadd.f32 %v3527_v54, %v7117_v25  ;;  %v3571_v56 = vmul.f32 %v6978_v41, %v6978_v41  ;;  %v8324_v25 = vld [vmem:[#allocation69_spill] sm:$0xff] }
 0x4de   : > { %v7065_v26 = vpop.f32.mrf.mxu1  ;;  %8308 = vst [vmem:[#allocation77_spill] sm:$0xff] %v7146_v28  ;;  %v3570_v16 = vmul.f32 %v7146_v28, %v7146_v28 }
 0x4df   : > { %v3598_v61 = vadd.f32 %v3597_v14, %v3567_v52  ;;  %v3529_v36 = vadd.f32 %v3528_v47, %v7126_v40 }
 0x4e1   : > { %v3599_v45 = vadd.f32 %v3598_v61, %v3568_v55  ;;  %v3530_v30 = vadd.f32 %v3529_v36, %v7136_v58  ;;  %v7170_v54 = vpop.f32.mrf.mxu0  ;;  %v3573_v55 = vmul.f32 %v6997_v51, %v6997_v51  ;;  %v3574_v61 = vmul.f32 %v7004_v33, %v7004_v33 }
 0x4e3   : > { %v3600_v0 = vadd.f32 %v3599_v45, %v3569_v57  ;;  %v3531_v52 = vadd.f32 %v3530_v30, %v7146_v28  ;;  %v7174_v47 = vpop.f32.mrf.mxu2  ;;  %v7182_v45 = vpop.f32.mrf.mxu3  ;;  %v3575_v30 = vmul.f32 %v7012_v23, %v7012_v23 }
 0x4e5   : > { %v3601_v5 = vadd.f32 %v3600_v0, %v3570_v16  ;;  %v3532_v42 = vadd.f32 %v3531_v52, %v6978_v41  ;;  %v8310_v52 = vld [vmem:[#allocation86_spill] sm:$0xff] }
 0x4e6   : > { %v7071_v20 = vpop.f32.mrf.mxu1 }
 0x4e7   : > { %v3602_v14 = vadd.f32 %v3601_v5, %v3571_v56  ;;  %v3533_v18 = vadd.f32 %v3532_v42, %v6987_v48  ;;  %v8309_v56 = vld [vmem:[#allocation70_spill] sm:$0xff] }
 0x4e8   : > { %v2448_v5 = vadd.f32 %v8310_v52, %v8309_v56  ;;  %v8312_v48 = vld [vmem:[#allocation66_spill] sm:$0xff]  ;;  %v3577_v56 = vmul.f32 %v7021_v7, %v7021_v7 }
 0x4e9   : > { %v3603_v6 = vadd.f32 %v3602_v14, %v3572_v49  ;;  %v3534_v36 = vadd.f32 %v3533_v18, %v6997_v51  ;;  %v3576_v49 = vmul.f32 %v7017_v37, %v7017_v37  ;;  %v8311_v14 = vld [vmem:[#allocation73_spill] sm:$0xff]  ;;  %v3757_v51 = vld [vmem:[#allocation12 + $0x18] sm:$0xff] }
 0x4ea   : > { %v2449_v41 = vadd.f32 %v8312_v48, %v8311_v14  ;;  %3782 = vmatpush.msra.mxu2 %v3757_v51  ;;  %v8316_v14 = vld [vmem:[#allocation59_spill] sm:$0xff] }
 0x4eb   : > { %v3604_v16 = vadd.f32 %v3603_v6, %v3573_v55  ;;  %v3535_v0 = vadd.f32 %v3534_v36, %v7004_v33  ;;  %v4091_v55 = vld [vmem:[%s7987_s10 + $0x58] sm:$0xff]  ;;  %v7205_v33 = vpop.f32.mrf.mxu0  ;;  %v7227_v10 = vpop.f32.mrf.mxu3 }
 0x4ec   : > { %v8313_v6 = vld [vmem:[#allocation56_spill] sm:$0xff]  ;;  %4101 = vmatpush.msrb.mxu3 %v4091_v55  ;;  %v8318_v55 = vld [vmem:[#allocation30_spill] sm:$0xff] }
 0x4ed   : > { %v3605_v42 = vadd.f32 %v3604_v16, %v3574_v61  ;;  %v3536_v18 = vadd.f32 %v3535_v0, %v7012_v23  ;;  %v2642_v28 = vadd.f32 %v8313_v6, %v2448_v5  ;;  %v8314_v61 = vld [vmem:[#allocation75_spill] sm:$0xff]  ;;  %v2643_v0 = vadd.f32 %v8316_v14, %v2449_v41  ;;  %v8321_v14 = vld [vmem:[#allocation53_spill] sm:$0xff] }
 0x4ee   : > { %v7089_v53 = vpop.f32.mrf.mxu1  ;;  %v8315_v16 = vld [vmem:[#allocation47_spill] sm:$0xff] }
 0x4ef   : > { %v3606_v36 = vadd.f32 %v3605_v42, %v3575_v30  ;;  %v2450_v52 = vadd.f32 %v8315_v16, %v8314_v61  ;;  %v3537_v48 = vadd.f32 %v3536_v18, %v7017_v37  ;;  %v2868_v23 = vadd.f32 %v7031_v12, %v2642_v28  ;;  %v8317_v42 = vld [vmem:[#allocation60_spill] sm:$0xff]  ;;  %v8319_v6 = vld [vmem:[#allocation67_spill] sm:$0xff]  ;;  %v7214_v61 = vpop.f32.mrf.mxu2  ;;  %v8322_v37 = vld [vmem:[#allocation54_spill] sm:$0xff] }
 0x4f0   : > { %v3578_v30 = vmul.f32 %v7025_v43, %v7025_v43  ;;  %v2451_v40 = vadd.f32 %v8319_v6, %v8318_v55  ;;  %v2869_v41 = vadd.f32 %v7041_v22, %v2643_v0  ;;  %v8327_v0 = vld [vmem:[#allocation25_spill] sm:$0xff] }
 0x4f1   : > { %v3607_v58 = vadd.f32 %v3606_v36, %v3576_v49  ;;  %v2644_v51 = vadd.f32 %v8317_v42, %v2450_v52  ;;  %v3538_v18 = vadd.f32 %v3537_v48, %v7021_v7  ;;  %v3094_v12 = vadd.f32 %v7035_v13, %v2868_v23  ;;  %v8320_v36 = vld [vmem:[#allocation33_spill] sm:$0xff]  ;;  %v8323_v42 = vld [vmem:[#allocation31_spill] sm:$0xff]  ;;  %v8326_v48 = vld [vmem:[#allocation48_spill] sm:$0xff] }
 0x4f2   : > { %v3579_v49 = vmul.f32 %v7028_v35, %v7028_v35  ;;  %v2645_v16 = vadd.f32 %v8320_v36, %v2451_v40  ;;  %v2452_v52 = vadd.f32 %v8322_v37, %v8321_v14  ;;  %v2453_v55 = vadd.f32 %v8324_v25, %v8323_v42  ;;  %v8328_v36 = vld [vmem:[#allocation27_spill] sm:$0xff] }
 0x4f3   : > { %v3608_v28 = vadd.f32 %v3607_v58, %v3577_v56  ;;  %v3539_v6 = vadd.f32 %v3538_v18, %v7025_v43  ;;  %v2870_v22 = vadd.f32 %v7052_v32, %v2644_v51  ;;  %v3095_v23 = vadd.f32 %v7043_v50, %v2869_v41  ;;  %v8325_v56 = vld [vmem:[#allocation55_spill] sm:$0xff]  ;;  %v8330_v41 = vld [vmem:[#allocation41_spill] sm:$0xff] }
 0x4f4   : > { %v3580_v58 = vmul.f32 %v7033_v27, %v7033_v27  ;;  %v2871_v40 = vadd.f32 %v7063_v3, %v2645_v16  ;;  %v2454_v37 = vadd.f32 %v8326_v48, %v8325_v56  ;;  %v2455_v25 = vadd.f32 %v8328_v36, %v8327_v0  ;;  %v8331_v3 = vld [vmem:[#allocation71_spill] sm:$0xff]  ;;  %v8334_v0 = vld [vmem:[#allocation74_spill] sm:$0xff] }
 0x4f5   : > { %v3609_v13 = vadd.f32 %v3608_v28, %v3578_v30  ;;  %v3540_v18 = vadd.f32 %v3539_v6, %v7028_v35  ;;  %v3096_v14 = vadd.f32 %v7054_v17, %v2870_v22  ;;  %v3581_v50 = vmul.f32 %v7037_v39, %v7037_v39  ;;  %v8329_v30 = vld [vmem:[#allocation35_spill] sm:$0xff] }
 0x4f6   : > { %v7130_v11 = vpop.f32.mrf.mxu1  ;;  %v3288_v32 = vadd.f32 %v7039_v2, %v3094_v12  ;;  %v2646_v51 = vadd.f32 %v8329_v30, %v2452_v52  ;;  %v2456_v28 = vadd.f32 %v8331_v3, %v8330_v41  ;;  %v3097_v16 = vadd.f32 %v7067_v9, %v2871_v40  ;;  %v8332_v2 = vld [vmem:[#allocation36_spill] sm:$0xff]  ;;  %v3258_v40 = vpop.f32.mrf.mxu0  ;;  %v8336_v3 = vld [vmem:[#allocation38_spill] sm:$0xff] }
 0x4f7   : > { %v3610_v42 = vadd.f32 %v3609_v13, %v3579_v49  ;;  %v3541_v56 = vadd.f32 %v3540_v18, %v7033_v27  ;;  %v3582_v6 = vmul.f32 %v7048_v46, %v7048_v46  ;;  %v3289_v49 = vadd.f32 %v7050_v62, %v3095_v23  ;;  %v8333_v13 = vld [vmem:[#allocation28_spill] sm:$0xff]  ;;  %v8335_v23 = vld [vmem:[#allocation65_spill] sm:$0xff] }
 0x4f8   : > { %v7251_v17 = vadd.f32 %v7065_v26, %v3288_v32  ;;  %v2647_v12 = vadd.f32 %v8332_v2, %v2453_v55  ;;  %v2872_v52 = vadd.f32 %v7073_v19, %v2646_v51  ;;  %v2457_v36 = vadd.f32 %v8334_v0, %v8333_v13  ;;  %v2841_v19 = vpop.f32.mrf.mxu2 }
 0x4f9   : > { %v3611_v48 = vadd.f32 %v3610_v42, %v3580_v58  ;;  %v3542_v9 = vadd.f32 %v3541_v56, %v7037_v39  ;;  %v3583_v18 = vmul.f32 %v7056_v8, %v7056_v8  ;;  %v7262_v26 = vadd.f32 %v7071_v20, %v3289_v49  ;;  %v8337_v56 = vld [vmem:[#allocation87_spill] sm:$0xff] }
 0x4fa   : > { %v3290_v62 = vadd.f32 %v7061_v4, %v3096_v14  ;;  %v2648_v42 = vadd.f32 %v8335_v23, %v2454_v37  ;;  %v2873_v55 = vadd.f32 %v7101_v24, %v2647_v12  ;;  %v3098_v32 = vadd.f32 %v7075_v44, %v2872_v52  ;;  %v3067_v44 = vpop.f32.mrf.mxu3  ;;  %v8339_v23 = vld [vmem:[#allocation61_spill] sm:$0xff] }
 0x4fb   : > { %v3612_v58 = vadd.f32 %v3611_v48, %v3581_v50  ;;  %v3543_v30 = vadd.f32 %v3542_v9, %v7048_v46  ;;  %v3584_v50 = vmul.f32 %v7251_v17, %v7251_v17  ;;  %v3291_v20 = vadd.f32 %v7069_v15, %v3097_v16  ;;  %v8338_v16 = vld [vmem:[#allocation72_spill] sm:$0xff] }
 0x4fc   : > { %v7272_v41 = vadd.f32 %v7089_v53, %v3290_v62  ;;  %v2649_v4 = vadd.f32 %v8336_v3, %v2455_v25  ;;  %v2874_v37 = vadd.f32 %v7148_v34, %v2648_v42  ;;  %v3099_v24 = vadd.f32 %v7110_v29, %v2873_v55 }
 0x4fd   : > { %v3613_v51 = vadd.f32 %v3612_v58, %v3582_v6  ;;  %v3544_v14 = vadd.f32 %v3543_v30, %v7056_v8  ;;  %v2650_v48 = vadd.f32 %v8337_v56, %v2456_v28  ;;  %v3585_v49 = vmul.f32 %v7262_v26, %v7262_v26 }
 0x4fe   : > { %v7161_v21 = vpop.f32.mrf.mxu1  ;;  %v7283_v53 = vadd.f32 %v7130_v11, %v3291_v20  ;;  %v2875_v15 = vadd.f32 %v7174_v47, %v2649_v4  ;;  %v3100_v25 = vadd.f32 %v7157_v60, %v2874_v37  ;;  %v3292_v29 = vadd.f32 %v7097_v1, %v3098_v32  ;;  %v3261_v1 = vpop.f32.mrf.mxu0 }
 0x4ff   : > { %v3614_v6 = vadd.f32 %v3613_v51, %v3583_v18  ;;  %v3545_v34 = vadd.f32 %v3544_v14, %v7251_v17  ;;  %v2651_v2 = vadd.f32 %v8338_v16, %v2457_v36  ;;  %v2876_v12 = vadd.f32 %v7214_v61, %v2650_v48 }
 0x500   : > { %v3586_v52 = vmul.f32 %v7272_v41, %v7272_v41  ;;  %v3101_v11 = vadd.f32 %v7182_v45, %v2875_v15  ;;  %v7296_v47 = vadd.f32 %v7161_v21, %v3292_v29  ;;  %v3293_v60 = vadd.f32 %v7141_v59, %v3099_v24  ;;  %v8340_v21 = vld [vmem:[#allocation51_spill] sm:$0xff] }
 0x501   : > { %v3615_v28 = vadd.f32 %v3614_v6, %v3584_v50  ;;  %v3546_v0 = vadd.f32 %v3545_v34, %v7262_v26  ;;  %v2877_v9 = vadd.f32 %v2841_v19, %v2651_v2  ;;  %v3587_v61 = vmul.f32 %v7283_v53, %v7283_v53  ;;  %v2844_v19 = vpop.f32.mrf.mxu2 }
 0x502   : > { %v3102_v36 = vadd.f32 %v7227_v10, %v2876_v12  ;;  %v3294_v45 = vadd.f32 %v7170_v54, %v3100_v25  ;;  %v2458_v42 = vadd.f32 %v8340_v21, %v8339_v23  ;;  %v3588_v30 = vmul.f32 %v7296_v47, %v7296_v47  ;;  %v3070_v54 = vpop.f32.mrf.mxu3 }
 0x503   : > { %v3616_v58 = vadd.f32 %v3615_v28, %v3585_v49  ;;  %v3547_v18 = vadd.f32 %v3546_v0, %v7272_v41  ;;  %v3103_v55 = vadd.f32 %v3067_v44, %v2877_v9  ;;  %v3295_v51 = vadd.f32 %v7205_v33, %v3101_v11 }
 0x504   : > { %v3296_v24 = vadd.f32 %v3258_v40, %v3102_v36 }
 0x505   : > { %v3617_v59 = vadd.f32 %v3616_v58, %v3586_v52  ;;  %v3548_v32 = vadd.f32 %v3547_v18, %v7283_v53  ;;  %v3297_v44 = vadd.f32 %v3261_v1, %v3103_v55 }
 0x506   : > { %v7179_v57 = vpop.f32.mrf.mxu1  ;;  %v3264_v40 = vpop.f32.mrf.mxu0 }
 0x507   : > { %v7304_v62 = vadd.f32 %v7179_v57, %v3293_v60  ;;  %v8341_v57 = vld [vmem:[#allocation89_spill] sm:$0xff]  ;;  %v3618_v20 = vadd.f32 %v3617_v59, %v3587_v61  ;;  %v3549_v3 = vadd.f32 %v3548_v32, %v7296_v47 }
 0x508   : > { %v2652_v50 = vadd.f32 %v8341_v57, %v2458_v42  ;;  %v8342_v57 = vld [vmem:[#allocation26_spill] sm:$0xff] }
 0x509   : > { %v3589_v4 = vmul.f32 %v7304_v62, %v7304_v62  ;;  %v3619_v48 = vadd.f32 %v3618_v20, %v3588_v30 }
 0x50a   : > { %v2878_v14 = vadd.f32 %v2844_v19, %v2652_v50 }
 0x50b   : > { %v3620_v15 = vadd.f32 %v3619_v48, %v3589_v4  ;;  %v3755_v48 = vld [vmem:[#allocation12 + $0x8] sm:$0xff] }
 0x50c   : > { %v3104_v49 = vadd.f32 %v3070_v54, %v2878_v14 }
 0x50e   : > { %v7209_v5 = vpop.f32.mrf.mxu1  ;;  %v3298_v12 = vadd.f32 %v3264_v40, %v3104_v49  ;;  %v4088_v49 = vld [vmem:[%s7987_s10 + $0x40] sm:$0xff] }
 0x50f   : > { %v7313_v10 = vadd.f32 %v7209_v5, %v3294_v45  ;;  %v3550_v5 = vadd.f32 %v3549_v3, %v7304_v62 }
 0x511   : > { %v3590_v33 = vmul.f32 %v7313_v10, %v7313_v10  ;;  %v3551_v25 = vadd.f32 %v3550_v5, %v7313_v10  ;;  %v4089_v5 = vld [vmem:[%s7987_s10 + $0x48] sm:$0xff] }
 0x513   : > { %v3621_v29 = vadd.f32 %v3620_v15, %v3590_v33  ;;  %v3754_v33 = vld [vmem:[#allocation12] sm:$0xff] }
 0x514   : > { %v4087_v15 = vld [vmem:[%s7987_s10 + $0x38] sm:$0xff] }
 0x516   : > { %v3481_v22 = vpop.f32.mrf.mxu1 }
 0x517   : > { %v7320_v37 = vadd.f32 %v3481_v22, %v3295_v51 }
 0x519   : > { %v3591_v22 = vmul.f32 %v7320_v37, %v7320_v37  ;;  %v3552_v16 = vadd.f32 %v3551_v25, %v7320_v37 }
 0x51b   : > { %v3622_v28 = vadd.f32 %v3621_v29, %v3591_v22 }
 0x51e   : > { %v3484_v13 = vpop.f32.mrf.mxu1 }
 0x51f   : > { %v7325_v6 = vadd.f32 %v3484_v13, %v3296_v24 }
 0x521   : > { %v3592_v2 = vmul.f32 %v7325_v6, %v7325_v6  ;;  %v3553_v52 = vadd.f32 %v3552_v16, %v7325_v6 }
 0x523   : > { %v3623_v0 = vadd.f32 %v3622_v28, %v3592_v2  ;;  %v3636_v2 = vld [vmem:[#allocation9] sm:$0x1] }
 0x526   : > { %v3487_v56 = vpop.f32.mrf.mxu1 }
 0x527   : > { %v7330_v34 = vadd.f32 %v3487_v56, %v3297_v44  ;;  %v3756_v44 = vld [vmem:[#allocation12 + $0x10] sm:$0xff]  ;;  %v4090_v56 = vld [vmem:[%s7987_s10 + $0x50] sm:$0xff] }
 0x528   : > { %3783 = vmatpush.msra.mxu2 %v3756_v44  ;;  %4102 = vmatpush.msrb.mxu3 %v4090_v56  ;;  %v4084_v56 = vld [vmem:[%s7987_s10 + $0x20] sm:$0xff] }
 0x529   : > { %v3593_v13 = vmul.f32 %v7330_v34, %v7330_v34  ;;  %v3554_v60 = vadd.f32 %v3553_v52, %v7330_v34 }
 0x52a   : > { %3784 = vmatpush.msra.mxu2 %v3755_v48  ;;  %4103 = vmatpush.msrb.mxu3 %v4089_v5  ;;  %v8348_v5 = vld [vmem:[#allocation79_spill] sm:$0xff] }
 0x52b   : > { %v3624_v1 = vadd.f32 %v3623_v0, %v3593_v13  ;;  %v4086_v13 = vld [vmem:[%s7987_s10 + $0x30] sm:$0xff] }
 0x52c   : > { %3785 = vmatpush.msra.mxu2 %v3754_v33  ;;  %4104 = vmatpush.msrb.mxu3 %v4088_v49  ;;  %v8349_v49 = vld [vmem:[#allocation29_spill] sm:$0xff] }
 0x52e   : > { %v3490_v11 = vpop.f32.mrf.mxu1  ;;  %4105 = vmatpush.msrb.mxu3 %v4087_v15 }
 0x52f   : > { %v3524_v9 = vadd.f32 %v3490_v11, %v3298_v12  ;;  %v3649_v11 = vld [vmem:[#allocation11] sm:$0x1] }
 0x530   : > { %4106 = vmatpush.msrb.mxu3 %v4086_v13 }
 0x531   : > { %v3555_v58 = vadd.f32 %v3554_v60, %v3524_v9  ;;  %v3594_v61 = vmul.f32 %v3524_v9, %v3524_v9 }
 0x533   : > { %v3556_v36 = vrot.slane %v3555_v58, 4  ;;  %v3625_v18 = vadd.f32 %v3624_v1, %v3594_v61 }
 0x535   : > { %v3557_v45 = vadd.f32 %v3556_v36, %v3555_v58  ;;  %v3626_v23 = vrot.slane %v3625_v18, 4 }
 0x537   : > { %v3558_v21 = vrot.slane %v3557_v45, 2  ;;  %v3627_v42 = vadd.f32 %v3626_v23, %v3625_v18  ;;  %v8343_v23 = vld [vmem:[#allocation82_spill] sm:$0xff] }
 0x539   : > { %v3559_v55 = vadd.f32 %v3558_v21, %v3557_v45  ;;  %v3628_v59 = vrot.slane %v3627_v42, 2 }
 0x53b   : > { %v3560_v19 = vrot.slane %v3559_v55, 1  ;;  %v3629_v32 = vadd.f32 %v3628_v59, %v3627_v42  ;;  %v8344_v42 = vld [vmem:[#allocation49_spill] sm:$0xff] }
 0x53d   : > { %v3561_v30 = vadd.f32 %v3560_v19, %v3559_v55  ;;  %v3630_v51 = vrot.slane %v3629_v32, 1 }
 0x53f   : > { %v3562_v50 = vmul.f32 %v3561_v30, %v8342_v57  ;;  %v3631_v20 = vadd.f32 %v3630_v51, %v3629_v32  ;;  %v8345_v32 = vld [vmem:[#allocation83_spill] sm:$0xff] }
 0x541   : > { %v3632_v54 = vmul.f32 %v3631_v20, %v8342_v57  ;;  %v3633_v3 = vmul.f32 %v3562_v50, %v3562_v50  ;;  %v8346_v20 = vld [vmem:[#allocation62_spill] sm:$0xff] }
 0x543   : > { %v3634_v4 = vsub.f32 %v3632_v54, %v3633_v3 }
 0x545   : > { %v3635_v24 = vmax.f32 %v3634_v4, 0.0 }
 0x547   : > { %v3637_v14 = vadd.f32 1e-05, %v3635_v24  ;;  %v8347_v24 = vld [vmem:[#allocation77_spill] sm:$0xff] }
 0x549   : > { %4740 = vrsqrt.f32 %v3637_v14  ;;  %vm3644_vm5 = vweird.f32 %v3637_v14 }
 0x54f   : > { %v4741_v25 = vpop.eup %4740 }
 0x550   : > { %v3639_v22 = vmul.f32 %v4741_v25, %v3637_v14  ;;  %vm3645_vm4 = vweird.f32 %v4741_v25 }
 0x551   : > { %vm3646_vm6 = vmor %vm3644_vm5, %vm3645_vm4 }
 0x552   : > { %v3640_v40 = vmul.f32 %v4741_v25, %v3639_v22  ;;  %v8350_v22 = vld [vmem:[#allocation80_spill] sm:$0xff] }
 0x554   : > { %v3641_v29 = vmul.f32 0.5, %v3640_v40 }
 0x556   : > { %v3642_v16 = vsub.f32 1.5, %v3641_v29  ;;  %v8351_v29 = vld [vmem:[#allocation46_spill] sm:$0xff] }
 0x558   : > { %v3643_v12 = vmul.f32 %v4741_v25, %v3642_v16 }
 0x55a   : > { %v3647_v28 = vsel %vm3646_vm6, %v4741_v25, %v3643_v12 }
 0x55b   : > { %v3648_v52 = vmul.f32 %v3647_v28, %v3636_v2  ;;  %v8352_v2 = vld [vmem:[#allocation81_spill] sm:$0xff]  ;;  %v8353_v28 = vld [vmem:[#allocation34_spill] sm:$0xff] }
 0x55d   : > { %v3650_v0 = vmul.f32 %v3648_v52, %v3562_v50  ;;  %v7356_v60 = vperm.slane %v3648_v52, 0 }
 0x55f   : > { %v3651_v1 = vsub.f32 %v3649_v11, %v3650_v0  ;;  %v7359_v58 = vmul.f32 %v7356_v60, %v3524_v9  ;;  %v3655_v36 = vmul.f32 %v7356_v60, %v7092_v63  ;;  %v3656_v18 = vmul.f32 %v7356_v60, %v7085_v31 }
 0x560   : > { %v3657_v45 = vmul.f32 %v7356_v60, %v7095_v38  ;;  %v3658_v21 = vmul.f32 %v7356_v60, %v8343_v23  ;;  %v3659_v55 = vmul.f32 %v7356_v60, %v8344_v42  ;;  %v7375_v9 = vmul.f32 %v7356_v60, %v7330_v34  ;;  %v4085_v34 = vld [vmem:[%s7987_s10 + $0x28] sm:$0xff] }
 0x561   : > { %v7361_v61 = vperm.slane %v3651_v1, 0  ;;  %v3660_v30 = vmul.f32 %v7356_v60, %v8345_v32  ;;  %4107 = vmatpush.msrb.mxu3 %v4085_v34  ;;  %v3661_v54 = vmul.f32 %v7356_v60, %v8346_v20  ;;  %v3662_v14 = vmul.f32 %v7356_v60, %v8347_v24 }
 0x562   : > { %v3663_v33 = vmul.f32 %v7356_v60, %v8348_v5  ;;  %v3664_v15 = vmul.f32 %v7356_v60, %v8349_v49  ;;  %v3665_v40 = vmul.f32 %v7356_v60, %v8350_v22  ;;  %v3666_v16 = vmul.f32 %v7356_v60, %v8351_v29  ;;  %v4082_v5 = vld [vmem:[%s7987_s10 + $0x10] sm:$0xff] }
 0x563   : > { %v3690_v59 = vadd.f32 %v7361_v61, %v3655_v36  ;;  %v3691_v63 = vadd.f32 %v7361_v61, %v3656_v18  ;;  %v3692_v19 = vadd.f32 %v7361_v61, %v3657_v45  ;;  %v3693_v31 = vadd.f32 %v7361_v61, %v3658_v21  ;;  %4108 = vmatpush.msrb.mxu3 %v4084_v56 }
 0x564   : > { %v3694_v38 = vadd.f32 %v7361_v61, %v3659_v55  ;;  %v7388_v50 = vadd.f32 %v7361_v61, %v3660_v30  ;;  %v3696_v4 = vadd.f32 %v7361_v61, %v3661_v54  ;;  %v3697_v48 = vadd.f32 %v7361_v61, %v3662_v14 }
 0x565   : > { %v3722_v51 = vmax.f32 %v3690_v59, 0.0  ;;  %v3723_v3 = vmax.f32 %v3691_v63, 0.0  ;;  %v3724_v44 = vmax.f32 %v3692_v19, 0.0  ;;  %v3725_v25 = vmax.f32 %v3693_v31, 0.0 }
 0x566   : > { %v3667_v12 = vmul.f32 %v7356_v60, %v8352_v2  ;;  %v3668_v52 = vmul.f32 %v7356_v60, %v8353_v28  ;;  %v3669_v13 = vmul.f32 %v7356_v60, %v7021_v7  ;;  %v3670_v11 = vmul.f32 %v7356_v60, %v7025_v43 }
 0x567   : > { %3786 = vmatmul.f32.vlgmr.msra.gmra.mxu2 %v3722_v51  ;;  %v3671_v0 = vmul.f32 %v7356_v60, %v7028_v35  ;;  %v3698_v1 = vadd.f32 %v7361_v61, %v3663_v33  ;;  %v3699_v36 = vadd.f32 %v7361_v61, %v3664_v15  ;;  %v3700_v18 = vadd.f32 %v7361_v61, %v3665_v40 }
 0x568   : > { %v3701_v45 = vadd.f32 %v7361_v61, %v3666_v16  ;;  %v3702_v23 = vadd.f32 %v7361_v61, %v3667_v12  ;;  %v3672_v7 = vmul.f32 %v7356_v60, %v7033_v27  ;;  %v3703_v21 = vadd.f32 %v7361_v61, %v3668_v52 }
 0x569   : > { %v3704_v43 = vadd.f32 %v7361_v61, %v3669_v13  ;;  %v3705_v35 = vadd.f32 %v7361_v61, %v3670_v11  ;;  %v3673_v42 = vmul.f32 %v7356_v60, %v7037_v39  ;;  %v3674_v55 = vmul.f32 %v7356_v60, %v7048_v46 }
 0x56a   : > { %v3675_v59 = vmul.f32 %v7356_v60, %v7056_v8  ;;  %v3676_v63 = vmul.f32 %v7356_v60, %v7251_v17  ;;  %v3677_v27 = vmul.f32 %v7356_v60, %v7262_v26  ;;  %v3678_v19 = vmul.f32 %v7356_v60, %v7272_v41 }
 0x56b   : > { %v3679_v31 = vmul.f32 %v7356_v60, %v7283_v53  ;;  %v3706_v39 = vadd.f32 %v7361_v61, %v3671_v0  ;;  %v3707_v32 = vadd.f32 %v7361_v61, %v3672_v7  ;;  %v3708_v46 = vadd.f32 %v7361_v61, %v3673_v42 }
 0x56c   : > { %v3709_v8 = vadd.f32 %v7361_v61, %v3674_v55  ;;  %v7446_v30 = vadd.f32 %v7361_v61, %v3675_v59  ;;  %v3726_v17 = vmax.f32 %v3694_v38, 0.0  ;;  %v7449_v26 = vadd.f32 %v7361_v61, %v3676_v63 }
 0x56d   : > { %v7452_v41 = vadd.f32 %v7361_v61, %v3677_v27  ;;  %v7455_v53 = vadd.f32 %v7361_v61, %v3678_v19  ;;  %v3680_v51 = vmul.f32 %v7356_v60, %v7296_v47  ;;  %v3681_v34 = vmul.f32 %v7356_v60, %v7304_v62  ;;  %v4096_v19 = vld [vmem:[#allocation17] sm:$0x1] }
 0x56e   : > { %v3682_v20 = vmul.f32 %v7356_v60, %v7313_v10  ;;  %v3683_v38 = vmul.f32 %v7356_v60, %v7320_v37  ;;  %v3684_v54 = vmul.f32 %v7356_v60, %v7325_v6  ;;  %v7471_v24 = vadd.f32 %v7361_v61, %v3679_v31 }
 0x56f   : > { %3789 = vmatmul.f32.gmra.mxu2 %v3723_v3  ;;  %v4083_v3 = vld [vmem:[%s7987_s10 + $0x18] sm:$0xff]  ;;  %v7474_v47 = vadd.f32 %v7361_v61, %v3680_v51  ;;  %v7477_v62 = vadd.f32 %v7361_v61, %v3681_v34  ;;  %v7490_v60 = vadd.f32 %v7361_v61, %v7375_v9  ;;  %v7494_v14 = vadd.f32 %v7361_v61, %v7359_v58  ;;  %v4081_v9 = vld [vmem:[%s7987_s10 + $0x8] sm:$0xff] }
 0x570   : > { %4109 = vmatpush.msrb.mxu3 %v4083_v3  ;;  %v7480_v10 = vadd.f32 %v7361_v61, %v3682_v20  ;;  %v7483_v37 = vadd.f32 %v7361_v61, %v3683_v38  ;;  %v7486_v6 = vadd.f32 %v7361_v61, %v3684_v54  ;;  %v3728_v56 = vmax.f32 %v3696_v4, 0.0  ;;  %v7506_v4 = vld [vmem:[#allocation15] sm:$0x1] }
 0x571   : > { %v3729_v33 = vmax.f32 %v3697_v48, 0.0  ;;  %v3730_v49 = vmax.f32 %v3698_v1, 0.0  ;;  %v3731_v58 = vmax.f32 %v3699_v36, 0.0  ;;  %v3732_v61 = vmax.f32 %v3700_v18, 0.0 }
 0x572   : > { %4110 = vmatpush.msrb.mxu3 %v4082_v5  ;;  %v3733_v48 = vmax.f32 %v3701_v45, 0.0  ;;  %v3734_v15 = vmax.f32 %v3702_v23, 0.0  ;;  %v3736_v22 = vmax.f32 %v3704_v43, 0.0  ;;  %v3737_v40 = vmax.f32 %v3705_v35, 0.0 }
 0x573   : > { %v3738_v29 = vmax.f32 %v3706_v39, 0.0  ;;  %v3739_v2 = vmax.f32 %v3707_v32, 0.0  ;;  %v3740_v28 = vmax.f32 %v3708_v46, 0.0  ;;  %v3741_v13 = vmax.f32 %v3709_v8, 0.0 }
 0x574   : > { %4111 = vmatpush.msrb.mxu3 %v4081_v9  ;;  %v3742_v0 = vmax.f32 %v7446_v30, 0.0  ;;  %v3743_v36 = vmax.f32 %v7449_v26, 0.0  ;;  %v3744_v45 = vmax.f32 %v7452_v41, 0.0  ;;  %v3745_v7 = vmax.f32 %v7455_v53, 0.0  ;;  %v4118_v30 = vld [vmem:[%s8354_s28] sm:$0xff] }
 0x575   : > { %v3746_v43 = vmax.f32 %v7471_v24, 0.0  ;;  %v3747_v42 = vmax.f32 %v7474_v47, 0.0  ;;  %v3748_v59 = vmax.f32 %v7477_v62, 0.0  ;;  %v3749_v27 = vmax.f32 %v7480_v10, 0.0 }
 0x576   : > { %v3750_v8 = vmax.f32 %v7483_v37, 0.0  ;;  %v3751_v26 = vmax.f32 %v7486_v6, 0.0  ;;  %v3752_v53 = vmax.f32 %v7490_v60, 0.0  ;;  %v3753_v34 = vmax.f32 %v7494_v14, 0.0 }
 0x577   : > { %3792 = vmatmul.f32.gmra.mxu2 %v3724_v44  ;;  %v3727_v44 = vmax.f32 %v7388_v50, 0.0  ;;  %v4080_v50 = vld [vmem:[%s7987_s10] sm:$0xff] }
 0x578   : > { %4112 = vmatpush.msrb.mxu3 %v4080_v50 }
 0x579   : > { %4113 = vmatmul.f32.vlgmr.msrb.gmra.mxu3 %v7506_v4 }
 0x57a   : > { %4139 = vmatpush.msra.mxu3 %v4118_v30 }
 0x57f   : > { %3795 = vmatmul.f32.gmra.mxu2 %v3725_v25  ;;  %v3735_v25 = vmax.f32 %v3703_v21, 0.0 }
 0x587   : > { %3798 = vmatmul.f32.gmra.mxu2 %v3726_v17 }
 0x58f   : > { %3801 = vmatmul.f32.gmra.mxu2 %v3727_v44 }
 0x597   : > { %3804 = vmatmul.f32.gmra.mxu2 %v3728_v56 }
 0x59f   : > { %3807 = vmatmul.f32.gmra.mxu2 %v3729_v33 }
 0x5a7   : > { %3810 = vmatmul.f32.gmra.mxu2 %v3730_v49 }
 0x5af   : > { %3813 = vmatmul.f32.gmra.mxu2 %v3731_v58 }
 0x5b7   : > { %3816 = vmatmul.f32.gmra.mxu2 %v3732_v61 }
 0x5bf   : > { %3819 = vmatmul.f32.gmra.mxu2 %v3733_v48 }
 0x5c7   : > { %3822 = vmatmul.f32.gmra.mxu2 %v3734_v15 }
 0x5cf   : > { %3825 = vmatmul.f32.gmra.mxu2 %v3735_v25 }
 0x5d7   : > { %3828 = vmatmul.f32.gmra.mxu2 %v3736_v22 }
 0x5df   : > { %3831 = vmatmul.f32.gmra.mxu2 %v3737_v40 }
 0x5e7   : > { %3834 = vmatmul.f32.gmra.mxu2 %v3738_v29 }
 0x5ea   : > { %v7509_v16 = vpop.f32.mrf.mxu2 }
 0x5eb   : > { %v3921_v60 = vmul.f32 %v7509_v16, %v7509_v16 }
 0x5ef   : > { %3837 = vmatmul.f32.gmra.mxu2 %v3739_v2 }
 0x5f2   : > { %v7511_v12 = vpop.f32.mrf.mxu2 }
 0x5f3   : > { %v3922_v6 = vmul.f32 %v7511_v12, %v7511_v12  ;;  %v3883_v14 = vadd.f32 %v7511_v12, %v7509_v16 }
 0x5f5   : > { %v3953_v56 = vadd.f32 %v3922_v6, %v3921_v60 }
 0x5f7   : > { %3840 = vmatmul.f32.gmra.mxu2 %v3740_v28 }
 0x5fa   : > { %v7513_v52 = vpop.f32.mrf.mxu2 }
 0x5fb   : > { %v3923_v44 = vmul.f32 %v7513_v52, %v7513_v52  ;;  %v3884_v5 = vadd.f32 %v3883_v14, %v7513_v52 }
 0x5fc   : > { %v4114_v31 = vpop.f32.mrf.mxu3 }
 0x5fd   : > { %v4115_v39 = vadd.f32 %v4114_v31, %v4096_v19  ;;  %v3954_v9 = vadd.f32 %v3953_v56, %v3923_v44 }
 0x5ff   : > { %3843 = vmatmul.f32.gmra.mxu2 %v3741_v13  ;;  %v4117_v46 = vmax.f32 %v4115_v39, 0.0 }
 0x601   : > { %4546 = vmatmul.msk.f32.vlgmr.msra.gmra.mxu3 %vm4120_vm7, %v4117_v46 }
 0x602   : > { %v7515_v11 = vpop.f32.mrf.mxu2 }
 0x603   : > { %v3924_v33 = vmul.f32 %v7515_v11, %v7515_v11  ;;  %v3885_v58 = vadd.f32 %v3884_v5, %v7515_v11 }
 0x605   : > { %v3955_v50 = vadd.f32 %v3954_v9, %v3924_v33 }
 0x607   : > { %3846 = vmatmul.f32.gmra.mxu2 %v3742_v0 }
 0x60a   : > { %v7518_v1 = vpop.f32.mrf.mxu2 }
 0x60b   : > { %v3925_v61 = vmul.f32 %v7518_v1, %v7518_v1  ;;  %v3886_v48 = vadd.f32 %v3885_v58, %v7518_v1 }
 0x60d   : > { %v3956_v25 = vadd.f32 %v3955_v50, %v3925_v61 }
 0x60f   : > { %3849 = vmatmul.f32.gmra.mxu2 %v3743_v36 }
 0x612   : > { %v7521_v18 = vpop.f32.mrf.mxu2 }
 0x613   : > { %v3926_v15 = vmul.f32 %v7521_v18, %v7521_v18  ;;  %v3887_v22 = vadd.f32 %v3886_v48, %v7521_v18 }
 0x615   : > { %v3957_v29 = vadd.f32 %v3956_v25, %v3926_v15 }
 0x617   : > { %3852 = vmatmul.f32.gmra.mxu2 %v3744_v45 }
 0x61a   : > { %v7524_v23 = vpop.f32.mrf.mxu2 }
 0x61b   : > { %v3927_v40 = vmul.f32 %v7524_v23, %v7524_v23  ;;  %v3888_v2 = vadd.f32 %v3887_v22, %v7524_v23 }
 0x61d   : > { %v3958_v0 = vadd.f32 %v3957_v29, %v3927_v40 }
 0x61f   : > { %3855 = vmatmul.f32.gmra.mxu2 %v3745_v7 }
 0x622   : > { %v7527_v21 = vpop.f32.mrf.mxu2 }
 0x623   : > { %v3928_v28 = vmul.f32 %v7527_v21, %v7527_v21  ;;  %v3889_v36 = vadd.f32 %v3888_v2, %v7527_v21 }
 0x627   : > { %3858 = vmatmul.f32.gmra.mxu2 %v3746_v43  ;;  %v3959_v43 = vadd.f32 %v3958_v0, %v3928_v28 }
 0x62a   : > { %v7530_v35 = vpop.f32.mrf.mxu2 }
 0x62b   : > { %v3929_v45 = vmul.f32 %v7530_v35, %v7530_v35  ;;  %v3890_v7 = vadd.f32 %v3889_v36, %v7530_v35 }
 0x62f   : > { %3861 = vmatmul.f32.gmra.mxu2 %v3747_v42 }
 0x632   : > { %v7533_v55 = vpop.f32.mrf.mxu2 }
 0x633   : > { %v3930_v42 = vmul.f32 %v7533_v55, %v7533_v55 }
 0x637   : > { %3864 = vmatmul.f32.gmra.mxu2 %v3748_v59  ;;  %v3960_v59 = vadd.f32 %v3959_v43, %v3929_v45 }
 0x639   : > { %v3961_v31 = vadd.f32 %v3960_v59, %v3930_v42 }
 0x63a   : > { %v7536_v63 = vpop.f32.mrf.mxu2 }
 0x63b   : > { %v3931_v19 = vmul.f32 %v7536_v63, %v7536_v63 }
 0x63d   : > { %v3962_v30 = vadd.f32 %v3961_v31, %v3931_v19 }
 0x63f   : > { %3867 = vmatmul.f32.gmra.mxu2 %v3749_v27  ;;  %v3891_v27 = vadd.f32 %v3890_v7, %v7533_v55 }
 0x641   : > { %v3892_v39 = vadd.f32 %v3891_v27, %v7536_v63 }
 0x642   : > { %v7539_v32 = vpop.f32.mrf.mxu2 }
 0x643   : > { %v3932_v46 = vmul.f32 %v7539_v32, %v7539_v32 }
 0x647   : > { %3870 = vmatmul.f32.gmra.mxu2 %v3750_v8 }
 0x64a   : > { %v7545_v17 = vpop.f32.mrf.mxu2 }
 0x64f   : > { %3873 = vmatmul.f32.gmra.mxu2 %v3751_v26  ;;  %v3893_v26 = vadd.f32 %v3892_v39, %v7539_v32 }
 0x651   : > { %v3894_v6 = vadd.f32 %v3893_v26, %v7545_v17 }
 0x652   : > { %v7548_v41 = vpop.f32.mrf.mxu2 }
 0x653   : > { %v3934_v60 = vmul.f32 %v7548_v41, %v7548_v41  ;;  %v3895_v44 = vadd.f32 %v3894_v6, %v7548_v41 }
 0x657   : > { %3876 = vmatmul.f32.gmra.mxu2 %v3752_v53  ;;  %v3933_v53 = vmul.f32 %v7545_v17, %v7545_v17 }
 0x65a   : > { %v7551_v51 = vpop.f32.mrf.mxu2 }
 0x65b   : > { %v3935_v56 = vmul.f32 %v7551_v51, %v7551_v51  ;;  %v3896_v33 = vadd.f32 %v3895_v44, %v7551_v51 }
 0x65f   : > { %3879 = vmatmul.f32.gmra.mxu2 %v3753_v34  ;;  %v3963_v34 = vadd.f32 %v3962_v30, %v3932_v46 }
 0x661   : > { %v3964_v14 = vadd.f32 %v3963_v34, %v3933_v53 }
 0x662   : > { %v7554_v20 = vpop.f32.mrf.mxu2 }
 0x663   : > { %v3965_v5 = vadd.f32 %v3964_v14, %v3934_v60  ;;  %v3936_v9 = vmul.f32 %v7554_v20, %v7554_v20  ;;  %v3897_v50 = vadd.f32 %v3896_v33, %v7554_v20 }
 0x665   : > { %v3966_v61 = vadd.f32 %v3965_v5, %v3935_v56 }
 0x667   : > { %v3967_v15 = vadd.f32 %v3966_v61, %v3936_v9 }
 0x66a   : > { %v7556_v38 = vpop.f32.mrf.mxu2 }
 0x66b   : > { %v3937_v48 = vmul.f32 %v7556_v38, %v7556_v38  ;;  %v3898_v25 = vadd.f32 %v3897_v50, %v7556_v38 }
 0x66d   : > { %v3968_v40 = vadd.f32 %v3967_v15, %v3937_v48 }
 0x672   : > { %v7558_v54 = vpop.f32.mrf.mxu2 }
 0x673   : > { %v3938_v22 = vmul.f32 %v7558_v54, %v7558_v54  ;;  %v3899_v29 = vadd.f32 %v3898_v25, %v7558_v54 }
 0x675   : > { %v3969_v28 = vadd.f32 %v3968_v40, %v3938_v22 }
 0x67a   : > { %v7560_v3 = vpop.f32.mrf.mxu2 }
 0x67b   : > { %v3939_v2 = vmul.f32 %v7560_v3, %v7560_v3  ;;  %v3900_v0 = vadd.f32 %v3899_v29, %v7560_v3 }
 0x67d   : > { %v3970_v7 = vadd.f32 %v3969_v28, %v3939_v2 }
 0x682   : > { %v7562_v24 = vpop.f32.mrf.mxu2 }
 0x683   : > { %v3940_v36 = vmul.f32 %v7562_v24, %v7562_v24  ;;  %v3901_v43 = vadd.f32 %v3900_v0, %v7562_v24 }
 0x685   : > { %v3971_v59 = vadd.f32 %v3970_v7, %v3940_v36 }
 0x68a   : > { %v7564_v47 = vpop.f32.mrf.mxu2 }
 0x68b   : > { %v3941_v42 = vmul.f32 %v7564_v47, %v7564_v47  ;;  %v3902_v27 = vadd.f32 %v3901_v43, %v7564_v47 }
 0x68d   : > { %v3972_v31 = vadd.f32 %v3971_v59, %v3941_v42 }
 0x692   : > { %v7566_v62 = vpop.f32.mrf.mxu2 }
 0x693   : > { %v3942_v19 = vmul.f32 %v7566_v62, %v7566_v62  ;;  %v3903_v39 = vadd.f32 %v3902_v27, %v7566_v62 }
 0x695   : > { %v3973_v30 = vadd.f32 %v3972_v31, %v3942_v19 }
 0x69a   : > { %v7568_v10 = vpop.f32.mrf.mxu2 }
 0x69b   : > { %v3943_v46 = vmul.f32 %v7568_v10, %v7568_v10  ;;  %v3904_v26 = vadd.f32 %v3903_v39, %v7568_v10 }
 0x69d   : > { %v3974_v6 = vadd.f32 %v3973_v30, %v3943_v46 }
 0x6a2   : > { %v7570_v37 = vpop.f32.mrf.mxu2 }
 0x6a3   : > { %v3944_v53 = vmul.f32 %v7570_v37, %v7570_v37  ;;  %v3905_v60 = vadd.f32 %v3904_v26, %v7570_v37 }
 0x6a5   : > { %v3975_v44 = vadd.f32 %v3974_v6, %v3944_v53 }
 0x6aa   : > { %v7583_v49 = vpop.f32.mrf.mxu2 }
 0x6ab   : > { %v3945_v14 = vmul.f32 %v7583_v49, %v7583_v49  ;;  %v3906_v56 = vadd.f32 %v3905_v60, %v7583_v49 }
 0x6ad   : > { %v3976_v33 = vadd.f32 %v3975_v44, %v3945_v14 }
 0x6b2   : > { %v7597_v13 = vpop.f32.mrf.mxu2 }
 0x6b3   : > { %v3946_v5 = vmul.f32 %v7597_v13, %v7597_v13  ;;  %v3907_v9 = vadd.f32 %v3906_v56, %v7597_v13 }
 0x6b5   : > { %v3977_v50 = vadd.f32 %v3976_v33, %v3946_v5 }
 0x6ba   : > { %v7611_v8 = vpop.f32.mrf.mxu2 }
 0x6bb   : > { %v3947_v61 = vmul.f32 %v7611_v8, %v7611_v8  ;;  %v3908_v48 = vadd.f32 %v3907_v9, %v7611_v8 }
 0x6bd   : > { %v3978_v22 = vadd.f32 %v3977_v50, %v3947_v61 }
 0x6c2   : > { %v7625_v58 = vpop.f32.mrf.mxu2 }
 0x6c3   : > { %v3948_v15 = vmul.f32 %v7625_v58, %v7625_v58  ;;  %v3909_v40 = vadd.f32 %v3908_v48, %v7625_v58 }
 0x6c5   : > { %v3979_v2 = vadd.f32 %v3978_v22, %v3948_v15 }
 0x6ca   : > { %v7639_v45 = vpop.f32.mrf.mxu2 }
 0x6cb   : > { %v3949_v29 = vmul.f32 %v7639_v45, %v7639_v45  ;;  %v3910_v28 = vadd.f32 %v3909_v40, %v7639_v45 }
 0x6cd   : > { %v3980_v36 = vadd.f32 %v3979_v2, %v3949_v29  ;;  %v4119_v2 = vld [vmem:[%s8355_s5] sm:$0x1] }
 0x6d2   : > { %v7653_v34 = vpop.f32.mrf.mxu2 }
 0x6d3   : > { %v3950_v0 = vmul.f32 %v7653_v34, %v7653_v34  ;;  %v3911_v7 = vadd.f32 %v3910_v28, %v7653_v34  ;;  %v4141_v28 = vpop.f32.mrf.mxu3 }
 0x6d5   : > { %v3981_v42 = vadd.f32 %v3980_v36, %v3950_v0  ;;  %v4142_v0 = vadd.f32 %v4141_v28, %v4119_v2 }
 0x6da   : > { %v7667_v25 = vpop.f32.mrf.mxu2 }
 0x6db   : > { %v3951_v43 = vmul.f32 %v7667_v25, %v7667_v25  ;;  %v3912_v59 = vadd.f32 %v3911_v7, %v7667_v25  ;;  %v4547_v7 = vmul.f32 -1.442695, %v4142_v0 }
 0x6dd   : > { %v3982_v19 = vadd.f32 %v3981_v42, %v3951_v43 }
 0x6e2   : > { %v3880_v27 = vpop.f32.mrf.mxu2 }
 0x6e3   : > { %v3913_v31 = vadd.f32 %v3912_v59, %v3880_v27  ;;  %v3952_v39 = vmul.f32 %v3880_v27, %v3880_v27 }
 0x6e5   : > { %v3914_v46 = vrot.slane %v3913_v31, 4  ;;  %v3983_v30 = vadd.f32 %v3982_v19, %v3952_v39 }
 0x6e7   : > { %v3915_v26 = vadd.f32 %v3914_v46, %v3913_v31  ;;  %v3984_v53 = vrot.slane %v3983_v30, 4 }
 0x6e9   : > { %v3916_v6 = vrot.slane %v3915_v26, 2  ;;  %v3985_v60 = vadd.f32 %v3984_v53, %v3983_v30  ;;  %v3994_v30 = vld [vmem:[#allocation14] sm:$0x1] }
 0x6eb   : > { %v3917_v14 = vadd.f32 %v3916_v6, %v3915_v26  ;;  %v3986_v44 = vrot.slane %v3985_v60, 2 }
 0x6ed   : > { %v3918_v56 = vrot.slane %v3917_v14, 1  ;;  %v3987_v5 = vadd.f32 %v3986_v44, %v3985_v60 }
 0x6ef   : > { %v3919_v33 = vadd.f32 %v3918_v56, %v3917_v14  ;;  %v3988_v9 = vrot.slane %v3987_v5, 1 }
 0x6f1   : > { %v3920_v61 = vmul.f32 %v3919_v33, %v8342_v57  ;;  %v3989_v50 = vadd.f32 %v3988_v9, %v3987_v5 }
 0x6f3   : > { %v3990_v48 = vmul.f32 %v3989_v50, %v8342_v57  ;;  %v3991_v15 = vmul.f32 %v3920_v61, %v3920_v61 }
 0x6f5   : > { %v3992_v22 = vsub.f32 %v3990_v48, %v3991_v15 }
 0x6f7   : > { %v3993_v40 = vmax.f32 %v3992_v22, 0.0 }
 0x6f9   : > { %v3995_v29 = vadd.f32 1e-05, %v3993_v40 }
 0x6fb   : > { %4742 = vrsqrt.f32 %v3995_v29  ;;  %vm4002_vm9 = vweird.f32 %v3995_v29 }
 0x6fc   : > { %4744 = vpow2.f32 %v4547_v7 }
 0x701   : > { %v4743_v36 = vpop.eup %4742 }
 0x702   : > { %v3997_v43 = vmul.f32 %v4743_v36, %v3995_v29  ;;  %v4745_v59 = vpop.eup %4744  ;;  %vm4003_vm8 = vweird.f32 %v4743_v36 }
 0x703   : > { %v4147_v31 = vadd.f32 1.0, %v4745_v59  ;;  %vm4004_vm10 = vmor %vm4002_vm9, %vm4003_vm8 }
 0x704   : > { %v3998_v42 = vmul.f32 %v4743_v36, %v3997_v43 }
 0x705   : > { %4746 = vrcp.f32 %v4147_v31  ;;  %vm4153_vm11 = vweird.f32 %v4147_v31  ;;  %v4159_v5 = vand.u32 2147483648, %v4147_v31  ;;  %v4157_v50 = vand.u32 2147483647, %v4147_v31 }
 0x706   : > { %v3999_v19 = vmul.f32 0.5, %v3998_v42 }
 0x707   : > { %v4160_v29 = vor.u32 1.1754944e-38, %v4159_v5  ;;  %vm4158_vm14 = vcmp.eq.f32.partialorder %v4157_v50, 8.507059e+37  ;;  %v4168_v50 = vld [vmem:[%s5354_s18 + $0x28] sm:$0xff] }
 0x708   : > { %v4000_v57 = vsub.f32 1.5, %v3999_v19 }
 0x70a   : > { %v4001_v39 = vmul.f32 %v4743_v36, %v4000_v57 }
 0x70b   : > { %v4747_v46 = vpop.eup %4746 }
 0x70c   : > { %v4005_v26 = vsel %vm4004_vm10, %v4743_v36, %v4001_v39  ;;  %v4149_v6 = vmul.f32 %v4747_v46, %v4147_v31  ;;  %vm4154_vm12 = vweird.f32 %v4747_v46  ;;  %v4163_v39 = vld [vmem:[%s5354_s18] sm:$0xff] }
 0x70d   : > { %v4006_v53 = vmul.f32 %v4005_v26, %v3994_v30  ;;  %vm7687_vm13 = vmor %vm4153_vm11, %vm4154_vm12 }
 0x70e   : > { %v4150_v60 = vsub.f32 1.0, %v4149_v6  ;;  %v4166_v6 = vld [vmem:[%s5354_s18 + $0x18] sm:$0xff] }
 0x70f   : > { %v4008_v14 = vmul.f32 %v4006_v53, %v3920_v61  ;;  %v7684_v56 = vperm.slane %v4006_v53, 0 }
 0x710   : > { %v4151_v44 = vmul.f32 %v4747_v46, %v4150_v60 }
 0x711   : > { %v4009_v33 = vsub.f32 %v7506_v4, %v4008_v14  ;;  %v7692_v15 = vmul.f32 %v7684_v56, %v3880_v27  ;;  %v4013_v61 = vmul.f32 %v7684_v56, %v7509_v16  ;;  %v4014_v22 = vmul.f32 %v7684_v56, %v7511_v12 }
 0x712   : > { %v4152_v9 = vadd.f32 %v4747_v46, %v4151_v44  ;;  %v4015_v40 = vmul.f32 %v7684_v56, %v7513_v52  ;;  %v4016_v4 = vmul.f32 %v7684_v56, %v7515_v11  ;;  %v4017_v28 = vmul.f32 %v7684_v56, %v7518_v1 }
 0x713   : > { %v7702_v2 = vperm.slane %v4009_v33, 0  ;;  %v4018_v16 = vmul.f32 %v7684_v56, %v7521_v18  ;;  %v4019_v12 = vmul.f32 %v7684_v56, %v7524_v23  ;;  %v4020_v52 = vmul.f32 %v7684_v56, %v7527_v21 }
 0x714   : > { %v4156_v27 = vsel %vm7687_vm13, %v4747_v46, %v4152_v9  ;;  %v4021_v11 = vmul.f32 %v7684_v56, %v7530_v35  ;;  %v4022_v0 = vmul.f32 %v7684_v56, %v7533_v55  ;;  %v4023_v1 = vmul.f32 %v7684_v56, %v7536_v63  ;;  %v4164_v46 = vld [vmem:[%s5354_s18 + $0x8] sm:$0xff] }
 0x715   : > { %v4024_v36 = vmul.f32 %v7684_v56, %v7539_v32  ;;  %v4025_v18 = vmul.f32 %v7684_v56, %v7545_v17  ;;  %v4026_v23 = vmul.f32 %v7684_v56, %v7548_v41  ;;  %v4027_v21 = vmul.f32 %v7684_v56, %v7551_v51 }
 0x716   : > { %v7730_v35 = vmul.f32 %v7684_v56, %v7554_v20  ;;  %v4161_v55 = vsel %vm4158_vm14, %v4160_v29, %v4156_v27  ;;  %v7734_v63 = vmul.f32 %v7684_v56, %v7556_v38  ;;  %v4048_v32 = vadd.f32 %v7702_v2, %v4013_v61  ;;  %v4170_v27 = vld [vmem:[%s5354_s18 + $0x38] sm:$0xff] }
 0x717   : > { %v4049_v7 = vadd.f32 %v7702_v2, %v4014_v22  ;;  %v4050_v17 = vadd.f32 %v7702_v2, %v4015_v40  ;;  %v7741_v41 = vmul.f32 %v7684_v56, %v7558_v54  ;;  %v7745_v51 = vmul.f32 %v7684_v56, %v7560_v3  ;;  %v4169_v40 = vld [vmem:[%s5354_s18 + $0x30] sm:$0xff] }
 0x718   : > { %v7749_v20 = vmul.f32 %v7684_v56, %v7562_v24  ;;  %v4051_v38 = vadd.f32 %v7702_v2, %v4016_v4  ;;  %v7754_v43 = vmul.f32 %v7684_v56, %v7564_v47  ;;  %v7758_v54 = vmul.f32 %v7684_v56, %v7566_v62 }
 0x719   : > { %v4052_v42 = vadd.f32 %v7702_v2, %v4017_v28  ;;  %v7761_v3 = vperm.slane %v4161_v55, 0  ;;  %v7765_v24 = vmul.f32 %v7684_v56, %v7568_v10  ;;  %v7769_v59 = vmul.f32 %v7684_v56, %v7570_v37  ;;  %v4165_v37 = vld [vmem:[%s5354_s18 + $0x10] sm:$0xff]  ;;  %v4172_v55 = vld [vmem:[%s5354_s18 + $0x48] sm:$0xff] }
 0x71a   : > { %v7773_v47 = vmul.f32 %v7684_v56, %v7583_v49  ;;  %v4053_v62 = vadd.f32 %v7702_v2, %v4018_v16  ;;  %v4054_v19 = vadd.f32 %v7702_v2, %v4019_v12  ;;  %v7785_v30 = vmul.f32 %v7684_v56, %v7597_v13 }
 0x71b   : > { %v4196_v31 = vmul.f32 %v7761_v3, %v4048_v32  ;;  %v4197_v57 = vmul.f32 %v7761_v3, %v4049_v7  ;;  %v4198_v10 = vmul.f32 %v7761_v3, %v4050_v17  ;;  %v7789_v49 = vmul.f32 %v7684_v56, %v7611_v8  ;;  %v4167_v8 = vld [vmem:[%s5354_s18 + $0x20] sm:$0xff] }
 0x71c   : > { %v4055_v26 = vadd.f32 %v7702_v2, %v4020_v52  ;;  %v4199_v53 = vmul.f32 %v7761_v3, %v4051_v38  ;;  %v7796_v60 = vmul.f32 %v7684_v56, %v7625_v58  ;;  %v7800_v14 = vmul.f32 %v7684_v56, %v7639_v45 }
 0x71d   : > { %v4056_v13 = vadd.f32 %v7702_v2, %v4021_v11  ;;  %v4200_v44 = vmul.f32 %v7761_v3, %v4052_v42  ;;  %v7807_v5 = vmul.f32 %v7684_v56, %v7653_v34  ;;  %v4057_v33 = vadd.f32 %v7702_v2, %v4022_v0  ;;  %v4171_v0 = vld [vmem:[%s5354_s18 + $0x40] sm:$0xff] }
 0x71e   : > { %v4058_v9 = vadd.f32 %v7702_v2, %v4023_v1  ;;  %v4201_v58 = vmul.f32 %v7761_v3, %v4053_v62  ;;  %v4202_v45 = vmul.f32 %v7761_v3, %v4054_v19  ;;  %v4228_v48 = vadd.f32 %v4196_v31, %v4163_v39  ;;  %v4174_v19 = vld [vmem:[%s5354_s18 + $0x58] sm:$0xff] }
 0x71f   : > { %v4229_v61 = vadd.f32 %v4197_v57, %v4164_v46  ;;  %v4230_v22 = vadd.f32 %v4198_v10, %v4165_v37  ;;  %v7817_v4 = vmul.f32 %v7684_v56, %v7667_v25  ;;  %v4059_v34 = vadd.f32 %v7702_v2, %v4024_v36 }
 0x720   : > { %v4203_v29 = vmul.f32 %v7761_v3, %v4055_v26  ;;  %v4231_v28 = vadd.f32 %v4199_v53, %v4166_v6  ;;  %v4060_v16 = vadd.f32 %v7702_v2, %v4025_v18  ;;  %v4061_v12 = vadd.f32 %v7702_v2, %v4026_v23  ;;  %v4173_v23 = vld [vmem:[%s5354_s18 + $0x50] sm:$0xff]  ;;  %v4176_v53 = vld [vmem:[%s5354_s18 + $0x68] sm:$0xff] }
 0x721   : > { %v4204_v52 = vmul.f32 %v7761_v3, %v4056_v13  ;;  %v4232_v11 = vadd.f32 %v4200_v44, %v4167_v8  ;;  %v4062_v1 = vadd.f32 %v7702_v2, %v4027_v21  ;;  %v4205_v25 = vmul.f32 %v7761_v3, %v4057_v33  ;;  %v4177_v33 = vld [vmem:[%s5354_s18 + $0x70] sm:$0xff] }
 0x722   : > { %v4206_v56 = vmul.f32 %v7761_v3, %v4058_v9  ;;  %v4233_v36 = vadd.f32 %v4201_v58, %v4168_v50  ;;  %v4234_v32 = vadd.f32 %v4202_v45, %v4169_v40  ;;  %v4260_v7 = vmax.f32 %v4228_v48, 0.0  ;;  %v4178_v45 = vld [vmem:[%s5354_s18 + $0x78] sm:$0xff]  ;;  %v4179_v40 = vld [vmem:[%s5354_s18 + $0x80] sm:$0xff] }
 0x723   : > { %v4261_v18 = vmax.f32 %v4229_v61, 0.0  ;;  %v4262_v17 = vmax.f32 %v4230_v22, 0.0  ;;  %v4063_v38 = vadd.f32 %v7702_v2, %v7730_v35  ;;  %v4207_v42 = vmul.f32 %v7761_v3, %v4059_v34  ;;  %v4175_v35 = vld [vmem:[%s5354_s18 + $0x60] sm:$0xff] }
 0x724   : > { %v4235_v21 = vadd.f32 %v4203_v29, %v4170_v27  ;;  %v4263_v62 = vmax.f32 %v4231_v28, 0.0  ;;  %v4064_v31 = vadd.f32 %v7702_v2, %v7734_v63  ;;  %v4208_v57 = vmul.f32 %v7761_v3, %v4060_v16  ;;  %4292 = vst [vmem:[%s7840_s14] sm:$0xff] %v4260_v7  ;;  %v4180_v27 = vld [vmem:[%s5354_s18 + $0x88] sm:$0xff]  ;;  %v4183_v7 = vld [vmem:[%s5354_s18 + $0xa0] sm:$0xff] }
 0x725   : > { %v4236_v10 = vadd.f32 %v4204_v52, %v4171_v0  ;;  %v4264_v39 = vmax.f32 %v4232_v11, 0.0  ;;  %v4065_v46 = vadd.f32 %v7702_v2, %v7741_v41  ;;  %v4209_v37 = vmul.f32 %v7761_v3, %v4061_v12  ;;  %4293 = vst [vmem:[%s7840_s14 + $0x8] sm:$0xff] %v4261_v18  ;;  %v4181_v11 = vld [vmem:[%s5354_s18 + $0x90] sm:$0xff] }
 0x726   : > { %v4237_v63 = vadd.f32 %v4205_v25, %v4172_v55  ;;  %v4265_v26 = vmax.f32 %v4233_v36, 0.0  ;;  %v4066_v6 = vadd.f32 %v7702_v2, %v7745_v51  ;;  %v4210_v13 = vmul.f32 %v7761_v3, %v4062_v1  ;;  %4294 = vst [vmem:[%s7840_s14 + $0x10] sm:$0xff] %v4262_v17 }
 0x727   : > { %v4238_v44 = vadd.f32 %v4206_v56, %v4173_v23  ;;  %v4266_v8 = vmax.f32 %v4234_v32, 0.0  ;;  %v4067_v41 = vadd.f32 %v7702_v2, %v7749_v20  ;;  %v4211_v9 = vmul.f32 %v7761_v3, %v4063_v38  ;;  %4295 = vst [vmem:[%s7840_s14 + $0x18] sm:$0xff] %v4263_v62  ;;  %v4182_v56 = vld [vmem:[%s5354_s18 + $0x98] sm:$0xff]  ;;  %v4184_v38 = vld [vmem:[%s5354_s18 + $0xa8] sm:$0xff] }
 0x728   : > { %v4239_v58 = vadd.f32 %v4207_v42, %v4174_v19  ;;  %v4267_v50 = vmax.f32 %v4235_v21, 0.0  ;;  %v4068_v51 = vadd.f32 %v7702_v2, %v7754_v43  ;;  %v4212_v48 = vmul.f32 %v7761_v3, %v4064_v31  ;;  %4296 = vst [vmem:[%s7840_s14 + $0x20] sm:$0xff] %v4264_v39  ;;  %v4185_v19 = vld [vmem:[%s5354_s18 + $0xb0] sm:$0xff]  ;;  %v4186_v39 = vld [vmem:[%s5354_s18 + $0xb8] sm:$0xff] }
 0x729   : > { %v4240_v61 = vadd.f32 %v4208_v57, %v4175_v35  ;;  %v4268_v22 = vmax.f32 %v4236_v10, 0.0  ;;  %v4069_v20 = vadd.f32 %v7702_v2, %v7758_v54  ;;  %v4213_v34 = vmul.f32 %v7761_v3, %v4065_v46  ;;  %4297 = vst [vmem:[%s7840_s14 + $0x28] sm:$0xff] %v4265_v26 }
 0x72a   : > { %v4241_v29 = vadd.f32 %v4209_v37, %v4176_v53  ;;  %v4269_v28 = vmax.f32 %v4237_v63, 0.0  ;;  %v4070_v43 = vadd.f32 %v7702_v2, %v7765_v24  ;;  %v4214_v16 = vmul.f32 %v7761_v3, %v4066_v6  ;;  %4298 = vst [vmem:[%s7840_s14 + $0x30] sm:$0xff] %v4266_v8  ;;  %v4187_v63 = vld [vmem:[%s5354_s18 + $0xc0] sm:$0xff] }
 0x72b   : > { %v4242_v12 = vadd.f32 %v4210_v13, %v4177_v33  ;;  %v4270_v52 = vmax.f32 %v4238_v44, 0.0  ;;  %v4071_v54 = vadd.f32 %v7702_v2, %v7769_v59  ;;  %v4215_v0 = vmul.f32 %v7761_v3, %v4067_v41  ;;  %4299 = vst [vmem:[%s7840_s14 + $0x38] sm:$0xff] %v4267_v50  ;;  %v4188_v13 = vld [vmem:[%s5354_s18 + $0xc8] sm:$0xff] }
 0x72c   : > { %v4243_v1 = vadd.f32 %v4211_v9, %v4178_v45  ;;  %v4271_v25 = vmax.f32 %v4239_v58, 0.0  ;;  %v4072_v24 = vadd.f32 %v7702_v2, %v7773_v47  ;;  %v4216_v36 = vmul.f32 %v7761_v3, %v4068_v51  ;;  %4300 = vst [vmem:[%s7840_s14 + $0x40] sm:$0xff] %v4268_v22 }
 0x72d   : > { %v4244_v55 = vadd.f32 %v4212_v48, %v4179_v40  ;;  %v4272_v32 = vmax.f32 %v4240_v61, 0.0  ;;  %v4073_v59 = vadd.f32 %v7702_v2, %v7785_v30  ;;  %v4217_v18 = vmul.f32 %v7761_v3, %v4069_v20  ;;  %4301 = vst [vmem:[%s7840_s14 + $0x48] sm:$0xff] %v4269_v28  ;;  %v4191_v61 = vld [vmem:[%s5354_s18 + $0xe0] sm:$0xff]  ;;  %v4192_v40 = vld [vmem:[%s5354_s18 + $0xe8] sm:$0xff]  ;;  %v4193_v28 = vld [vmem:[%s5354_s18 + $0xf0] sm:$0xff] }
 0x72e   : > { %v4245_v17 = vadd.f32 %v4213_v34, %v4180_v27  ;;  %v4273_v23 = vmax.f32 %v4241_v29, 0.0  ;;  %v4074_v47 = vadd.f32 %v7702_v2, %v7789_v49  ;;  %v4218_v42 = vmul.f32 %v7761_v3, %v4070_v43  ;;  %4302 = vst [vmem:[%s7840_s14 + $0x50] sm:$0xff] %v4270_v52 }
 0x72f   : > { %v4246_v21 = vadd.f32 %v4214_v16, %v4181_v11  ;;  %v4274_v62 = vmax.f32 %v4242_v12, 0.0  ;;  %v4075_v30 = vadd.f32 %v7702_v2, %v7796_v60  ;;  %v4219_v31 = vmul.f32 %v7761_v3, %v4071_v54  ;;  %4303 = vst [vmem:[%s7840_s14 + $0x58] sm:$0xff] %v4271_v25  ;;  %v4194_v12 = vld [vmem:[%s5354_s18 + $0xf8] sm:$0xff] }
 0x730   : > { %v4247_v57 = vadd.f32 %v4215_v0, %v4182_v56  ;;  %v4275_v10 = vmax.f32 %v4243_v1, 0.0  ;;  %v4076_v49 = vadd.f32 %v7702_v2, %v7800_v14  ;;  %v4220_v35 = vmul.f32 %v7761_v3, %v4072_v24  ;;  %4304 = vst [vmem:[%s7840_s14 + $0x60] sm:$0xff] %v4272_v32 }
 0x731   : > { %v4248_v46 = vadd.f32 %v4216_v36, %v4183_v7  ;;  %v4276_v37 = vmax.f32 %v4244_v55, 0.0  ;;  %v4077_v60 = vadd.f32 %v7702_v2, %v7807_v5  ;;  %v4221_v26 = vmul.f32 %v7761_v3, %v4073_v59  ;;  %4305 = vst [vmem:[%s7840_s14 + $0x68] sm:$0xff] %v4273_v23  ;;  %v4189_v5 = vld [vmem:[%s5354_s18 + $0xd0] sm:$0xff] }
 0x732   : > { %v4249_v53 = vadd.f32 %v4217_v18, %v4184_v38  ;;  %v4277_v6 = vmax.f32 %v4245_v17, 0.0  ;;  %v4078_v14 = vadd.f32 %v7702_v2, %v7817_v4  ;;  %v4222_v44 = vmul.f32 %v7761_v3, %v4074_v47  ;;  %4306 = vst [vmem:[%s7840_s14 + $0x70] sm:$0xff] %v4274_v62  ;;  %v4190_v4 = vld [vmem:[%s5354_s18 + $0xd8] sm:$0xff]  ;;  %s4337_s18 = sshll.u32 %s7840_s14, 4  ;;  %s4338_s18 = int_to_ptr.vmem [resolvable:$true] %s4337_s18 }
 0x733   : > { %v4250_v8 = vadd.f32 %v4218_v42, %v4185_v19  ;;  %v4278_v33 = vmax.f32 %v4246_v21, 0.0  ;;  %v4079_v41 = vadd.f32 %v7702_v2, %v7692_v15  ;;  %v4223_v9 = vmul.f32 %v7761_v3, %v4075_v30  ;;  %4307 = vst [vmem:[%s7840_s14 + $0x78] sm:$0xff] %v4275_v10 }
 0x734   : > { %v4251_v58 = vadd.f32 %v4219_v31, %v4186_v39  ;;  %v4279_v50 = vmax.f32 %v4247_v57, 0.0  ;;  %v4224_v45 = vmul.f32 %v7761_v3, %v4076_v49  ;;  %v4252_v51 = vadd.f32 %v4220_v35, %v4187_v63  ;;  %4308 = vst [vmem:[%s7840_s14 + $0x80] sm:$0xff] %v4276_v37 }
 0x735   : > { %v4280_v48 = vmax.f32 %v4248_v46, 0.0  ;;  %v4225_v22 = vmul.f32 %v7761_v3, %v4077_v60  ;;  %v4253_v15 = vadd.f32 %v4221_v26, %v4188_v13  ;;  %v4281_v2 = vmax.f32 %v4249_v53, 0.0  ;;  %4309 = vst [vmem:[%s7840_s14 + $0x88] sm:$0xff] %v4277_v6 }
 0x736   : > { %v4226_v20 = vmul.f32 %v7761_v3, %v4078_v14  ;;  %v4254_v34 = vadd.f32 %v4222_v44, %v4189_v5  ;;  %v4282_v29 = vmax.f32 %v4250_v8, 0.0  ;;  %4310 = vst [vmem:[%s7840_s14 + $0x90] sm:$0xff] %v4278_v33  ;;  %v4227_v27 = vmul.f32 %v7761_v3, %v4079_v41 }
 0x737   : > { %v4255_v43 = vadd.f32 %v4223_v9, %v4190_v4  ;;  %v4283_v16 = vmax.f32 %v4251_v58, 0.0  ;;  %4311 = vst [vmem:[%s7840_s14 + $0x98] sm:$0xff] %v4279_v50  ;;  %v4256_v52 = vadd.f32 %v4224_v45, %v4191_v61  ;;  %v4284_v11 = vmax.f32 %v4252_v51, 0.0 }
 0x738   : > { %4312 = vst [vmem:[%s7840_s14 + $0xa0] sm:$0xff] %v4280_v48  ;;  %v4257_v54 = vadd.f32 %v4225_v22, %v4192_v40  ;;  %v4285_v0 = vmax.f32 %v4253_v15, 0.0  ;;  %v4258_v1 = vadd.f32 %v4226_v20, %v4193_v28  ;;  %v4286_v25 = vmax.f32 %v4254_v34, 0.0 }
 0x739   : > { %4313 = vst [vmem:[%s7840_s14 + $0xa8] sm:$0xff] %v4281_v2  ;;  %v4259_v3 = vadd.f32 %v4227_v27, %v4194_v12  ;;  %v4287_v56 = vmax.f32 %v4255_v43, 0.0  ;;  %v4288_v24 = vmax.f32 %v4256_v52, 0.0 }
 0x73a   : > { %4314 = vst [vmem:[%s7840_s14 + $0xb0] sm:$0xff] %v4282_v29  ;;  %v4289_v36 = vmax.f32 %v4257_v54, 0.0  ;;  %v4290_v55 = vmax.f32 %v4258_v1, 0.0 }
 0x73b   : > { %4315 = vst [vmem:[%s7840_s14 + $0xb8] sm:$0xff] %v4283_v16  ;;  %v4291_v32 = vmax.f32 %v4259_v3, 0.0 }
 0x73c   : > { %4316 = vst [vmem:[%s7840_s14 + $0xc0] sm:$0xff] %v4284_v11 }
 0x73d   : > { %4317 = vst [vmem:[%s7840_s14 + $0xc8] sm:$0xff] %v4285_v0 }
 0x73e   : > { %4318 = vst [vmem:[%s7840_s14 + $0xd0] sm:$0xff] %v4286_v25 }
 0x73f   : > { %4319 = vst [vmem:[%s7840_s14 + $0xd8] sm:$0xff] %v4287_v56 }
 0x740   : > { %4320 = vst [vmem:[%s7840_s14 + $0xe0] sm:$0xff] %v4288_v24 }
 0x741   : > { %4321 = vst [vmem:[%s7840_s14 + $0xe8] sm:$0xff] %v4289_v36 }
 0x742   : > { %4322 = vst [vmem:[%s7840_s14 + $0xf0] sm:$0xff] %v4290_v55 }
 0x743   : > { %4323 = vst [vmem:[%s7840_s14 + $0xf8] sm:$0xff] %v4291_v32 }
 0x744   : > { %5055 = shalt.err (!%p5052_p9)
}
 0x745   : > { %s5124_s19 = smov 128   ;;  %s5125_s14 = smov 8  }
 0x746   : > { %4637 = dma.vmem_to_hbm [thread:$0]  (%p5314_p5), %s4338_s18, 4096, %s4340_s24, %s4325_s8, %s5124_s19, %s5124_s19, %s5125_s14  }
 0x747 PF: > { %s4354_s6 = sand.u32 1, %s5098_s29   ;;  %p8359_p10 = scmp.ge.s32.totalorder %s5110_s16, 2 }
 0x748   : > { %s4355_s22 = scalar_lea.sflag [#allocation5], %s4354_s6 }
 0x749   : > { %p4669_p13 = pnand %p8359_p10, %p5318_p6 }
 0x74b   : > { %p4670_p11 = pneg %p4669_p13 }
 0x74d   : > { %5093 = dma.done.wait (%p4670_p11), %s4355_s22, 4096  }
 0x74e   : > { %5095 = vsyncadd (%p4670_p11), %s4355_s22, 4294963200  ;;  %p31_p0 = scmp.ge.s32.totalorder %s5288_s3, 4   ;;  %s8360_s29 = smov %s5102_s30 }
 0x74f   : > { %s8361_s30 = smov %s5106_s15  ;;  %s8362_s15 = smov %s5299_s13 }
 0x750   : > { %s8363_s16 = smov %s5288_s3  ;;  %33 = sbr.rel (!%p31_p0) target bundleno = 19 (0x13), region = 161 }
 0x755   :  { %4361 = vsyncpa [#allocation4], 1 }
 0x756   :  { %4363 = vsyncpa [#allocation4 + $0x1], 1 }
 0x757   :  { %4364 = vsyncpa [#allocation7], 1 }
 0x758   :  { %4365 = vsyncpa [#allocation10], 1 }
 0x759   :  { %4366 = vsyncpa [#allocation13], 1 }
 0x75a   :  { %4367 = vsyncpa [#allocation16], 1 }
 0x75b   :  { %4368 = vsyncpa [#allocation5], 1 }
 0x75c   :  { %4370 = vsyncpa [#allocation5 + $0x1], 1 }

</bundles_post_ra>
